<compile_context>
chip_gen: v7x
topology: tpu7x:2x2x1
jax: 0.10.0
libtpu: 0.0.40
codegen_flags: <defaults>
</compile_context>

<pallas_src>
import jax
import jax.numpy as jnp
from jax.experimental import pallas as pl
from jax.experimental.pallas import tpu as pltpu

INPUT_DIM = 784
HIDDEN_DIM = 400
LATENT_DIM = 2
TM_MAX = 256  # batch tile: multiple of 256 for v6e/v7x MXU (also a 128-multiple for v5e)


def _leaky_relu(x, slope=0.2):
    return jnp.where(x > 0, x, slope * x)


def vae_kernel(
    x_ref, eps_ref,
    w1_ref, b1_ref, w2_ref, b2_ref,      # encoder (bf16 weights, f32 biases)
    wh_ref, bh_ref,                      # fused [mean | logvar] head
    w3_ref, b3_ref,                      # decoder layer 1 (K=2 -> VPU outer product)
    w4_ref, b4_ref, w5_ref, b5_ref,      # decoder
    xhat_ref, mv_ref,
):
    x = x_ref[...].astype(jnp.bfloat16)

    # ----- encoder: bf16 MXU matmuls, f32 accumulation / bias / activation -----
    h = jnp.dot(x, w1_ref[...], preferred_element_type=jnp.float32) + b1_ref[...]
    h = _leaky_relu(h)
    h = jnp.dot(h.astype(jnp.bfloat16), w2_ref[...],
                preferred_element_type=jnp.float32) + b2_ref[...]
    h = _leaky_relu(h)

    # ----- fused mean / logvar head: one [H, 2L] matmul instead of two [H, L] -----
    mv = jnp.dot(h.astype(jnp.bfloat16), wh_ref[...],
                 preferred_element_type=jnp.float32) + bh_ref[...]
    mean = mv[:, :LATENT_DIM]
    logvar = mv[:, LATENT_DIM:]

    # ----- reparameterization (matches the PyTorch code: z = mean + logvar * eps) -----
    # TODO(synk): PyTorch reference multiplies eps by logvar (not exp(0.5*logvar));
    # reproduced verbatim for fidelity.
    z = mean + logvar * eps_ref[...]

    # ----- decoder -----
    # First layer has K = LATENT_DIM = 2: two broadcast FMAs on the VPU beat a
    # heavily padded MXU matmul.
    w3 = w3_ref[...]
    d = z[:, 0:1] * w3[0:1, :] + z[:, 1:2] * w3[1:2, :] + b3_ref[...]
    d = _leaky_relu(d)
    d = jnp.dot(d.astype(jnp.bfloat16), w4_ref[...],
                preferred_element_type=jnp.float32) + b4_ref[...]
    d = _leaky_relu(d)
    d = jnp.dot(d.astype(jnp.bfloat16), w5_ref[...],
                preferred_element_type=jnp.float32) + b5_ref[...]
    x_hat = jax.nn.sigmoid(d)

    xhat_ref[...] = x_hat.astype(xhat_ref.dtype)
    mv_ref[...] = mv.astype(mv_ref.dtype)


def _pick_tile(batch):
    """Return (tile_m, padded_batch).  Prefer tiles that divide the batch exactly."""
    if batch <= TM_MAX:
        return batch, batch
    for tm in (256, 128):
        if batch % tm == 0:
            return tm, batch
    tm = TM_MAX
    padded = ((batch + tm - 1) // tm) * tm
    return tm, padded


@jax.jit
def vae_forward(x, eps, params):
    (w1, b1, w2, b2, wh, bh, w3, b3, w4, b4, w5, b5) = params
    batch = x.shape[0]

    tm, padded = _pick_tile(batch)
    if padded != batch:
        pad = padded - batch
        x = jnp.pad(x, ((0, pad), (0, 0)))
        eps = jnp.pad(eps, ((0, pad), (0, 0)))
    grid = (padded // tm,)

    def batch_spec(feat):
        # activation tiles move with the batch grid index
        return pl.BlockSpec((tm, feat), lambda i: (i, 0))

    def weight_spec(shape):
        # same block every step -> DMA'd once, VMEM-resident across the grid
        return pl.BlockSpec(shape, lambda i: (0, 0))

    inputs = (x, eps, w1, b1, w2, b2, wh, bh, w3, b3, w4, b4, w5, b5)
    in_specs = [batch_spec(INPUT_DIM), batch_spec(LATENT_DIM)] + [
        weight_spec(a.shape) for a in inputs[2:]
    ]

    out_shapes = (
        jax.ShapeDtypeStruct((padded, INPUT_DIM), jnp.float32),        # x_hat
        jax.ShapeDtypeStruct((padded, 2 * LATENT_DIM), jnp.float32),   # [mean | logvar]
    )
    out_specs = (batch_spec(INPUT_DIM), batch_spec(2 * LATENT_DIM))

    x_hat, mv = pl.pallas_call(
        vae_kernel,
        out_shape=out_shapes,
        grid=grid,
        in_specs=in_specs,
        out_specs=out_specs,
        compiler_params=pltpu.CompilerParams(
            dimension_semantics=("parallel",),   # batch tiles independent; shards v7x's 2 TCs
            vmem_limit_bytes=32 << 20,
        ),
    )(*inputs)

    if padded != batch:
        x_hat = x_hat[:batch]
        mv = mv[:batch]
    mean = mv[:, :LATENT_DIM]
    logvar = mv[:, LATENT_DIM:]
    return x_hat, mean, logvar


def init_params(key):
    """nn.Linear-style init; weights stored [in, out]. Matmul weights are bf16."""
    def linear(key, fan_in, fan_out, w_dtype=jnp.bfloat16):
        kw, kb = jax.random.split(key)
        bound = 1.0 / (fan_in ** 0.5)
        w = jax.random.uniform(kw, (fan_in, fan_out), jnp.float32, -bound, bound)
        b = jax.random.uniform(kb, (1, fan_out), jnp.float32, -bound, bound)
        return w.astype(w_dtype), b

    keys = jax.random.split(key, 7)
    w1, b1 = linear(keys[0], INPUT_DIM, HIDDEN_DIM)
    w2, b2 = linear(keys[1], HIDDEN_DIM, HIDDEN_DIM)
    wm, bm = linear(keys[2], HIDDEN_DIM, LATENT_DIM)
    wv, bv = linear(keys[3], HIDDEN_DIM, LATENT_DIM)
    # decoder first layer stays f32: it runs on the VPU, not the MXU
    w3, b3 = linear(keys[4], LATENT_DIM, HIDDEN_DIM, w_dtype=jnp.float32)
    w4, b4 = linear(keys[5], HIDDEN_DIM, HIDDEN_DIM)
    w5, b5 = linear(keys[6], HIDDEN_DIM, INPUT_DIM)
    wh = jnp.concatenate([wm, wv], axis=1)   # [H, 2L] fused head weight
    bh = jnp.concatenate([bm, bv], axis=1)   # [1, 2L] fused head bias
    return (w1, b1, w2, b2, wh, bh, w3, b3, w4, b4, w5, b5)


def reference_forward(x, eps, params):
    """Pure-JAX reference using the same numerics (bf16 matmuls, f32 accumulation)."""
    (w1, b1, w2, b2, wh, bh, w3, b3, w4, b4, w5, b5) = params
    bf = jnp.bfloat16
    h = _leaky_relu(jnp.dot(x.astype(bf), w1, preferred_element_type=jnp.float32) + b1)
    h = _leaky_relu(jnp.dot(h.astype(bf), w2, preferred_element_type=jnp.float32) + b2)
    mv = jnp.dot(h.astype(bf), wh, preferred_element_type=jnp.float32) + bh
    mean, logvar = mv[:, :LATENT_DIM], mv[:, LATENT_DIM:]
    z = mean + logvar * eps
    d = _leaky_relu(z[:, 0:1] * w3[0:1, :] + z[:, 1:2] * w3[1:2, :] + b3)
    d = _leaky_relu(jnp.dot(d.astype(bf), w4, preferred_element_type=jnp.float32) + b4)
    d = jnp.dot(d.astype(bf), w5, preferred_element_type=jnp.float32) + b5
    return jax.nn.sigmoid(d), mean, logvar


if __name__ == "__main__":
    key = jax.random.PRNGKey(0)
    k_params, k_data = jax.random.split(key)
    params = init_params(k_params)

    # batch=2:   small demo (single full-array tile).
    # batch=384: batch-tiled grid with an exact 128-row tile (no padding).
    # batch=300: exercises the wrapper-side padding path (tm=256, padded to 512).
    for batch in (2, 384, 300):
        kx, ke = jax.random.split(jax.random.fold_in(k_data, batch))
        x = jax.random.uniform(kx, (batch, INPUT_DIM), jnp.float32)      # MNIST-like [0,1)
        eps = jax.random.normal(ke, (batch, LATENT_DIM), jnp.float32)    # randn_like(logvar)

        x_hat, mean, logvar = vae_forward(x, eps, params)
        jax.block_until_ready((x_hat, mean, logvar))

        rx, rm, rl = reference_forward(x, eps, params)
        assert jnp.allclose(x_hat, rx, atol=1e-2, rtol=1e-2), f"x_hat mismatch (batch={batch})"
        assert jnp.allclose(mean, rm, atol=1e-2, rtol=1e-2), f"mean mismatch (batch={batch})"
        assert jnp.allclose(logvar, rl, atol=1e-2, rtol=1e-2), f"logvar mismatch (batch={batch})"

    print("KERNEL_OK")
</pallas_src>

<mosaic_0001>
module attributes {stable_mosaic.version = 11 : i64} {
  func.func @vae_kernel(%arg0: i32, %arg1: memref<2x784xf32, #tpu.memory_space<vmem>>, %arg2: memref<2x2xf32, #tpu.memory_space<vmem>>, %arg3: memref<784x400xbf16, #tpu.memory_space<vmem>>, %arg4: memref<1x400xf32, #tpu.memory_space<vmem>>, %arg5: memref<400x400xbf16, #tpu.memory_space<vmem>>, %arg6: memref<1x400xf32, #tpu.memory_space<vmem>>, %arg7: memref<400x4xbf16, #tpu.memory_space<vmem>>, %arg8: memref<1x4xf32, #tpu.memory_space<vmem>>, %arg9: memref<2x400xf32, #tpu.memory_space<vmem>>, %arg10: memref<1x400xf32, #tpu.memory_space<vmem>>, %arg11: memref<400x400xbf16, #tpu.memory_space<vmem>>, %arg12: memref<1x400xf32, #tpu.memory_space<vmem>>, %arg13: memref<400x784xbf16, #tpu.memory_space<vmem>>, %arg14: memref<1x784xf32, #tpu.memory_space<vmem>>, %arg15: memref<2x784xf32, #tpu.memory_space<vmem>>, %arg16: memref<2x4xf32, #tpu.memory_space<vmem>>) attributes {dimension_semantics = [#tpu.dimension_semantics<parallel>], iteration_bounds = array<i64: 1>, scalar_prefetch = 0 : i64, scratch_operands = 0 : i64, tpu.core_type = #tpu.core_type<tc>, window_params = [{transform_indices = @transform_0, window_bounds = array<i64: 2, 784>}, {transform_indices = @transform_1, window_bounds = array<i64: 2, 2>}, {pipeline_mode = #tpu.pipeline_mode<synchronous>, transform_indices = @transform_2, window_bounds = array<i64: 784, 400>}, {pipeline_mode = #tpu.pipeline_mode<synchronous>, transform_indices = @transform_3, window_bounds = array<i64: 1, 400>}, {pipeline_mode = #tpu.pipeline_mode<synchronous>, transform_indices = @transform_4, window_bounds = array<i64: 400, 400>}, {pipeline_mode = #tpu.pipeline_mode<synchronous>, transform_indices = @transform_5, window_bounds = array<i64: 1, 400>}, {pipeline_mode = #tpu.pipeline_mode<synchronous>, transform_indices = @transform_6, window_bounds = array<i64: 400, 4>}, {pipeline_mode = #tpu.pipeline_mode<synchronous>, transform_indices = @transform_7, window_bounds = array<i64: 1, 4>}, {pipeline_mode = #tpu.pipeline_mode<synchronous>, transform_indices = @transform_8, window_bounds = array<i64: 2, 400>}, {pipeline_mode = #tpu.pipeline_mode<synchronous>, transform_indices = @transform_9, window_bounds = array<i64: 1, 400>}, {pipeline_mode = #tpu.pipeline_mode<synchronous>, transform_indices = @transform_10, window_bounds = array<i64: 400, 400>}, {pipeline_mode = #tpu.pipeline_mode<synchronous>, transform_indices = @transform_11, window_bounds = array<i64: 1, 400>}, {pipeline_mode = #tpu.pipeline_mode<synchronous>, transform_indices = @transform_12, window_bounds = array<i64: 400, 784>}, {pipeline_mode = #tpu.pipeline_mode<synchronous>, transform_indices = @transform_13, window_bounds = array<i64: 1, 784>}, {transform_indices = @transform_14, window_bounds = array<i64: 2, 784>}, {transform_indices = @transform_15, window_bounds = array<i64: 2, 4>}]} {
    %c0 = arith.constant 0 : index
    %c0_0 = arith.constant 0 : index
    %0 = vector.load %arg1[%c0, %c0_0] : memref<2x784xf32, #tpu.memory_space<vmem>>, vector<2x784xf32>
    %1 = arith.truncf %0 : vector<2x784xf32> to vector<2x784xbf16>
    %c0_1 = arith.constant 0 : index
    %c0_2 = arith.constant 0 : index
    %2 = vector.load %arg3[%c0_1, %c0_2] : memref<784x400xbf16, #tpu.memory_space<vmem>>, vector<784x400xbf16>
    %cst = arith.constant dense<0.000000e+00> : vector<2x400xf32>
    %3 = tpu.matmul %1, %2, %cst {dimension_numbers = #tpu.dot_dimension_numbers<[1], [0], [0], [1], [0, 0, 1, 1], [], []>} : vector<2x784xbf16>, vector<784x400xbf16>, vector<2x400xf32> -> vector<2x400xf32>
    %c0_3 = arith.constant 0 : index
    %c0_4 = arith.constant 0 : index
    %4 = vector.load %arg4[%c0_3, %c0_4] : memref<1x400xf32, #tpu.memory_space<vmem>>, vector<1x400xf32>
    %5 = vector.broadcast %4 : vector<1x400xf32> to vector<2x400xf32>
    %6 = arith.addf %3, %5 : vector<2x400xf32>
    %cst_5 = arith.constant 0.000000e+00 : f32
    %7 = vector.broadcast %cst_5 : f32 to vector<2x400xf32>
    %8 = arith.cmpf ogt, %6, %7 : vector<2x400xf32>
    %cst_6 = arith.constant 2.000000e-01 : f32
    %9 = vector.broadcast %cst_6 : f32 to vector<2x400xf32>
    %10 = arith.mulf %9, %6 : vector<2x400xf32>
    %11 = arith.select %8, %6, %10 : vector<2x400xi1>, vector<2x400xf32>
    %12 = arith.truncf %11 : vector<2x400xf32> to vector<2x400xbf16>
    %c0_7 = arith.constant 0 : index
    %c0_8 = arith.constant 0 : index
    %13 = vector.load %arg5[%c0_7, %c0_8] : memref<400x400xbf16, #tpu.memory_space<vmem>>, vector<400x400xbf16>
    %cst_9 = arith.constant dense<0.000000e+00> : vector<2x400xf32>
    %14 = tpu.matmul %12, %13, %cst_9 {dimension_numbers = #tpu.dot_dimension_numbers<[1], [0], [0], [1], [0, 0, 1, 1], [], []>} : vector<2x400xbf16>, vector<400x400xbf16>, vector<2x400xf32> -> vector<2x400xf32>
    %c0_10 = arith.constant 0 : index
    %c0_11 = arith.constant 0 : index
    %15 = vector.load %arg6[%c0_10, %c0_11] : memref<1x400xf32, #tpu.memory_space<vmem>>, vector<1x400xf32>
    %16 = vector.broadcast %15 : vector<1x400xf32> to vector<2x400xf32>
    %17 = arith.addf %14, %16 : vector<2x400xf32>
    %cst_12 = arith.constant 0.000000e+00 : f32
    %18 = vector.broadcast %cst_12 : f32 to vector<2x400xf32>
    %19 = arith.cmpf ogt, %17, %18 : vector<2x400xf32>
    %cst_13 = arith.constant 2.000000e-01 : f32
    %20 = vector.broadcast %cst_13 : f32 to vector<2x400xf32>
    %21 = arith.mulf %20, %17 : vector<2x400xf32>
    %22 = arith.select %19, %17, %21 : vector<2x400xi1>, vector<2x400xf32>
    %23 = arith.truncf %22 : vector<2x400xf32> to vector<2x400xbf16>
    %c0_14 = arith.constant 0 : index
    %c0_15 = arith.constant 0 : index
    %24 = vector.load %arg7[%c0_14, %c0_15] : memref<400x4xbf16, #tpu.memory_space<vmem>>, vector<400x4xbf16>
    %cst_16 = arith.constant dense<0.000000e+00> : vector<2x4xf32>
    %25 = tpu.matmul %23, %24, %cst_16 {dimension_numbers = #tpu.dot_dimension_numbers<[1], [0], [0], [1], [0, 0, 1, 1], [], []>} : vector<2x400xbf16>, vector<400x4xbf16>, vector<2x4xf32> -> vector<2x4xf32>
    %c0_17 = arith.constant 0 : index
    %c0_18 = arith.constant 0 : index
    %26 = vector.load %arg8[%c0_17, %c0_18] : memref<1x4xf32, #tpu.memory_space<vmem>>, vector<1x4xf32>
    %27 = vector.broadcast %26 : vector<1x4xf32> to vector<2x4xf32>
    %28 = arith.addf %25, %27 : vector<2x4xf32>
    %29 = vector.extract_strided_slice %28 {offsets = [0, 0], sizes = [2, 2], strides = [1, 1]} : vector<2x4xf32> to vector<2x2xf32>
    %30 = vector.extract_strided_slice %28 {offsets = [0, 2], sizes = [2, 2], strides = [1, 1]} : vector<2x4xf32> to vector<2x2xf32>
    %c0_19 = arith.constant 0 : index
    %c0_20 = arith.constant 0 : index
    %31 = vector.load %arg2[%c0_19, %c0_20] : memref<2x2xf32, #tpu.memory_space<vmem>>, vector<2x2xf32>
    %32 = arith.mulf %30, %31 : vector<2x2xf32>
    %33 = arith.addf %29, %32 : vector<2x2xf32>
    %c0_21 = arith.constant 0 : index
    %c0_22 = arith.constant 0 : index
    %34 = vector.load %arg9[%c0_21, %c0_22] : memref<2x400xf32, #tpu.memory_space<vmem>>, vector<2x400xf32>
    %35 = vector.extract_strided_slice %33 {offsets = [0, 0], sizes = [2, 1], strides = [1, 1]} : vector<2x2xf32> to vector<2x1xf32>
    %36 = vector.extract_strided_slice %34 {offsets = [0, 0], sizes = [1, 400], strides = [1, 1]} : vector<2x400xf32> to vector<1x400xf32>
    %37 = vector.broadcast %35 : vector<2x1xf32> to vector<2x400xf32>
    %38 = vector.broadcast %36 : vector<1x400xf32> to vector<2x400xf32>
    %39 = arith.mulf %37, %38 : vector<2x400xf32>
    %40 = vector.extract_strided_slice %33 {offsets = [0, 1], sizes = [2, 1], strides = [1, 1]} : vector<2x2xf32> to vector<2x1xf32>
    %41 = vector.extract_strided_slice %34 {offsets = [1, 0], sizes = [1, 400], strides = [1, 1]} : vector<2x400xf32> to vector<1x400xf32>
    %42 = vector.broadcast %40 : vector<2x1xf32> to vector<2x400xf32>
    %43 = vector.broadcast %41 : vector<1x400xf32> to vector<2x400xf32>
    %44 = arith.mulf %42, %43 : vector<2x400xf32>
    %45 = arith.addf %39, %44 : vector<2x400xf32>
    %c0_23 = arith.constant 0 : index
    %c0_24 = arith.constant 0 : index
    %46 = vector.load %arg10[%c0_23, %c0_24] : memref<1x400xf32, #tpu.memory_space<vmem>>, vector<1x400xf32>
    %47 = vector.broadcast %46 : vector<1x400xf32> to vector<2x400xf32>
    %48 = arith.addf %45, %47 : vector<2x400xf32>
    %cst_25 = arith.constant 0.000000e+00 : f32
    %49 = vector.broadcast %cst_25 : f32 to vector<2x400xf32>
    %50 = arith.cmpf ogt, %48, %49 : vector<2x400xf32>
    %cst_26 = arith.constant 2.000000e-01 : f32
    %51 = vector.broadcast %cst_26 : f32 to vector<2x400xf32>
    %52 = arith.mulf %51, %48 : vector<2x400xf32>
    %53 = arith.select %50, %48, %52 : vector<2x400xi1>, vector<2x400xf32>
    %54 = arith.truncf %53 : vector<2x400xf32> to vector<2x400xbf16>
    %c0_27 = arith.constant 0 : index
    %c0_28 = arith.constant 0 : index
    %55 = vector.load %arg11[%c0_27, %c0_28] : memref<400x400xbf16, #tpu.memory_space<vmem>>, vector<400x400xbf16>
    %cst_29 = arith.constant dense<0.000000e+00> : vector<2x400xf32>
    %56 = tpu.matmul %54, %55, %cst_29 {dimension_numbers = #tpu.dot_dimension_numbers<[1], [0], [0], [1], [0, 0, 1, 1], [], []>} : vector<2x400xbf16>, vector<400x400xbf16>, vector<2x400xf32> -> vector<2x400xf32>
    %c0_30 = arith.constant 0 : index
    %c0_31 = arith.constant 0 : index
    %57 = vector.load %arg12[%c0_30, %c0_31] : memref<1x400xf32, #tpu.memory_space<vmem>>, vector<1x400xf32>
    %58 = vector.broadcast %57 : vector<1x400xf32> to vector<2x400xf32>
    %59 = arith.addf %56, %58 : vector<2x400xf32>
    %cst_32 = arith.constant 0.000000e+00 : f32
    %60 = vector.broadcast %cst_32 : f32 to vector<2x400xf32>
    %61 = arith.cmpf ogt, %59, %60 : vector<2x400xf32>
    %cst_33 = arith.constant 2.000000e-01 : f32
    %62 = vector.broadcast %cst_33 : f32 to vector<2x400xf32>
    %63 = arith.mulf %62, %59 : vector<2x400xf32>
    %64 = arith.select %61, %59, %63 : vector<2x400xi1>, vector<2x400xf32>
    %65 = arith.truncf %64 : vector<2x400xf32> to vector<2x400xbf16>
    %c0_34 = arith.constant 0 : index
    %c0_35 = arith.constant 0 : index
    %66 = vector.load %arg13[%c0_34, %c0_35] : memref<400x784xbf16, #tpu.memory_space<vmem>>, vector<400x784xbf16>
    %cst_36 = arith.constant dense<0.000000e+00> : vector<2x784xf32>
    %67 = tpu.matmul %65, %66, %cst_36 {dimension_numbers = #tpu.dot_dimension_numbers<[1], [0], [0], [1], [0, 0, 1, 1], [], []>} : vector<2x400xbf16>, vector<400x784xbf16>, vector<2x784xf32> -> vector<2x784xf32>
    %c0_37 = arith.constant 0 : index
    %c0_38 = arith.constant 0 : index
    %68 = vector.load %arg14[%c0_37, %c0_38] : memref<1x784xf32, #tpu.memory_space<vmem>>, vector<1x784xf32>
    %69 = vector.broadcast %68 : vector<1x784xf32> to vector<2x784xf32>
    %70 = arith.addf %67, %69 : vector<2x784xf32>
    %71 = arith.negf %70 : vector<2x784xf32>
    %72 = math.exp %71 : vector<2x784xf32>
    %cst_39 = arith.constant 1.000000e+00 : f32
    %73 = vector.broadcast %cst_39 : f32 to vector<2x784xf32>
    %74 = arith.addf %73, %72 : vector<2x784xf32>
    %75 = arith.divf %73, %74 : vector<2x784xf32>
    %c0_40 = arith.constant 0 : index
    %c0_41 = arith.constant 0 : index
    %76 = vector.load %arg15[%c0_40, %c0_41] : memref<2x784xf32, #tpu.memory_space<vmem>>, vector<2x784xf32>
    tpu.vector_store %arg15[%c0_40, %c0_41], %75 {strides = array<i32>} : memref<2x784xf32, #tpu.memory_space<vmem>>, vector<2x784xf32>,
    %c0_42 = arith.constant 0 : index
    %c0_43 = arith.constant 0 : index
    %77 = vector.load %arg16[%c0_42, %c0_43] : memref<2x4xf32, #tpu.memory_space<vmem>>, vector<2x4xf32>
    tpu.vector_store %arg16[%c0_42, %c0_43], %28 {strides = array<i32>} : memref<2x4xf32, #tpu.memory_space<vmem>>, vector<2x4xf32>,
    return
  }
  func.func @transform_0(%arg0: i32) -> (i32, i32) {
    %c0_i32 = arith.constant 0 : i32
    %c0_i32_0 = arith.constant 0 : i32
    return %arg0, %c0_i32 : i32, i32
  }
  func.func @transform_1(%arg0: i32) -> (i32, i32) {
    %c0_i32 = arith.constant 0 : i32
    %c0_i32_0 = arith.constant 0 : i32
    return %arg0, %c0_i32 : i32, i32
  }
  func.func @transform_2(%arg0: i32) -> (i32, i32) {
    %c0_i32 = arith.constant 0 : i32
    %c0_i32_0 = arith.constant 0 : i32
    %c0_i32_1 = arith.constant 0 : i32
    return %c0_i32, %c0_i32_0 : i32, i32
  }
  func.func @transform_3(%arg0: i32) -> (i32, i32) {
    %c0_i32 = arith.constant 0 : i32
    %c0_i32_0 = arith.constant 0 : i32
    %c0_i32_1 = arith.constant 0 : i32
    return %c0_i32, %c0_i32_0 : i32, i32
  }
  func.func @transform_4(%arg0: i32) -> (i32, i32) {
    %c0_i32 = arith.constant 0 : i32
    %c0_i32_0 = arith.constant 0 : i32
    %c0_i32_1 = arith.constant 0 : i32
    return %c0_i32, %c0_i32_0 : i32, i32
  }
  func.func @transform_5(%arg0: i32) -> (i32, i32) {
    %c0_i32 = arith.constant 0 : i32
    %c0_i32_0 = arith.constant 0 : i32
    %c0_i32_1 = arith.constant 0 : i32
    return %c0_i32, %c0_i32_0 : i32, i32
  }
  func.func @transform_6(%arg0: i32) -> (i32, i32) {
    %c0_i32 = arith.constant 0 : i32
    %c0_i32_0 = arith.constant 0 : i32
    %c0_i32_1 = arith.constant 0 : i32
    return %c0_i32, %c0_i32_0 : i32, i32
  }
  func.func @transform_7(%arg0: i32) -> (i32, i32) {
    %c0_i32 = arith.constant 0 : i32
    %c0_i32_0 = arith.constant 0 : i32
    %c0_i32_1 = arith.constant 0 : i32
    return %c0_i32, %c0_i32_0 : i32, i32
  }
  func.func @transform_8(%arg0: i32) -> (i32, i32) {
    %c0_i32 = arith.constant 0 : i32
    %c0_i32_0 = arith.constant 0 : i32
    %c0_i32_1 = arith.constant 0 : i32
    return %c0_i32, %c0_i32_0 : i32, i32
  }
  func.func @transform_9(%arg0: i32) -> (i32, i32) {
    %c0_i32 = arith.constant 0 : i32
    %c0_i32_0 = arith.constant 0 : i32
    %c0_i32_1 = arith.constant 0 : i32
    return %c0_i32, %c0_i32_0 : i32, i32
  }
  func.func @transform_10(%arg0: i32) -> (i32, i32) {
    %c0_i32 = arith.constant 0 : i32
    %c0_i32_0 = arith.constant 0 : i32
    %c0_i32_1 = arith.constant 0 : i32
    return %c0_i32, %c0_i32_0 : i32, i32
  }
  func.func @transform_11(%arg0: i32) -> (i32, i32) {
    %c0_i32 = arith.constant 0 : i32
    %c0_i32_0 = arith.constant 0 : i32
    %c0_i32_1 = arith.constant 0 : i32
    return %c0_i32, %c0_i32_0 : i32, i32
  }
  func.func @transform_12(%arg0: i32) -> (i32, i32) {
    %c0_i32 = arith.constant 0 : i32
    %c0_i32_0 = arith.constant 0 : i32
    %c0_i32_1 = arith.constant 0 : i32
    return %c0_i32, %c0_i32_0 : i32, i32
  }
  func.func @transform_13(%arg0: i32) -> (i32, i32) {
    %c0_i32 = arith.constant 0 : i32
    %c0_i32_0 = arith.constant 0 : i32
    %c0_i32_1 = arith.constant 0 : i32
    return %c0_i32, %c0_i32_0 : i32, i32
  }
  func.func @transform_14(%arg0: i32) -> (i32, i32) {
    %c0_i32 = arith.constant 0 : i32
    %c0_i32_0 = arith.constant 0 : i32
    return %arg0, %c0_i32 : i32, i32
  }
  func.func @transform_15(%arg0: i32) -> (i32, i32) {
    %c0_i32 = arith.constant 0 : i32
    %c0_i32_0 = arith.constant 0 : i32
    return %arg0, %c0_i32 : i32, i32
  }
}

</mosaic_0001>

<bundles_post_ra>
// kernel: vae_forward.1
= control target key start
LH: loop header
LB: loop body
LE: loop exit
PB: predicated region body
PF: predicated region fallthrough
CT: control target
= control target key end

     0   :  { %v59_v1 = vlaneseq  ;;  %v6932_v3 = vmov 0   ;;  %v6933_v5 = vmov 1983009808   ;;  %vm1300_vm0 = vcmask 130048   ;;  %s9057_s0 = inlined_call_operand.vmem [shape: f32[2,784], index: 0, kind: input, shape index: {}]   ;;  %s9058_s1 = inlined_call_operand.vmem [shape: f32[2,2], index: 1, kind: input, shape index: {}]   ;;  %s9059_s2 = inlined_call_operand.vmem [shape: bf16[784,400], index: 2, kind: input, shape index: {}]   ;;  %s9060_s3 = inlined_call_operand.vmem [shape: f32[1,400], index: 3, kind: input, shape index: {}]   ;;  %s9061_s4 = inlined_call_operand.vmem [shape: bf16[400,400], index: 4, kind: input, shape index: {}]   ;;  %s9062_s5 = inlined_call_operand.vmem [shape: f32[1,400], index: 5, kind: input, shape index: {}]   ;;  %s9063_s6 = inlined_call_operand.vmem [shape: bf16[400,4], index: 6, kind: input, shape index: {}]   ;;  %s9064_s7 = inlined_call_operand.vmem [shape: f32[1,4], index: 7, kind: input, shape index: {}]   ;;  %s9065_s8 = inlined_call_operand.vmem [shape: f32[2,400], index: 8, kind: input, shape index: {}]   ;;  %s9066_s9 = inlined_call_operand.vmem [shape: f32[1,400], index: 9, kind: input, shape index: {}]   ;;  %s9067_s10 = inlined_call_operand.vmem [shape: bf16[400,400], index: 10, kind: input, shape index: {}]   ;;  %s9068_s11 = inlined_call_operand.vmem [shape: f32[1,400], index: 11, kind: input, shape index: {}]   ;;  %s9069_s12 = inlined_call_operand.vmem [shape: bf16[400,784], index: 12, kind: input, shape index: {}]   ;;  %s9070_s13 = inlined_call_operand.vmem [shape: f32[1,784], index: 13, kind: input, shape index: {}]   ;;  %s9071_s14 = inlined_call_operand.hbm [shape: f32[2,784], index: 14, kind: output, shape index: {0}]   ;;  %s9072_s15 = inlined_call_operand.vmem [shape: f32[2,4], index: 15, kind: output, shape index: {1}]  }
   0x1   :  { %v6009_v0 = vld [vmem:[%s9059_s2 + $0x4] ss:$16 sps:$4 sm:$0xff]   ;;  %v6011_v2 = vld [vmem:[%s9059_s2] ss:$16 sps:$4 sm:$0xff]   ;;  %1459 = vmatprep.mubr.bf16.mxu1 %v6932_v3  ;;  %6006 = vset.pattern.permute.xlu1 %v6932_v3  ;;  %v57_v6 = vunpack.c.l.s4 %v6933_v5  ;;  %v6020_v12 = vld [vmem:[%s9059_s2 + $0xc] ss:$16 sps:$4 sm:$0xff]  }
   0x2   :  { %1304 = vmatprep.subr.bf16.mxu0 %v6009_v0  ;;  %v6012_v4 = vld [vmem:[%s9059_s2 + $0x604] ss:$16 sps:$4 sm:$0xff]   ;;  %v7029_v7 = vshrl.u32 %v59_v1, 7  ;;  %v6016_v9 = vld [vmem:[%s9059_s2 + $0x600] ss:$16 sps:$4 sm:$0xff]  }
   0x3   :  { %1305 = vmatpush1.bf16.msra.mxu0 %v6011_v2  ;;  %v6014_v8 = vld [vmem:[%s9059_s2 + $0x24] ss:$16 sps:$4 sm:$0xff]   ;;  %v6017_v10 = vld [vmem:[%s9059_s2 + $0x20] ss:$16 sps:$4 sm:$0xff]   ;;  %1427 = vmatprep.subr.bf16.mxu1 %v6012_v4  ;;  %v58_v11 = vunpack.c.0.s8 %v57_v6  ;;  %v7049_v14 = vld [vmem:[%s9057_s0 + $0x8] sm:$0x3f] }
   0x4   :  { %1306 = vmatprep.subr.bf16.mxu0 %v6014_v8  ;;  %1428 = vmatpush1.bf16.msra.mxu1 %v6016_v9  ;;  %v6021_v13 = vld [vmem:[%s9059_s2 + $0x44] ss:$16 sps:$4 sm:$0xff]   ;;  %v72_v16 = vcombine.high %v7049_v14, %v7049_v14  ;;  %v6024_v17 = vld [vmem:[%s9059_s2 + $0x40] ss:$16 sps:$4 sm:$0xff]   ;;  %v6018_v20 = vld [vmem:[%s9059_s2 + $0x8] ss:$16 sps:$4 sm:$0xff]  }
   0x5   :  { %v7052_v15 = vsub.s32 %v58_v11, %v7029_v7  ;;  %1468 = vmatprep.subr.bf16.mxu1 %v6020_v12  ;;  %v6028_v19 = vld [vmem:[%s9059_s2 + $0x64] ss:$16 sps:$4 sm:$0xff]   ;;  %v6027_v21 = vld [vmem:[%s9059_s2 + $0x2c] ss:$16 sps:$4 sm:$0xff]   ;;  %v6030_v23 = vld [vmem:[%s9059_s2 + $0x60] ss:$16 sps:$4 sm:$0xff]  }
   0x6   :  { %v6034_v24 = vld [vmem:[%s9059_s2 + $0x84] ss:$16 sps:$4 sm:$0xff]   ;;  %v6025_v25 = vld [vmem:[%s9059_s2 + $0x28] ss:$16 sps:$4 sm:$0xff]   ;;  %v6033_v26 = vld [vmem:[%s9059_s2 + $0x4c] ss:$16 sps:$4 sm:$0xff]  }
   0x7   :  { %1307 = vmatpush1.bf16.msra.mxu0 %v6017_v10  ;;  %v86_v18 = vrot.slane %v72_v16, %v7052_v15  ;;  %v6036_v27 = vld [vmem:[%s9059_s2 + $0x80] ss:$16 sps:$4 sm:$0xff]   ;;  %v6040_v28 = vld [vmem:[%s9059_s2 + $0xa4] ss:$16 sps:$4 sm:$0xff]   ;;  %v6031_v29 = vld [vmem:[%s9059_s2 + $0x48] ss:$16 sps:$4 sm:$0xff]  }
   0x8   :  { %1308 = vmatprep.subr.bf16.mxu0 %v6021_v13  ;;  %v6039_v30 = vld [vmem:[%s9059_s2 + $0x6c] ss:$16 sps:$4 sm:$0xff]   ;;  %v6042_v31 = vld [vmem:[%s9059_s2 + $0xa0] ss:$16 sps:$4 sm:$0xff]   ;;  %v6046_v32 = vld [vmem:[%s9059_s2 + $0xc4] ss:$16 sps:$4 sm:$0xff]  }
   0x9   :  { %v7069_v22 = vpack.c.bf16 %v86_v18, %v86_v18  ;;  %v6037_v33 = vld [vmem:[%s9059_s2 + $0x68] ss:$16 sps:$4 sm:$0xff]   ;;  %v6045_v34 = vld [vmem:[%s9059_s2 + $0x8c] ss:$16 sps:$4 sm:$0xff]   ;;  %v6048_v35 = vld [vmem:[%s9059_s2 + $0xc0] ss:$16 sps:$4 sm:$0xff]  }
   0xa   :  { %v6052_v36 = vld [vmem:[%s9059_s2 + $0xe4] ss:$16 sps:$4 sm:$0xff]   ;;  %v6043_v37 = vld [vmem:[%s9059_s2 + $0x88] ss:$16 sps:$4 sm:$0xff]   ;;  %v6051_v38 = vld [vmem:[%s9059_s2 + $0xac] ss:$16 sps:$4 sm:$0xff]  }
   0xb   :  { %1309 = vmatpush1.bf16.msra.mxu0 %v6024_v17  ;;  %5469 = vmatmul.mubr.msk.bf16.vlgmr.msra.gmra.mrb[0].mxu1 %vm1300_vm0, %v7069_v22  ;;  %v6054_v39 = vld [vmem:[%s9059_s2 + $0xe0] ss:$16 sps:$4 sm:$0xff]   ;;  %v6058_v40 = vld [vmem:[%s9059_s2 + $0x104] ss:$16 sps:$4 sm:$0xff]   ;;  %v6049_v41 = vld [vmem:[%s9059_s2 + $0xa8] ss:$16 sps:$4 sm:$0xff]  }
   0xc   :  { %1310 = vmatprep.subr.bf16.mxu0 %v6028_v19  ;;  %1469 = vmatpush1.bf16.msra.mxu1 %v6018_v20  ;;  %v6057_v42 = vld [vmem:[%s9059_s2 + $0xcc] ss:$16 sps:$4 sm:$0xff]   ;;  %v6060_v43 = vld [vmem:[%s9059_s2 + $0x100] ss:$16 sps:$4 sm:$0xff]   ;;  %v6064_v44 = vld [vmem:[%s9059_s2 + $0x124] ss:$16 sps:$4 sm:$0xff]  }
   0xd   :  { %1470 = vmatprep.subr.bf16.mxu1 %v6027_v21  ;;  %v6055_v45 = vld [vmem:[%s9059_s2 + $0xc8] ss:$16 sps:$4 sm:$0xff]   ;;  %v6063_v46 = vld [vmem:[%s9059_s2 + $0xec] ss:$16 sps:$4 sm:$0xff]   ;;  %v6066_v47 = vld [vmem:[%s9059_s2 + $0x120] ss:$16 sps:$4 sm:$0xff]  }
   0xe   :  { %v6070_v48 = vld [vmem:[%s9059_s2 + $0x144] ss:$16 sps:$4 sm:$0xff]   ;;  %v6061_v49 = vld [vmem:[%s9059_s2 + $0xe8] ss:$16 sps:$4 sm:$0xff]   ;;  %v6069_v50 = vld [vmem:[%s9059_s2 + $0x10c] ss:$16 sps:$4 sm:$0xff]  }
   0xf   :  { %1311 = vmatpush1.bf16.msra.mxu0 %v6030_v23  ;;  %v6072_v51 = vld [vmem:[%s9059_s2 + $0x140] ss:$16 sps:$4 sm:$0xff]   ;;  %v6076_v52 = vld [vmem:[%s9059_s2 + $0x164] ss:$16 sps:$4 sm:$0xff]   ;;  %v6067_v53 = vld [vmem:[%s9059_s2 + $0x108] ss:$16 sps:$4 sm:$0xff]  }
  0x10   :  { %1312 = vmatprep.subr.bf16.mxu0 %v6034_v24  ;;  %1471 = vmatpush1.bf16.msra.mxu1 %v6025_v25  ;;  %v6075_v54 = vld [vmem:[%s9059_s2 + $0x12c] ss:$16 sps:$4 sm:$0xff]   ;;  %v6078_v55 = vld [vmem:[%s9059_s2 + $0x160] ss:$16 sps:$4 sm:$0xff]   ;;  %v6082_v57 = vld [vmem:[%s9059_s2 + $0x184] ss:$16 sps:$4 sm:$0xff]  }
  0x11   :  { %1472 = vmatprep.subr.bf16.mxu1 %v6033_v26  ;;  %v51_v56 = vld [vmem:[%s9057_s0] sm:$0xff]  ;;  %v6073_v59 = vld [vmem:[%s9059_s2 + $0x128] ss:$16 sps:$4 sm:$0xff]   ;;  %v6081_v60 = vld [vmem:[%s9059_s2 + $0x14c] ss:$16 sps:$4 sm:$0xff]  }
  0x12   :  { %v62_v58 = vrot.slane %v51_v56, %v7052_v15  ;;  %v6084_v62 = vld [vmem:[%s9059_s2 + $0x180] ss:$16 sps:$4 sm:$0xff]   ;;  %v6088_v63 = vld [vmem:[%s9059_s2 + $0x1a4] ss:$16 sps:$4 sm:$0xff]   ;;  %v6079_v1 = vld [vmem:[%s9059_s2 + $0x148] ss:$16 sps:$4 sm:$0xff]   ;;  %v55_v6 = vcombine.high %v51_v56, %v51_v56 }
  0x13   :  { %1313 = vmatpush1.bf16.msra.mxu0 %v6036_v27  ;;  %v6087_v2 = vld [vmem:[%s9059_s2 + $0x16c] ss:$16 sps:$4 sm:$0xff]   ;;  %v6090_v4 = vld [vmem:[%s9059_s2 + $0x1a0] ss:$16 sps:$4 sm:$0xff]   ;;  %v6094_v5 = vld [vmem:[%s9059_s2 + $0x1c4] ss:$16 sps:$4 sm:$0xff]  }
  0x14   :  { %1314 = vmatprep.subr.bf16.mxu0 %v6040_v28  ;;  %1473 = vmatpush1.bf16.msra.mxu1 %v6031_v29  ;;  %v70_v61 = vcombine.high %v62_v58, %v62_v58  ;;  %v6085_v8 = vld [vmem:[%s9059_s2 + $0x168] ss:$16 sps:$4 sm:$0xff]   ;;  %v6093_v9 = vld [vmem:[%s9059_s2 + $0x18c] ss:$16 sps:$4 sm:$0xff]   ;;  %v6096_v10 = vld [vmem:[%s9059_s2 + $0x1c0] ss:$16 sps:$4 sm:$0xff]   ;;  %v7216_v12 = vrot.slane %v55_v6, %v7052_v15  ;;  %v95_v23 = vpack.c.bf16 %v62_v58, %v62_v58 }
  0x15   :  { %1474 = vmatprep.subr.bf16.mxu1 %v6039_v30  ;;  %v6100_v11 = vld [vmem:[%s9059_s2 + $0x1e4] ss:$16 sps:$4 sm:$0xff]   ;;  %v6091_v13 = vld [vmem:[%s9059_s2 + $0x188] ss:$16 sps:$4 sm:$0xff]   ;;  %v6099_v16 = vld [vmem:[%s9059_s2 + $0x1ac] ss:$16 sps:$4 sm:$0xff]  }
  0x16   :  { %v96_v0 = vpack.c.bf16 %v70_v61, %v70_v61  ;;  %v6102_v17 = vld [vmem:[%s9059_s2 + $0x1e0] ss:$16 sps:$4 sm:$0xff]   ;;  %v6109_v18 = vld [vmem:[%s9059_s2 + $0x204] ss:$16 sps:$4 sm:$0xff]   ;;  %v71_v19 = vcombine.high %v7216_v12, %v7216_v12  ;;  %v6097_v20 = vld [vmem:[%s9059_s2 + $0x1a8] ss:$16 sps:$4 sm:$0xff]  }
  0x17   :  { %1315 = vmatpush1.bf16.msra.mxu0 %v6042_v31  ;;  %v6105_v21 = vld [vmem:[%s9059_s2 + $0x1cc] ss:$16 sps:$4 sm:$0xff]   ;;  %v6107_v24 = vld [vmem:[%s9059_s2 + $0x200] ss:$16 sps:$4 sm:$0xff]   ;;  %v6115_v25 = vld [vmem:[%s9059_s2 + $0x224] ss:$16 sps:$4 sm:$0xff]  }
  0x18   :  { %1316 = vmatprep.subr.bf16.mxu0 %v6046_v32  ;;  %1475 = vmatpush1.bf16.msra.mxu1 %v6037_v33  ;;  %v98_v26 = vpack.c.bf16 %v71_v19, %v71_v19  ;;  %v6103_v27 = vld [vmem:[%s9059_s2 + $0x1c8] ss:$16 sps:$4 sm:$0xff]   ;;  %v6112_v28 = vld [vmem:[%s9059_s2 + $0x1ec] ss:$16 sps:$4 sm:$0xff]   ;;  %v6113_v29 = vld [vmem:[%s9059_s2 + $0x220] ss:$16 sps:$4 sm:$0xff]  }
  0x19   :  { %1476 = vmatprep.subr.bf16.mxu1 %v6045_v34  ;;  %1336 = vmatprep.mubr.bf16.mxu0 %v96_v0  ;;  %v6121_v30 = vld [vmem:[%s9059_s2 + $0x244] ss:$16 sps:$4 sm:$0xff]   ;;  %v6110_v31 = vld [vmem:[%s9059_s2 + $0x1e8] ss:$16 sps:$4 sm:$0xff]   ;;  %v6118_v32 = vld [vmem:[%s9059_s2 + $0x20c] ss:$16 sps:$4 sm:$0xff]  }
  0x1a   :  { %1500 = vmatprep.mubr.bf16.mxu1 %v96_v0  ;;  %v6119_v33 = vld [vmem:[%s9059_s2 + $0x240] ss:$16 sps:$4 sm:$0xff]   ;;  %v6127_v34 = vld [vmem:[%s9059_s2 + $0x264] ss:$16 sps:$4 sm:$0xff]   ;;  %v6154_v56 = vld [vmem:[%s9059_s2 + $0x2cc] ss:$16 sps:$4 sm:$0xff]  }
  0x1b   :  { %1317 = vmatpush1.bf16.msra.mxu0 %v6048_v35  ;;  %v6116_v35 = vld [vmem:[%s9059_s2 + $0x208] ss:$16 sps:$4 sm:$0xff]   ;;  %v6163_v58 = vld [vmem:[%s9059_s2 + $0x324] ss:$16 sps:$4 sm:$0xff]   ;;  %v6161_v61 = vld [vmem:[%s9059_s2 + $0x320] ss:$16 sps:$4 sm:$0xff]  }
  0x1c   :  { %1318 = vmatprep.subr.bf16.mxu0 %v6052_v36  ;;  %1477 = vmatpush1.bf16.msra.mxu1 %v6043_v37  ;;  %v6124_v36 = vld [vmem:[%s9059_s2 + $0x22c] ss:$16 sps:$4 sm:$0xff]   ;;  %v6125_v37 = vld [vmem:[%s9059_s2 + $0x260] ss:$16 sps:$4 sm:$0xff]   ;;  %v6193_v19 = vld [vmem:[%s9059_s2 + $0x3c4] ss:$16 sps:$4 sm:$0xff]  }
  0x1d   :  { %1478 = vmatprep.subr.bf16.mxu1 %v6051_v38  ;;  %v6133_v38 = vld [vmem:[%s9059_s2 + $0x284] ss:$16 sps:$4 sm:$0xff]   ;;  %v6166_v0 = vld [vmem:[%s9059_s2 + $0x30c] ss:$16 sps:$4 sm:$0xff]   ;;  %v6173_v6 = vld [vmem:[%s9059_s2 + $0x360] ss:$16 sps:$4 sm:$0xff]  }
  0x1f   :  { %1319 = vmatpush1.bf16.msra.mxu0 %v6054_v39  ;;  %v6122_v39 = vld [vmem:[%s9059_s2 + $0x228] ss:$16 sps:$4 sm:$0xff]  }
  0x20   :  { %1320 = vmatprep.subr.bf16.mxu0 %v6058_v40  ;;  %1479 = vmatpush1.bf16.msra.mxu1 %v6049_v41  ;;  %v6130_v40 = vld [vmem:[%s9059_s2 + $0x24c] ss:$16 sps:$4 sm:$0xff]   ;;  %v6131_v41 = vld [vmem:[%s9059_s2 + $0x280] ss:$16 sps:$4 sm:$0xff]  }
  0x21   :  { %1480 = vmatprep.subr.bf16.mxu1 %v6057_v42  ;;  %v6139_v42 = vld [vmem:[%s9059_s2 + $0x2a4] ss:$16 sps:$4 sm:$0xff]  }
  0x23   :  { %1321 = vmatpush1.bf16.msra.mxu0 %v6060_v43  ;;  %v6128_v43 = vld [vmem:[%s9059_s2 + $0x248] ss:$16 sps:$4 sm:$0xff]  }
  0x24   :  { %1322 = vmatprep.subr.bf16.mxu0 %v6064_v44  ;;  %1481 = vmatpush1.bf16.msra.mxu1 %v6055_v45  ;;  %v6136_v44 = vld [vmem:[%s9059_s2 + $0x26c] ss:$16 sps:$4 sm:$0xff]   ;;  %v6137_v45 = vld [vmem:[%s9059_s2 + $0x2a0] ss:$16 sps:$4 sm:$0xff]  }
  0x25   :  { %1482 = vmatprep.subr.bf16.mxu1 %v6063_v46  ;;  %v6145_v46 = vld [vmem:[%s9059_s2 + $0x2c4] ss:$16 sps:$4 sm:$0xff]  }
  0x27   :  { %1323 = vmatpush1.bf16.msra.mxu0 %v6066_v47  ;;  %v6134_v47 = vld [vmem:[%s9059_s2 + $0x268] ss:$16 sps:$4 sm:$0xff]  }
  0x28   :  { %1324 = vmatprep.subr.bf16.mxu0 %v6070_v48  ;;  %1483 = vmatpush1.bf16.msra.mxu1 %v6061_v49  ;;  %v6142_v48 = vld [vmem:[%s9059_s2 + $0x28c] ss:$16 sps:$4 sm:$0xff]   ;;  %v6143_v49 = vld [vmem:[%s9059_s2 + $0x2c0] ss:$16 sps:$4 sm:$0xff]  }
  0x29   :  { %1484 = vmatprep.subr.bf16.mxu1 %v6069_v50  ;;  %v6151_v50 = vld [vmem:[%s9059_s2 + $0x2e4] ss:$16 sps:$4 sm:$0xff]  }
  0x2b   :  { %1325 = vmatpush1.bf16.msra.mxu0 %v6072_v51  ;;  %v6140_v51 = vld [vmem:[%s9059_s2 + $0x288] ss:$16 sps:$4 sm:$0xff]  }
  0x2c   :  { %1326 = vmatprep.subr.bf16.mxu0 %v6076_v52  ;;  %1485 = vmatpush1.bf16.msra.mxu1 %v6067_v53  ;;  %v6148_v52 = vld [vmem:[%s9059_s2 + $0x2ac] ss:$16 sps:$4 sm:$0xff]   ;;  %v6149_v53 = vld [vmem:[%s9059_s2 + $0x2e0] ss:$16 sps:$4 sm:$0xff]  }
  0x2d   :  { %1486 = vmatprep.subr.bf16.mxu1 %v6075_v54  ;;  %v6157_v54 = vld [vmem:[%s9059_s2 + $0x304] ss:$16 sps:$4 sm:$0xff]  }
  0x2f   :  { %1327 = vmatpush1.bf16.msra.mxu0 %v6078_v55  ;;  %v6146_v55 = vld [vmem:[%s9059_s2 + $0x2a8] ss:$16 sps:$4 sm:$0xff]  }
  0x30   :  { %1328 = vmatprep.subr.bf16.mxu0 %v6082_v57  ;;  %1487 = vmatpush1.bf16.msra.mxu1 %v6073_v59  ;;  %v6155_v57 = vld [vmem:[%s9059_s2 + $0x300] ss:$16 sps:$4 sm:$0xff]   ;;  %v6152_v59 = vld [vmem:[%s9059_s2 + $0x2c8] ss:$16 sps:$4 sm:$0xff]  }
  0x31   :  { %1488 = vmatprep.subr.bf16.mxu1 %v6081_v60  ;;  %v6160_v60 = vld [vmem:[%s9059_s2 + $0x2ec] ss:$16 sps:$4 sm:$0xff]  }
  0x33   :  { %1329 = vmatpush1.bf16.msra.mxu0 %v6084_v62  ;;  %v6169_v62 = vld [vmem:[%s9059_s2 + $0x344] ss:$16 sps:$4 sm:$0xff]  }
  0x34   :  { %1330 = vmatprep.subr.bf16.mxu0 %v6088_v63  ;;  %1489 = vmatpush1.bf16.msra.mxu1 %v6079_v1  ;;  %v6158_v63 = vld [vmem:[%s9059_s2 + $0x2e8] ss:$16 sps:$4 sm:$0xff]   ;;  %v6167_v1 = vld [vmem:[%s9059_s2 + $0x340] ss:$16 sps:$4 sm:$0xff]  }
  0x35   :  { %1490 = vmatprep.subr.bf16.mxu1 %v6087_v2  ;;  %v6175_v2 = vld [vmem:[%s9059_s2 + $0x364] ss:$16 sps:$4 sm:$0xff]  }
  0x37   :  { %1331 = vmatpush1.bf16.msra.mxu0 %v6090_v4  ;;  %v6164_v4 = vld [vmem:[%s9059_s2 + $0x308] ss:$16 sps:$4 sm:$0xff]  }
  0x38   :  { %1332 = vmatprep.subr.bf16.mxu0 %v6094_v5  ;;  %1491 = vmatpush1.bf16.msra.mxu1 %v6085_v8  ;;  %v6172_v5 = vld [vmem:[%s9059_s2 + $0x32c] ss:$16 sps:$4 sm:$0xff]   ;;  %v6181_v8 = vld [vmem:[%s9059_s2 + $0x384] ss:$16 sps:$4 sm:$0xff]  }
  0x39   :  { %1492 = vmatprep.subr.bf16.mxu1 %v6093_v9  ;;  %v6170_v9 = vld [vmem:[%s9059_s2 + $0x328] ss:$16 sps:$4 sm:$0xff]  }
  0x3b   :  { %1333 = vmatpush1.bf16.msra.mxu0 %v6096_v10  ;;  %v6178_v10 = vld [vmem:[%s9059_s2 + $0x34c] ss:$16 sps:$4 sm:$0xff]  }
  0x3c   :  { %1334 = vmatprep.subr.bf16.mxu0 %v6100_v11  ;;  %1493 = vmatpush1.bf16.msra.mxu1 %v6091_v13  ;;  %v6179_v11 = vld [vmem:[%s9059_s2 + $0x380] ss:$16 sps:$4 sm:$0xff]   ;;  %v6187_v13 = vld [vmem:[%s9059_s2 + $0x3a4] ss:$16 sps:$4 sm:$0xff]  }
  0x3d   :  { %1494 = vmatprep.subr.bf16.mxu1 %v6099_v16  ;;  %v6176_v16 = vld [vmem:[%s9059_s2 + $0x348] ss:$16 sps:$4 sm:$0xff]  }
  0x3f   :  { %1335 = vmatpush1.bf16.msra.mxu0 %v6102_v17  ;;  %v6184_v17 = vld [vmem:[%s9059_s2 + $0x36c] ss:$16 sps:$4 sm:$0xff]  }
  0x40   :  { %1345 = vmatprep.subr.bf16.mxu0 %v6109_v18  ;;  %1495 = vmatpush1.bf16.msra.mxu1 %v6097_v20  ;;  %v6185_v18 = vld [vmem:[%s9059_s2 + $0x3a0] ss:$16 sps:$4 sm:$0xff]   ;;  %v6182_v20 = vld [vmem:[%s9059_s2 + $0x368] ss:$16 sps:$4 sm:$0xff]  }
  0x41   :  { %1496 = vmatprep.subr.bf16.mxu1 %v6105_v21  ;;  %v6190_v21 = vld [vmem:[%s9059_s2 + $0x38c] ss:$16 sps:$4 sm:$0xff]  }
  0x42   :  { %1337 = vmatmul.mubr.bf16.vlgmr.msra.gmra.mrb[0].mxu0 %v95_v23 }
  0x43   :  { %1346 = vmatpush1.bf16.msra.mxu0 %v6107_v24  ;;  %1377 = vmatprep.mubr.bf16.mxu0 %v98_v26  ;;  %v6199_v24 = vld [vmem:[%s9059_s2 + $0x3e4] ss:$16 sps:$4 sm:$0xff]  }
  0x44   :  { %1347 = vmatprep.subr.bf16.mxu0 %v6115_v25  ;;  %1497 = vmatpush1.bf16.msra.mxu1 %v6103_v27  ;;  %v7414_v25 = vrot.slane %v7049_v14, %v7052_v15  ;;  %v6196_v27 = vld [vmem:[%s9059_s2 + $0x3ac] ss:$16 sps:$4 sm:$0xff]   ;;  %v6205_v14 = vld [vmem:[%s9059_s2 + $0x404] ss:$16 sps:$4 sm:$0xff]  }
  0x45   :  { %1498 = vmatprep.subr.bf16.mxu1 %v6112_v28  ;;  %v6197_v28 = vld [vmem:[%s9059_s2 + $0x3e0] ss:$16 sps:$4 sm:$0xff]  }
  0x47   :  { %1348 = vmatpush1.bf16.msra.mxu0 %v6113_v29  ;;  %v87_v29 = vcombine.high %v7414_v25, %v7414_v25 }
  0x48   :  { %1349 = vmatprep.subr.bf16.mxu0 %v6121_v30  ;;  %1499 = vmatpush1.bf16.msra.mxu1 %v6110_v31  ;;  %v6194_v30 = vld [vmem:[%s9059_s2 + $0x3a8] ss:$16 sps:$4 sm:$0xff]   ;;  %v6202_v31 = vld [vmem:[%s9059_s2 + $0x3cc] ss:$16 sps:$4 sm:$0xff]  }
  0x49   :  { %1509 = vmatprep.subr.bf16.mxu1 %v6118_v32  ;;  %v97_v32 = vpack.c.bf16 %v7216_v12, %v7216_v12  ;;  %v6208_v12 = vld [vmem:[%s9059_s2 + $0x3ec] ss:$16 sps:$4 sm:$0xff]  }
  0x4b   :  { %1350 = vmatpush1.bf16.msra.mxu0 %v6119_v33  ;;  %1501 = vmatmul.mubr.bf16.vlgmr.msra.gmra.mrb[4].mxu1 %v95_v23  ;;  %v6191_v23 = vld [vmem:[%s9059_s2 + $0x3c0] ss:$16 sps:$4 sm:$0xff]  }
  0x4c   :  { %1351 = vmatprep.subr.bf16.mxu0 %v6127_v34  ;;  %1510 = vmatpush1.bf16.msra.mxu1 %v6116_v35  ;;  %v6203_v33 = vld [vmem:[%s9059_s2 + $0x400] ss:$16 sps:$4 sm:$0xff]   ;;  %v6211_v34 = vld [vmem:[%s9059_s2 + $0x424] ss:$16 sps:$4 sm:$0xff]   ;;  %v100_v35 = vpack.c.bf16 %v87_v29, %v87_v29  ;;  %v6278_v29 = vld [vmem:[%s9059_s2 + $0x568] ss:$16 sps:$4 sm:$0xff]  }
  0x4d   :  { %1541 = vmatprep.mubr.bf16.mxu1 %v98_v26  ;;  %1511 = vmatprep.subr.bf16.mxu1 %v6124_v36  ;;  %v6188_v26 = vld [vmem:[%s9059_s2 + $0x388] ss:$16 sps:$4 sm:$0xff]  }
  0x4e   :  { %v6200_v36 = vld [vmem:[%s9059_s2 + $0x3c8] ss:$16 sps:$4 sm:$0xff]  }
  0x4f   :  { %1352 = vmatpush1.bf16.msra.mxu0 %v6125_v37  ;;  %v6209_v37 = vld [vmem:[%s9059_s2 + $0x420] ss:$16 sps:$4 sm:$0xff]  }
  0x50   :  { %1353 = vmatprep.subr.bf16.mxu0 %v6133_v38  ;;  %1512 = vmatpush1.bf16.msra.mxu1 %v6122_v39  ;;  %v6217_v38 = vld [vmem:[%s9059_s2 + $0x444] ss:$16 sps:$4 sm:$0xff]   ;;  %v6206_v39 = vld [vmem:[%s9059_s2 + $0x3e8] ss:$16 sps:$4 sm:$0xff]  }
  0x51   :  { %1513 = vmatprep.subr.bf16.mxu1 %v6130_v40  ;;  %v6214_v40 = vld [vmem:[%s9059_s2 + $0x40c] ss:$16 sps:$4 sm:$0xff]  }
  0x53   :  { %1354 = vmatpush1.bf16.msra.mxu0 %v6131_v41  ;;  %v6215_v41 = vld [vmem:[%s9059_s2 + $0x440] ss:$16 sps:$4 sm:$0xff]  }
  0x54   :  { %1355 = vmatprep.subr.bf16.mxu0 %v6139_v42  ;;  %1514 = vmatpush1.bf16.msra.mxu1 %v6128_v43  ;;  %v6223_v42 = vld [vmem:[%s9059_s2 + $0x464] ss:$16 sps:$4 sm:$0xff]   ;;  %v6212_v43 = vld [vmem:[%s9059_s2 + $0x408] ss:$16 sps:$4 sm:$0xff]  }
  0x55   :  { %1515 = vmatprep.subr.bf16.mxu1 %v6136_v44  ;;  %v6220_v44 = vld [vmem:[%s9059_s2 + $0x42c] ss:$16 sps:$4 sm:$0xff]  }
  0x57   :  { %1356 = vmatpush1.bf16.msra.mxu0 %v6137_v45  ;;  %v6221_v45 = vld [vmem:[%s9059_s2 + $0x460] ss:$16 sps:$4 sm:$0xff]  }
  0x58   :  { %1357 = vmatprep.subr.bf16.mxu0 %v6145_v46  ;;  %1516 = vmatpush1.bf16.msra.mxu1 %v6134_v47  ;;  %v6229_v46 = vld [vmem:[%s9059_s2 + $0x484] ss:$16 sps:$4 sm:$0xff]   ;;  %v6218_v47 = vld [vmem:[%s9059_s2 + $0x428] ss:$16 sps:$4 sm:$0xff]  }
  0x59   :  { %1517 = vmatprep.subr.bf16.mxu1 %v6142_v48  ;;  %v6226_v48 = vld [vmem:[%s9059_s2 + $0x44c] ss:$16 sps:$4 sm:$0xff]  }
  0x5b   :  { %1358 = vmatpush1.bf16.msra.mxu0 %v6143_v49  ;;  %v6227_v49 = vld [vmem:[%s9059_s2 + $0x480] ss:$16 sps:$4 sm:$0xff]  }
  0x5c   :  { %1359 = vmatprep.subr.bf16.mxu0 %v6151_v50  ;;  %1518 = vmatpush1.bf16.msra.mxu1 %v6140_v51  ;;  %v6235_v50 = vld [vmem:[%s9059_s2 + $0x4a4] ss:$16 sps:$4 sm:$0xff]   ;;  %v6224_v51 = vld [vmem:[%s9059_s2 + $0x448] ss:$16 sps:$4 sm:$0xff]  }
  0x5d   :  { %1519 = vmatprep.subr.bf16.mxu1 %v6148_v52  ;;  %v6232_v52 = vld [vmem:[%s9059_s2 + $0x46c] ss:$16 sps:$4 sm:$0xff]  }
  0x5f   :  { %1360 = vmatpush1.bf16.msra.mxu0 %v6149_v53  ;;  %v6233_v53 = vld [vmem:[%s9059_s2 + $0x4a0] ss:$16 sps:$4 sm:$0xff]  }
  0x60   :  { %1361 = vmatprep.subr.bf16.mxu0 %v6157_v54  ;;  %1520 = vmatpush1.bf16.msra.mxu1 %v6146_v55  ;;  %v6241_v54 = vld [vmem:[%s9059_s2 + $0x4c4] ss:$16 sps:$4 sm:$0xff]   ;;  %v6230_v55 = vld [vmem:[%s9059_s2 + $0x468] ss:$16 sps:$4 sm:$0xff]  }
  0x61   :  { %1521 = vmatprep.subr.bf16.mxu1 %v6154_v56  ;;  %v6238_v56 = vld [vmem:[%s9059_s2 + $0x48c] ss:$16 sps:$4 sm:$0xff]  }
  0x63   :  { %1362 = vmatpush1.bf16.msra.mxu0 %v6155_v57  ;;  %v6239_v57 = vld [vmem:[%s9059_s2 + $0x4c0] ss:$16 sps:$4 sm:$0xff]  }
  0x64   :  { %1363 = vmatprep.subr.bf16.mxu0 %v6163_v58  ;;  %1522 = vmatpush1.bf16.msra.mxu1 %v6152_v59  ;;  %v6247_v58 = vld [vmem:[%s9059_s2 + $0x4e4] ss:$16 sps:$4 sm:$0xff]   ;;  %v6236_v59 = vld [vmem:[%s9059_s2 + $0x488] ss:$16 sps:$4 sm:$0xff]  }
  0x65   :  { %1523 = vmatprep.subr.bf16.mxu1 %v6160_v60  ;;  %v6244_v60 = vld [vmem:[%s9059_s2 + $0x4ac] ss:$16 sps:$4 sm:$0xff]  }
  0x67   :  { %1364 = vmatpush1.bf16.msra.mxu0 %v6161_v61  ;;  %v6245_v61 = vld [vmem:[%s9059_s2 + $0x4e0] ss:$16 sps:$4 sm:$0xff]  }
  0x68   :  { %1365 = vmatprep.subr.bf16.mxu0 %v6169_v62  ;;  %1524 = vmatpush1.bf16.msra.mxu1 %v6158_v63  ;;  %v6253_v62 = vld [vmem:[%s9059_s2 + $0x504] ss:$16 sps:$4 sm:$0xff]   ;;  %v6242_v63 = vld [vmem:[%s9059_s2 + $0x4a8] ss:$16 sps:$4 sm:$0xff]  }
  0x69   :  { %1525 = vmatprep.subr.bf16.mxu1 %v6166_v0  ;;  %v6250_v0 = vld [vmem:[%s9059_s2 + $0x4cc] ss:$16 sps:$4 sm:$0xff]  }
  0x6b   :  { %1366 = vmatpush1.bf16.msra.mxu0 %v6167_v1  ;;  %v6251_v1 = vld [vmem:[%s9059_s2 + $0x500] ss:$16 sps:$4 sm:$0xff]  }
  0x6c   :  { %1367 = vmatprep.subr.bf16.mxu0 %v6175_v2  ;;  %1526 = vmatpush1.bf16.msra.mxu1 %v6164_v4  ;;  %v6259_v2 = vld [vmem:[%s9059_s2 + $0x524] ss:$16 sps:$4 sm:$0xff]   ;;  %v6248_v4 = vld [vmem:[%s9059_s2 + $0x4c8] ss:$16 sps:$4 sm:$0xff]  }
  0x6d   :  { %1527 = vmatprep.subr.bf16.mxu1 %v6172_v5  ;;  %v6256_v5 = vld [vmem:[%s9059_s2 + $0x4ec] ss:$16 sps:$4 sm:$0xff]  }
  0x6f   :  { %1368 = vmatpush1.bf16.msra.mxu0 %v6173_v6  ;;  %v6257_v6 = vld [vmem:[%s9059_s2 + $0x520] ss:$16 sps:$4 sm:$0xff]  }
  0x70   :  { %1369 = vmatprep.subr.bf16.mxu0 %v6181_v8  ;;  %1528 = vmatpush1.bf16.msra.mxu1 %v6170_v9  ;;  %v6265_v8 = vld [vmem:[%s9059_s2 + $0x544] ss:$16 sps:$4 sm:$0xff]   ;;  %v6254_v9 = vld [vmem:[%s9059_s2 + $0x4e8] ss:$16 sps:$4 sm:$0xff]  }
  0x71   :  { %1529 = vmatprep.subr.bf16.mxu1 %v6178_v10  ;;  %v6262_v10 = vld [vmem:[%s9059_s2 + $0x50c] ss:$16 sps:$4 sm:$0xff]  }
  0x73   :  { %1370 = vmatpush1.bf16.msra.mxu0 %v6179_v11  ;;  %v6263_v11 = vld [vmem:[%s9059_s2 + $0x540] ss:$16 sps:$4 sm:$0xff]  }
  0x74   :  { %1371 = vmatprep.subr.bf16.mxu0 %v6187_v13  ;;  %1530 = vmatpush1.bf16.msra.mxu1 %v6176_v16  ;;  %v6260_v13 = vld [vmem:[%s9059_s2 + $0x508] ss:$16 sps:$4 sm:$0xff]   ;;  %v6271_v16 = vld [vmem:[%s9059_s2 + $0x564] ss:$16 sps:$4 sm:$0xff]  }
  0x75   :  { %1531 = vmatprep.subr.bf16.mxu1 %v6184_v17  ;;  %v6268_v17 = vld [vmem:[%s9059_s2 + $0x52c] ss:$16 sps:$4 sm:$0xff]  }
  0x77   :  { %1372 = vmatpush1.bf16.msra.mxu0 %v6185_v18  ;;  %v6269_v18 = vld [vmem:[%s9059_s2 + $0x560] ss:$16 sps:$4 sm:$0xff]  }
  0x78   :  { %1373 = vmatprep.subr.bf16.mxu0 %v6193_v19  ;;  %1532 = vmatpush1.bf16.msra.mxu1 %v6182_v20  ;;  %v6277_v19 = vld [vmem:[%s9059_s2 + $0x584] ss:$16 sps:$4 sm:$0xff]   ;;  %v6266_v20 = vld [vmem:[%s9059_s2 + $0x528] ss:$16 sps:$4 sm:$0xff]  }
  0x79   :  { %1533 = vmatprep.subr.bf16.mxu1 %v6190_v21  ;;  %v6274_v21 = vld [vmem:[%s9059_s2 + $0x54c] ss:$16 sps:$4 sm:$0xff]  }
  0x7b   :  { %1374 = vmatpush1.bf16.msra.mxu0 %v6191_v23  ;;  %v6275_v23 = vld [vmem:[%s9059_s2 + $0x580] ss:$16 sps:$4 sm:$0xff]  }
  0x7c   :  { %1375 = vmatprep.subr.bf16.mxu0 %v6199_v24  ;;  %1534 = vmatpush1.bf16.msra.mxu1 %v6188_v26  ;;  %v6283_v24 = vld [vmem:[%s9059_s2 + $0x5a4] ss:$16 sps:$4 sm:$0xff]   ;;  %v6272_v26 = vld [vmem:[%s9059_s2 + $0x548] ss:$16 sps:$4 sm:$0xff]  }
  0x7d   :  { %1535 = vmatprep.subr.bf16.mxu1 %v6196_v27  ;;  %v6280_v27 = vld [vmem:[%s9059_s2 + $0x56c] ss:$16 sps:$4 sm:$0xff]  }
  0x7f   :  { %1376 = vmatpush1.bf16.msra.mxu0 %v6197_v28  ;;  %v6281_v28 = vld [vmem:[%s9059_s2 + $0x5a0] ss:$16 sps:$4 sm:$0xff]  }
  0x80   :  { %1386 = vmatprep.subr.bf16.mxu0 %v6205_v14  ;;  %1536 = vmatpush1.bf16.msra.mxu1 %v6194_v30  ;;  %v6289_v14 = vld [vmem:[%s9059_s2 + $0x5c4] ss:$16 sps:$4 sm:$0xff]   ;;  %v6286_v30 = vld [vmem:[%s9059_s2 + $0x58c] ss:$16 sps:$4 sm:$0xff]  }
  0x81   :  { %1537 = vmatprep.subr.bf16.mxu1 %v6202_v31  ;;  %v6287_v31 = vld [vmem:[%s9059_s2 + $0x5c0] ss:$16 sps:$4 sm:$0xff]  }
  0x82   :  { %1378 = vmatmul.mubr.bf16.vlgmr.msra.gmra.mrb[0].mxu0 %v97_v32 }
  0x83   :  { %1387 = vmatpush1.bf16.msra.mxu0 %v6203_v33  ;;  %1418 = vmatprep.mubr.bf16.mxu0 %v100_v35  ;;  %v6284_v33 = vld [vmem:[%s9059_s2 + $0x588] ss:$16 sps:$4 sm:$0xff]  }
  0x84   :  { %1388 = vmatprep.subr.bf16.mxu0 %v6211_v34  ;;  %1538 = vmatpush1.bf16.msra.mxu1 %v6200_v36  ;;  %v6292_v34 = vld [vmem:[%s9059_s2 + $0x5ac] ss:$16 sps:$4 sm:$0xff]   ;;  %v6307_v36 = vld [vmem:[%s9061_s4 + $0x4] ss:$16 sps:$4 sm:$0xff]  }
  0x85   :  { %1539 = vmatprep.subr.bf16.mxu1 %v6208_v12  ;;  %v6290_v12 = vld [vmem:[%s9059_s2 + $0x5a8] ss:$16 sps:$4 sm:$0xff]  }
  0x87   :  { %1389 = vmatpush1.bf16.msra.mxu0 %v6209_v37  ;;  %v6298_v37 = vld [vmem:[%s9059_s2 + $0x5cc] ss:$16 sps:$4 sm:$0xff]  }
  0x88   :  { %1390 = vmatprep.subr.bf16.mxu0 %v6217_v38  ;;  %1540 = vmatpush1.bf16.msra.mxu1 %v6206_v39  ;;  %v6305_v38 = vld [vmem:[%s9061_s4] ss:$16 sps:$4 sm:$0xff]   ;;  %v99_v39 = vpack.c.bf16 %v7414_v25, %v7414_v25  ;;  %v6319_v25 = vld [vmem:[%s9061_s4 + $0x44] ss:$16 sps:$4 sm:$0xff]  }
  0x89   :  { %1550 = vmatprep.subr.bf16.mxu1 %v6214_v40  ;;  %v6313_v40 = vld [vmem:[%s9061_s4 + $0x24] ss:$16 sps:$4 sm:$0xff]  }
  0x8b   :  { %1391 = vmatpush1.bf16.msra.mxu0 %v6215_v41  ;;  %1542 = vmatmul.mubr.bf16.vlgmr.msra.gmra.mrb[4].mxu1 %v97_v32  ;;  %v6295_v32 = vld [vmem:[%s9059_s2 + $0x5e4] ss:$16 sps:$4 sm:$0xff]   ;;  %v6296_v41 = vld [vmem:[%s9059_s2 + $0x5c8] ss:$16 sps:$4 sm:$0xff]  }
  0x8c   :  { %1392 = vmatprep.subr.bf16.mxu0 %v6223_v42  ;;  %1551 = vmatpush1.bf16.msra.mxu1 %v6212_v43  ;;  %v6301_v42 = vld [vmem:[%s9059_s2 + $0x5ec] ss:$16 sps:$4 sm:$0xff]   ;;  %v6311_v43 = vld [vmem:[%s9061_s4 + $0x20] ss:$16 sps:$4 sm:$0xff]  }
  0x8d   :  { %1582 = vmatprep.mubr.bf16.mxu1 %v100_v35  ;;  %1552 = vmatprep.subr.bf16.mxu1 %v6220_v44  ;;  %v6293_v35 = vld [vmem:[%s9059_s2 + $0x5e0] ss:$16 sps:$4 sm:$0xff]   ;;  %v6299_v44 = vld [vmem:[%s9059_s2 + $0x5e8] ss:$16 sps:$4 sm:$0xff]  }
  0x8f   :  { %1393 = vmatpush1.bf16.msra.mxu0 %v6221_v45  ;;  %v6304_v45 = vld [vmem:[%s9059_s2 + $0x60c] ss:$16 sps:$4 sm:$0xff]  }
  0x90   :  { %1394 = vmatprep.subr.bf16.mxu0 %v6229_v46  ;;  %1553 = vmatpush1.bf16.msra.mxu1 %v6218_v47  ;;  %v6317_v46 = vld [vmem:[%s9061_s4 + $0x40] ss:$16 sps:$4 sm:$0xff]   ;;  %v6325_v47 = vld [vmem:[%s9061_s4 + $0x64] ss:$16 sps:$4 sm:$0xff]  }
  0x91   :  { %1554 = vmatprep.subr.bf16.mxu1 %v6226_v48  ;;  %v6302_v48 = vld [vmem:[%s9059_s2 + $0x608] ss:$16 sps:$4 sm:$0xff]  }
  0x93   :  { %1395 = vmatpush1.bf16.msra.mxu0 %v6227_v49  ;;  %v6310_v49 = vld [vmem:[%s9061_s4 + $0xc] ss:$16 sps:$4 sm:$0xff]  }
  0x94   :  { %1396 = vmatprep.subr.bf16.mxu0 %v6235_v50  ;;  %1555 = vmatpush1.bf16.msra.mxu1 %v6224_v51  ;;  %v6323_v50 = vld [vmem:[%s9061_s4 + $0x60] ss:$16 sps:$4 sm:$0xff]   ;;  %v6331_v51 = vld [vmem:[%s9061_s4 + $0x84] ss:$16 sps:$4 sm:$0xff]  }
  0x95   :  { %1556 = vmatprep.subr.bf16.mxu1 %v6232_v52  ;;  %v6329_v52 = vld [vmem:[%s9061_s4 + $0x80] ss:$16 sps:$4 sm:$0xff]  }
  0x97   :  { %1397 = vmatpush1.bf16.msra.mxu0 %v6233_v53  ;;  %v6337_v53 = vld [vmem:[%s9061_s4 + $0xa4] ss:$16 sps:$4 sm:$0xff]  }
  0x98   :  { %1398 = vmatprep.subr.bf16.mxu0 %v6241_v54  ;;  %1557 = vmatpush1.bf16.msra.mxu1 %v6230_v55  ;;  %v6335_v54 = vld [vmem:[%s9061_s4 + $0xa0] ss:$16 sps:$4 sm:$0xff]   ;;  %v6343_v55 = vld [vmem:[%s9061_s4 + $0xc4] ss:$16 sps:$4 sm:$0xff]  }
  0x99   :  { %1558 = vmatprep.subr.bf16.mxu1 %v6238_v56  ;;  %v6308_v56 = vld [vmem:[%s9061_s4 + $0x8] ss:$16 sps:$4 sm:$0xff]  }
  0x9b   :  { %1399 = vmatpush1.bf16.msra.mxu0 %v6239_v57  ;;  %v6316_v57 = vld [vmem:[%s9061_s4 + $0x2c] ss:$16 sps:$4 sm:$0xff]  }
  0x9c   :  { %1400 = vmatprep.subr.bf16.mxu0 %v6247_v58  ;;  %1559 = vmatpush1.bf16.msra.mxu1 %v6236_v59  ;;  %v6341_v58 = vld [vmem:[%s9061_s4 + $0xc0] ss:$16 sps:$4 sm:$0xff]   ;;  %v6349_v59 = vld [vmem:[%s9061_s4 + $0xe4] ss:$16 sps:$4 sm:$0xff]  }
  0x9d   :  { %1560 = vmatprep.subr.bf16.mxu1 %v6244_v60  ;;  %v6314_v60 = vld [vmem:[%s9061_s4 + $0x28] ss:$16 sps:$4 sm:$0xff]  }
  0x9f   :  { %1401 = vmatpush1.bf16.msra.mxu0 %v6245_v61  ;;  %v6322_v61 = vld [vmem:[%s9061_s4 + $0x4c] ss:$16 sps:$4 sm:$0xff]  }
  0xa0   :  { %1402 = vmatprep.subr.bf16.mxu0 %v6253_v62  ;;  %1561 = vmatpush1.bf16.msra.mxu1 %v6242_v63  ;;  %v6347_v62 = vld [vmem:[%s9061_s4 + $0xe0] ss:$16 sps:$4 sm:$0xff]   ;;  %v6355_v63 = vld [vmem:[%s9061_s4 + $0x104] ss:$16 sps:$4 sm:$0xff]  }
  0xa1   :  { %1562 = vmatprep.subr.bf16.mxu1 %v6250_v0  ;;  %v6320_v0 = vld [vmem:[%s9061_s4 + $0x48] ss:$16 sps:$4 sm:$0xff]  }
  0xa3   :  { %1403 = vmatpush1.bf16.msra.mxu0 %v6251_v1  ;;  %v6353_v1 = vld [vmem:[%s9061_s4 + $0x100] ss:$16 sps:$4 sm:$0xff]  }
  0xa4   :  { %1404 = vmatprep.subr.bf16.mxu0 %v6259_v2  ;;  %1563 = vmatpush1.bf16.msra.mxu1 %v6248_v4  ;;  %v6361_v2 = vld [vmem:[%s9061_s4 + $0x124] ss:$16 sps:$4 sm:$0xff]  }
  0xa5   :  { %1564 = vmatprep.subr.bf16.mxu1 %v6256_v5  ;;  %v6326_v5 = vld [vmem:[%s9061_s4 + $0x68] ss:$16 sps:$4 sm:$0xff]  }
  0xa7   :  { %1405 = vmatpush1.bf16.msra.mxu0 %v6257_v6 }
  0xa8   :  { %1406 = vmatprep.subr.bf16.mxu0 %v6265_v8  ;;  %1565 = vmatpush1.bf16.msra.mxu1 %v6254_v9  ;;  %v6334_v8 = vld [vmem:[%s9061_s4 + $0x8c] ss:$16 sps:$4 sm:$0xff]   ;;  %v6359_v9 = vld [vmem:[%s9061_s4 + $0x120] ss:$16 sps:$4 sm:$0xff]  }
  0xa9   :  { %1566 = vmatprep.subr.bf16.mxu1 %v6262_v10 }
  0xab   :  { %1407 = vmatpush1.bf16.msra.mxu0 %v6263_v11  ;;  %v6367_v11 = vld [vmem:[%s9061_s4 + $0x144] ss:$16 sps:$4 sm:$0xff]  }
  0xac   :  { %1408 = vmatprep.subr.bf16.mxu0 %v6271_v16  ;;  %1567 = vmatpush1.bf16.msra.mxu1 %v6260_v13  ;;  %v6332_v16 = vld [vmem:[%s9061_s4 + $0x88] ss:$16 sps:$4 sm:$0xff]  }
  0xad   :  { %1568 = vmatprep.subr.bf16.mxu1 %v6268_v17  ;;  %v6340_v17 = vld [vmem:[%s9061_s4 + $0xac] ss:$16 sps:$4 sm:$0xff]  }
  0xaf   :  { %1409 = vmatpush1.bf16.msra.mxu0 %v6269_v18  ;;  %v6365_v18 = vld [vmem:[%s9061_s4 + $0x140] ss:$16 sps:$4 sm:$0xff]  }
  0xb0   :  { %1410 = vmatprep.subr.bf16.mxu0 %v6277_v19  ;;  %1569 = vmatpush1.bf16.msra.mxu1 %v6266_v20  ;;  %v6373_v19 = vld [vmem:[%s9061_s4 + $0x164] ss:$16 sps:$4 sm:$0xff]   ;;  %v6338_v20 = vld [vmem:[%s9061_s4 + $0xa8] ss:$16 sps:$4 sm:$0xff]  }
  0xb1   :  { %1570 = vmatprep.subr.bf16.mxu1 %v6274_v21  ;;  %v6346_v21 = vld [vmem:[%s9061_s4 + $0xcc] ss:$16 sps:$4 sm:$0xff]  }
  0xb3   :  { %1411 = vmatpush1.bf16.msra.mxu0 %v6275_v23  ;;  %v6371_v23 = vld [vmem:[%s9061_s4 + $0x160] ss:$16 sps:$4 sm:$0xff]  }
  0xb4   :  { %1412 = vmatprep.subr.bf16.mxu0 %v6283_v24  ;;  %1571 = vmatpush1.bf16.msra.mxu1 %v6272_v26  ;;  %v6379_v24 = vld [vmem:[%s9061_s4 + $0x184] ss:$16 sps:$4 sm:$0xff]   ;;  %v6344_v26 = vld [vmem:[%s9061_s4 + $0xc8] ss:$16 sps:$4 sm:$0xff]  }
  0xb5   :  { %1572 = vmatprep.subr.bf16.mxu1 %v6280_v27  ;;  %v6352_v27 = vld [vmem:[%s9061_s4 + $0xec] ss:$16 sps:$4 sm:$0xff]  }
  0xb7   :  { %1413 = vmatpush1.bf16.msra.mxu0 %v6281_v28  ;;  %v6377_v28 = vld [vmem:[%s9061_s4 + $0x180] ss:$16 sps:$4 sm:$0xff]  }
  0xb8   :  { %1414 = vmatprep.subr.bf16.mxu0 %v6289_v14  ;;  %1573 = vmatpush1.bf16.msra.mxu1 %v6278_v29  ;;  %v6385_v14 = vld [vmem:[%s9061_s4 + $0x1a4] ss:$16 sps:$4 sm:$0xff]   ;;  %v6350_v29 = vld [vmem:[%s9061_s4 + $0xe8] ss:$16 sps:$4 sm:$0xff]  }
  0xb9   :  { %1574 = vmatprep.subr.bf16.mxu1 %v6286_v30  ;;  %v6358_v30 = vld [vmem:[%s9061_s4 + $0x10c] ss:$16 sps:$4 sm:$0xff]  }
  0xbb   :  { %1415 = vmatpush1.bf16.msra.mxu0 %v6287_v31  ;;  %v6383_v31 = vld [vmem:[%s9061_s4 + $0x1a0] ss:$16 sps:$4 sm:$0xff]  }
  0xbc   :  { %1416 = vmatprep.subr.bf16.mxu0 %v6295_v32  ;;  %1575 = vmatpush1.bf16.msra.mxu1 %v6284_v33  ;;  %v6356_v32 = vld [vmem:[%s9061_s4 + $0x108] ss:$16 sps:$4 sm:$0xff]   ;;  %v6364_v33 = vld [vmem:[%s9061_s4 + $0x12c] ss:$16 sps:$4 sm:$0xff]  }
  0xbd   :  { %1576 = vmatprep.subr.bf16.mxu1 %v6292_v34  ;;  %v6362_v34 = vld [vmem:[%s9061_s4 + $0x128] ss:$16 sps:$4 sm:$0xff]  }
  0xbf   :  { %1417 = vmatpush1.bf16.msra.mxu0 %v6293_v35  ;;  %v6370_v35 = vld [vmem:[%s9061_s4 + $0x14c] ss:$16 sps:$4 sm:$0xff]  }
  0xc0   :  { %2273 = vmatprep.subr.bf16.mxu0 %v6307_v36  ;;  %1577 = vmatpush1.bf16.msra.mxu1 %v6290_v12  ;;  %v6368_v36 = vld [vmem:[%s9061_s4 + $0x148] ss:$16 sps:$4 sm:$0xff]   ;;  %v6376_v12 = vld [vmem:[%s9061_s4 + $0x16c] ss:$16 sps:$4 sm:$0xff]  }
  0xc1   :  { %1578 = vmatprep.subr.bf16.mxu1 %v6298_v37  ;;  %v6374_v37 = vld [vmem:[%s9061_s4 + $0x168] ss:$16 sps:$4 sm:$0xff]  }
  0xc2   :  { %1419 = vmatmul.mubr.bf16.vlgmr.msra.gmra.mrb[0].mxu0 %v99_v39 }
  0xc3   :  { %2274 = vmatpush1.bf16.msra.mxu0 %v6305_v38  ;;  %v6382_v38 = vld [vmem:[%s9061_s4 + $0x18c] ss:$16 sps:$4 sm:$0xff]  }
  0xc4   :  { %2275 = vmatprep.subr.bf16.mxu0 %v6313_v40  ;;  %1579 = vmatpush1.bf16.msra.mxu1 %v6296_v41  ;;  %v6388_v40 = vld [vmem:[%s9061_s4 + $0x1ac] ss:$16 sps:$4 sm:$0xff]   ;;  %v6386_v41 = vld [vmem:[%s9061_s4 + $0x1a8] ss:$16 sps:$4 sm:$0xff]  }
  0xc5   :  { %1580 = vmatprep.subr.bf16.mxu1 %v6301_v42  ;;  %v6391_v42 = vld [vmem:[%s9061_s4 + $0x1c4] ss:$16 sps:$4 sm:$0xff]  }
  0xc7   :  { %2276 = vmatpush1.bf16.msra.mxu0 %v6311_v43  ;;  %v6394_v43 = vld [vmem:[%s9061_s4 + $0x1cc] ss:$16 sps:$4 sm:$0xff]  }
  0xc8   :  { %2277 = vmatprep.subr.bf16.mxu0 %v6319_v25  ;;  %1581 = vmatpush1.bf16.msra.mxu1 %v6299_v44  ;;  %v6389_v25 = vld [vmem:[%s9061_s4 + $0x1c0] ss:$16 sps:$4 sm:$0xff]   ;;  %v6392_v44 = vld [vmem:[%s9061_s4 + $0x1c8] ss:$16 sps:$4 sm:$0xff]  }
  0xc9   :  { %1591 = vmatprep.subr.bf16.mxu1 %v6304_v45  ;;  %v6395_v45 = vld [vmem:[%s9061_s4 + $0x1e0] ss:$16 sps:$4 sm:$0xff]  }
  0xcb   :  { %2278 = vmatpush1.bf16.msra.mxu0 %v6317_v46  ;;  %1583 = vmatmul.mubr.bf16.vlgmr.msra.gmra.mrb[4].mxu1 %v99_v39  ;;  %v6380_v39 = vld [vmem:[%s9061_s4 + $0x188] ss:$16 sps:$4 sm:$0xff]   ;;  %v6397_v46 = vld [vmem:[%s9061_s4 + $0x1e4] ss:$16 sps:$4 sm:$0xff]  }
  0xcc   :  { %2279 = vmatprep.subr.bf16.mxu0 %v6325_v47  ;;  %1592 = vmatpush1.bf16.msra.mxu1 %v6302_v48  ;;  %v6398_v47 = vld [vmem:[%s9061_s4 + $0x1e8] ss:$16 sps:$4 sm:$0xff]   ;;  %v6400_v48 = vld [vmem:[%s9061_s4 + $0x1ec] ss:$16 sps:$4 sm:$0xff]  }
  0xcd   :  { %1623 = vmatprep.mubr.bf16.mxu1 %v6932_v3  ;;  %2355 = vmatprep.subr.bf16.mxu1 %v6310_v49  ;;  %v6403_v49 = vld [vmem:[%s9061_s4 + $0x204] ss:$16 sps:$4 sm:$0xff]  }
  0xcf   :  { %2280 = vmatpush1.bf16.msra.mxu0 %v6323_v50  ;;  %v6406_v50 = vld [vmem:[%s9061_s4 + $0x20c] ss:$16 sps:$4 sm:$0xff]  }
  0xd0   :  { %2281 = vmatprep.subr.bf16.mxu0 %v6331_v51 }
  0xd3   :  { %2282 = vmatpush1.bf16.msra.mxu0 %v6329_v52 }
  0xd4   :  { %2283 = vmatprep.subr.bf16.mxu0 %v6337_v53 }
  0xd7   :  { %2284 = vmatpush1.bf16.msra.mxu0 %v6335_v54  ;;  %5470 = vmatmul.mubr.msk.bf16.vlgmr.msra.gmra.mrb[4].mxu1 %vm1300_vm0, %v7069_v22  ;;  %v6328_v22 = vld [vmem:[%s9061_s4 + $0x6c] ss:$16 sps:$4 sm:$0xff]  }
  0xd8   :  { %2285 = vmatprep.subr.bf16.mxu0 %v6343_v55  ;;  %2356 = vmatpush1.bf16.msra.mxu1 %v6308_v56 }
  0xd9   :  { %2357 = vmatprep.subr.bf16.mxu1 %v6316_v57 }
  0xdb   :  { %2286 = vmatpush1.bf16.msra.mxu0 %v6341_v58 }
  0xdc   :  { %2287 = vmatprep.subr.bf16.mxu0 %v6349_v59  ;;  %2358 = vmatpush1.bf16.msra.mxu1 %v6314_v60 }
  0xdd   :  { %2359 = vmatprep.subr.bf16.mxu1 %v6322_v61 }
  0xde   :  { %v7725_v4 = vpop.f32.mrb[0].mxu1 }
  0xdf   :  { %2288 = vmatpush1.bf16.msra.mxu0 %v6347_v62  ;;  %v7730_v6 = vpop.f32.mrb[1].mxu1 }
  0xe0   :  { %2289 = vmatprep.subr.bf16.mxu0 %v6355_v63  ;;  %v1465_v10 = vpop.f32.mrb[2].mxu1  ;;  %2360 = vmatpush1.bf16.msra.mxu1 %v6320_v0 }
  0xe1   :  { %v1466_v13 = vpop.f32.mrb[3].mxu1  ;;  %2361 = vmatprep.subr.bf16.mxu1 %v6328_v22 }
  0xe3   :  { %2290 = vmatpush1.bf16.msra.mxu0 %v6353_v1 }
  0xe4   :  { %2291 = vmatprep.subr.bf16.mxu0 %v6361_v2  ;;  %2362 = vmatpush1.bf16.msra.mxu1 %v6326_v5 }
  0xe5   :  { %2363 = vmatprep.subr.bf16.mxu1 %v6334_v8 }
  0xe7   :  { %2292 = vmatpush1.bf16.msra.mxu0 %v6359_v9 }
  0xe8   :  { %2293 = vmatprep.subr.bf16.mxu0 %v6367_v11  ;;  %2364 = vmatpush1.bf16.msra.mxu1 %v6332_v16 }
  0xe9   :  { %2365 = vmatprep.subr.bf16.mxu1 %v6340_v17 }
  0xeb   :  { %2294 = vmatpush1.bf16.msra.mxu0 %v6365_v18 }
  0xec   :  { %2295 = vmatprep.subr.bf16.mxu0 %v6373_v19  ;;  %2366 = vmatpush1.bf16.msra.mxu1 %v6338_v20 }
  0xed   :  { %2367 = vmatprep.subr.bf16.mxu1 %v6346_v21 }
  0xef   :  { %2296 = vmatpush1.bf16.msra.mxu0 %v6371_v23 }
  0xf0   :  { %2297 = vmatprep.subr.bf16.mxu0 %v6379_v24  ;;  %2368 = vmatpush1.bf16.msra.mxu1 %v6344_v26 }
  0xf1   :  { %2369 = vmatprep.subr.bf16.mxu1 %v6352_v27 }
  0xf3   :  { %2298 = vmatpush1.bf16.msra.mxu0 %v6377_v28 }
  0xf4   :  { %2299 = vmatprep.subr.bf16.mxu0 %v6385_v14  ;;  %2370 = vmatpush1.bf16.msra.mxu1 %v6350_v29 }
  0xf5   :  { %2371 = vmatprep.subr.bf16.mxu1 %v6358_v30 }
  0xf7   :  { %2300 = vmatpush1.bf16.msra.mxu0 %v6383_v31 }
  0xf8   :  { %2372 = vmatpush1.bf16.msra.mxu1 %v6356_v32  ;;  %2301 = vmatprep.subr.bf16.mxu0 %v6391_v42 }
  0xf9   :  { %2373 = vmatprep.subr.bf16.mxu1 %v6364_v33 }
  0xfb   :  { %2302 = vmatpush1.bf16.msra.mxu0 %v6389_v25 }
  0xfc   :  { %2374 = vmatpush1.bf16.msra.mxu1 %v6362_v34  ;;  %2303 = vmatprep.subr.bf16.mxu0 %v6397_v46 }
  0xfd   :  { %2375 = vmatprep.subr.bf16.mxu1 %v6370_v35 }
  0xff   :  { %2304 = vmatpush1.bf16.msra.mxu0 %v6395_v45 }
 0x100   :  { %2376 = vmatpush1.bf16.msra.mxu1 %v6368_v36  ;;  %2314 = vmatprep.subr.bf16.mxu0 %v6403_v49 }
 0x101   :  { %2377 = vmatprep.subr.bf16.mxu1 %v6376_v12 }
 0x104   :  { %2378 = vmatpush1.bf16.msra.mxu1 %v6374_v37 }
 0x105   :  { %2379 = vmatprep.subr.bf16.mxu1 %v6382_v38 }
 0x108   :  { %2380 = vmatpush1.bf16.msra.mxu1 %v6380_v39 }
 0x109   :  { %2381 = vmatprep.subr.bf16.mxu1 %v6388_v40 }
 0x10c   :  { %2382 = vmatpush1.bf16.msra.mxu1 %v6386_v41 }
 0x10d   :  { %2383 = vmatprep.subr.bf16.mxu1 %v6394_v43 }
 0x110   :  { %2384 = vmatpush1.bf16.msra.mxu1 %v6392_v44 }
 0x111   :  { %2385 = vmatprep.subr.bf16.mxu1 %v6400_v48 }
 0x114   :  { %2386 = vmatpush1.bf16.msra.mxu1 %v6398_v47 }
 0x115   :  { %2396 = vmatprep.subr.bf16.mxu1 %v6406_v50 }
 0x116   :  { %21 = vsyncpa [#allocation3], 0  ;;  %v7850_v51 = vsub.s32 0, %v7029_v7  ;;  %v7855_v52 = vld [vmem:[%s9060_s3] sm:$0xf]  ;;  %v7858_v53 = vsub.s32 1, %v7029_v7 }
 0x117   :  { %v6401_v8 = vld [vmem:[%s9061_s4 + $0x200] ss:$16 sps:$4 sm:$0xff]   ;;  %v6404_v9 = vld [vmem:[%s9061_s4 + $0x208] ss:$16 sps:$4 sm:$0xff]   ;;  %v6415_v16 = vld [vmem:[%s9061_s4 + $0x244] ss:$16 sps:$4 sm:$0xff]  }
 0x118   :  { %v303_v54 = vrot.slane %v7855_v52, %v7850_v51  ;;  %v307_v55 = vrot.slane %v7855_v52, %v7858_v53  ;;  %v6407_v11 = vld [vmem:[%s9061_s4 + $0x220] ss:$16 sps:$4 sm:$0xff]   ;;  %v6410_v13 = vld [vmem:[%s9061_s4 + $0x228] ss:$16 sps:$4 sm:$0xff]   ;;  %v6418_v17 = vld [vmem:[%s9061_s4 + $0x24c] ss:$16 sps:$4 sm:$0xff]  }
 0x119   :  { %v6413_v18 = vld [vmem:[%s9061_s4 + $0x240] ss:$16 sps:$4 sm:$0xff]   ;;  %v6416_v19 = vld [vmem:[%s9061_s4 + $0x248] ss:$16 sps:$4 sm:$0xff]   ;;  %v7897_v20 = vsub.s32 3, %v7029_v7  ;;  %v7932_v37 = vsub.s32 2, %v7029_v7 }
 0x11a   :  { %v6421_v21 = vld [vmem:[%s9061_s4 + $0x264] ss:$16 sps:$4 sm:$0xff]   ;;  %v6424_v23 = vld [vmem:[%s9061_s4 + $0x26c] ss:$16 sps:$4 sm:$0xff]   ;;  %v6419_v26 = vld [vmem:[%s9061_s4 + $0x260] ss:$16 sps:$4 sm:$0xff]  }
 0x11b   :  { %v315_v24 = vrot.slane %v7855_v52, %v7897_v20  ;;  %v6422_v27 = vld [vmem:[%s9061_s4 + $0x268] ss:$16 sps:$4 sm:$0xff]   ;;  %v6427_v28 = vld [vmem:[%s9061_s4 + $0x284] ss:$16 sps:$4 sm:$0xff]   ;;  %v6430_v14 = vld [vmem:[%s9061_s4 + $0x28c] ss:$16 sps:$4 sm:$0xff]   ;;  %v311_v44 = vrot.slane %v7855_v52, %v7932_v37 }
 0x11c   :  { %v6425_v33 = vld [vmem:[%s9061_s4 + $0x280] ss:$16 sps:$4 sm:$0xff]   ;;  %v6428_v34 = vld [vmem:[%s9061_s4 + $0x288] ss:$16 sps:$4 sm:$0xff]   ;;  %v6433_v36 = vld [vmem:[%s9061_s4 + $0x2a4] ss:$16 sps:$4 sm:$0xff]  }
 0x11d   :  { %v6436_v12 = vld [vmem:[%s9061_s4 + $0x2ac] ss:$16 sps:$4 sm:$0xff]   ;;  %v6431_v40 = vld [vmem:[%s9061_s4 + $0x2a0] ss:$16 sps:$4 sm:$0xff]   ;;  %v6434_v41 = vld [vmem:[%s9061_s4 + $0x2a8] ss:$16 sps:$4 sm:$0xff]  }
 0x11e   :  { %v6439_v43 = vld [vmem:[%s9061_s4 + $0x2c4] ss:$16 sps:$4 sm:$0xff]   ;;  %v6442_v25 = vld [vmem:[%s9061_s4 + $0x2cc] ss:$16 sps:$4 sm:$0xff]   ;;  %v6437_v45 = vld [vmem:[%s9061_s4 + $0x2c0] ss:$16 sps:$4 sm:$0xff]  }
 0x11f   :  { %v6440_v46 = vld [vmem:[%s9061_s4 + $0x2c8] ss:$16 sps:$4 sm:$0xff]   ;;  %v6445_v47 = vld [vmem:[%s9061_s4 + $0x2e4] ss:$16 sps:$4 sm:$0xff]   ;;  %v6448_v48 = vld [vmem:[%s9061_s4 + $0x2ec] ss:$16 sps:$4 sm:$0xff]  }
 0x120   :  { %v6443_v50 = vld [vmem:[%s9061_s4 + $0x2e0] ss:$16 sps:$4 sm:$0xff]   ;;  %v6446_v52 = vld [vmem:[%s9061_s4 + $0x2e8] ss:$16 sps:$4 sm:$0xff]   ;;  %s6934_s26 = smov 2   ;;  %vm5253_vm9 = vcmask 25600  }
 0x195   :  { %v1420_v56 = vpop.f32.mrb[0].mxu0 }
 0x196   :  { %v5932_v57 = vadd.f32 %v1420_v56, %v303_v54  ;;  %v1422_v58 = vpop.f32.mrb[1].mxu0  ;;  %v6451_v54 = vld [vmem:[%s9061_s4 + $0x304] ss:$16 sps:$4 sm:$0xff]  }
 0x197   :  { %v5934_v59 = vadd.f32 %v1422_v58, %v307_v55  ;;  %v1424_v60 = vpop.f32.mrb[2].mxu0  ;;  %v6454_v55 = vld [vmem:[%s9061_s4 + $0x30c] ss:$16 sps:$4 sm:$0xff]   ;;  %v6452_v58 = vld [vmem:[%s9061_s4 + $0x308] ss:$16 sps:$4 sm:$0xff]  }
 0x198   :  { %v5933_v61 = vadd.f32 %v5932_v57, %v7725_v4  ;;  %v1425_v62 = vpop.f32.mrb[3].mxu0  ;;  %v6409_v4 = vld [vmem:[%s9061_s4 + $0x224] ss:$16 sps:$4 sm:$0xff]   ;;  %v6449_v57 = vld [vmem:[%s9061_s4 + $0x300] ss:$16 sps:$4 sm:$0xff]  }
 0x199   :  { %v5935_v63 = vadd.f32 %v5934_v59, %v7730_v6  ;;  %v6412_v6 = vld [vmem:[%s9061_s4 + $0x22c] ss:$16 sps:$4 sm:$0xff]   ;;  %v6456_v59 = vld [vmem:[%s9063_s6 + $0x40] sm:$0xff]  }
 0x19a   :  { %vm1632_vm1 = vcmp.gt.f32.partialorder %v5933_v61, 0.0  ;;  %v1636_v0 = vmul.f32 0.2, %v5933_v61  ;;  %v6457_v62 = vld [vmem:[%s9063_s6] sm:$0xff]  }
 0x19b   :  { %v1637_v22 = vmul.f32 0.2, %v5935_v63  ;;  %vm1633_vm2 = vcmp.gt.f32.partialorder %v5935_v63, 0.0 }
 0x19c   :  { %v1640_v1 = vsel %vm1632_vm1, %v5933_v61, %v1636_v0  ;;  %v6455_v61 = vld [vmem:[%s9063_s6 + $0x80] sm:$0xff]   ;;  %v6459_v0 = vld [vmem:[%s9063_s6 + $0x48] sm:$0xff]  }
 0x19d   :  { %v1641_v2 = vsel %vm1633_vm2, %v5935_v63, %v1637_v22  ;;  %v1644_v10 = vpack.c.bf16 %v1640_v1, %v1640_v1  ;;  %v6458_v22 = vld [vmem:[%s9063_s6 + $0x88] sm:$0xff]  }
 0x19e   :  { %v1645_v5 = vpack.c.bf16 %v1641_v2, %v1641_v2  ;;  %v6460_v1 = vld [vmem:[%s9063_s6 + $0x8] sm:$0xff]   ;;  %v6462_v2 = vld [vmem:[%s9063_s6 + $0x50] sm:$0xff]  }
 0x1a0   :  { %2305 = vmatprep.mubr.bf16.mxu0 %v1645_v5  ;;  %2387 = vmatprep.mubr.bf16.mxu1 %v1645_v5  ;;  %v6461_v5 = vld [vmem:[%s9063_s6 + $0x90] sm:$0xff]  }
 0x1a1   :  { %2306 = vmatmul.mubr.bf16.vlgmr.msra.gmra.mrb[4].mxu0 %v1644_v10  ;;  %2388 = vmatmul.mubr.bf16.vlgmr.msra.gmra.mrb[8].mxu1 %v1644_v10  ;;  %v6464_v10 = vld [vmem:[%s9063_s6 + $0x98] sm:$0xff]  }
 0x1a2   :  { %2315 = vmatpush1.bf16.msra.mxu0 %v6401_v8  ;;  %2397 = vmatpush1.bf16.msra.mxu1 %v6404_v9  ;;  %v6463_v8 = vld [vmem:[%s9063_s6 + $0x10] sm:$0xff]   ;;  %v6465_v9 = vld [vmem:[%s9063_s6 + $0x58] sm:$0xff]  }
 0x1a3   :  { %2316 = vmatprep.subr.bf16.mxu0 %v6409_v4  ;;  %2398 = vmatprep.subr.bf16.mxu1 %v6412_v6  ;;  %v6466_v4 = vld [vmem:[%s9063_s6 + $0x18] sm:$0xff]   ;;  %v6468_v6 = vld [vmem:[%s9063_s6 + $0x60] sm:$0xff]  }
 0x1a6   :  { %2317 = vmatpush1.bf16.msra.mxu0 %v6407_v11  ;;  %2399 = vmatpush1.bf16.msra.mxu1 %v6410_v13  ;;  %v6467_v11 = vld [vmem:[%s9063_s6 + $0xa0] sm:$0xff]  }
 0x1a7   :  { %2318 = vmatprep.subr.bf16.mxu0 %v6415_v16  ;;  %2400 = vmatprep.subr.bf16.mxu1 %v6418_v17  ;;  %v6469_v13 = vld [vmem:[%s9063_s6 + $0x20] sm:$0xff]   ;;  %v6471_v16 = vld [vmem:[%s9063_s6 + $0x68] sm:$0xff]  }
 0x1a8   :  { %v6470_v17 = vld [vmem:[%s9063_s6 + $0xa8] sm:$0xff]  }
 0x1aa   :  { %2319 = vmatpush1.bf16.msra.mxu0 %v6413_v18  ;;  %2401 = vmatpush1.bf16.msra.mxu1 %v6416_v19  ;;  %v1625_v29 = vpop.f32.mrb[4].mxu1  ;;  %v6472_v18 = vld [vmem:[%s9063_s6 + $0x28] sm:$0xff]   ;;  %v6473_v19 = vld [vmem:[%s9063_s6 + $0xb0] sm:$0xff]  }
 0x1ab   :  { %2320 = vmatprep.subr.bf16.mxu0 %v6421_v21  ;;  %2402 = vmatprep.subr.bf16.mxu1 %v6424_v23  ;;  %v1627_v30 = vpop.f32.mrb[5].mxu1  ;;  %v5936_v49 = vadd.f32 %v1625_v29, %v311_v44  ;;  %v6474_v21 = vld [vmem:[%s9063_s6 + $0x70] sm:$0xff]   ;;  %v1748_v29 = vld [vmem:[%s9062_s5] sm:$0xf]  ;;  %s6936_s5 = smov 126  }
 0x1ac   :  { %v5937_v31 = vadd.f32 %v1627_v30, %v315_v24  ;;  %v1629_v32 = vpop.f32.mrb[6].mxu1  ;;  %v6475_v23 = vld [vmem:[%s9063_s6 + $0x30] sm:$0xff]   ;;  %v6476_v24 = vld [vmem:[%s9063_s6 + $0xb8] sm:$0xff]   ;;  %v1753_v30 = vrot.slane %v1748_v29, %v7850_v51 }
 0x1ad   :  { %v1630_v35 = vpop.f32.mrb[7].mxu1  ;;  %v1638_v56 = vmul.f32 0.2, %v5936_v49  ;;  %vm1634_vm4 = vcmp.gt.f32.partialorder %v5936_v49, 0.0  ;;  %v1757_v32 = vrot.slane %v1748_v29, %v7858_v53 }
 0x1ae   :  { %2321 = vmatpush1.bf16.msra.mxu0 %v6419_v26  ;;  %2403 = vmatpush1.bf16.msra.mxu1 %v6422_v27  ;;  %vm1635_vm3 = vcmp.gt.f32.partialorder %v5937_v31, 0.0  ;;  %v1639_v38 = vmul.f32 0.2, %v5937_v31  ;;  %v6477_v26 = vld [vmem:[%s9063_s6 + $0x78] sm:$0xff]  }
 0x1af   :  { %2322 = vmatprep.subr.bf16.mxu0 %v6427_v28  ;;  %2404 = vmatprep.subr.bf16.mxu1 %v6430_v14  ;;  %v1642_v60 = vsel %vm1634_vm4, %v5936_v49, %v1638_v56  ;;  %v6478_v27 = vld [vmem:[%s9063_s6 + $0x38] sm:$0xff]   ;;  %v6479_v28 = vld [vmem:[%s9063_s6 + $0xc0] sm:$0xff]  }
 0x1b0   :  { %v1643_v39 = vsel %vm1635_vm3, %v5937_v31, %v1639_v38  ;;  %v1646_v63 = vpack.c.bf16 %v1642_v60, %v1642_v60  ;;  %v2743_v14 = vld [vmem:[%s9058_s1] sm:$0x3]  ;;  %v1761_v31 = vrot.slane %v1748_v29, %v7932_v37  ;;  %vm5248_vm3 = vcmask 1043458  }
 0x1b1   :  { %v1647_v42 = vpack.c.bf16 %v1643_v39, %v1643_v39  ;;  %2745 = vrot.lane.b32.xlu0 %v2743_v14, %s6934_s26  ;;  %v6500_v14 = vld [vmem:[%s9067_s10 + $0x64] ss:$16 sps:$4 sm:$0xff]  }
 0x1b2   :  { %2323 = vmatpush1.bf16.msra.mxu0 %v6425_v33  ;;  %2405 = vmatpush1.bf16.msra.mxu1 %v6428_v34  ;;  %v1765_v33 = vrot.slane %v1748_v29, %v7897_v20  ;;  %v6503_v29 = vld [vmem:[%s9067_s10 + $0x6c] ss:$16 sps:$4 sm:$0xff]  }
 0x1b3   :  { %2324 = vmatprep.subr.bf16.mxu0 %v6433_v36  ;;  %2406 = vmatprep.subr.bf16.mxu1 %v6436_v12 }
 0x1b4   :  { %5571 = vmatprep.mubr.msk.bf16.mxu0 %vm1300_vm0, %v1647_v42  ;;  %5572 = vmatprep.mubr.msk.bf16.mxu1 %vm1300_vm0, %v1647_v42 }
 0x1b6   :  { %2325 = vmatpush1.bf16.msra.mxu0 %v6431_v40  ;;  %2407 = vmatpush1.bf16.msra.mxu1 %v6434_v41 }
 0x1b7   :  { %2326 = vmatprep.subr.bf16.mxu0 %v6439_v43  ;;  %2408 = vmatprep.subr.bf16.mxu1 %v6442_v25 }
 0x1ba   :  { %2327 = vmatpush1.bf16.msra.mxu0 %v6437_v45  ;;  %2409 = vmatpush1.bf16.msra.mxu1 %v6440_v46 }
 0x1bb   :  { %2328 = vmatprep.subr.bf16.mxu0 %v6445_v47  ;;  %2410 = vmatprep.subr.bf16.mxu1 %v6448_v48 }
 0x1be   :  { %2329 = vmatpush1.bf16.msra.mxu0 %v6443_v50  ;;  %2411 = vmatpush1.bf16.msra.mxu1 %v6446_v52 }
 0x1bf   :  { %2330 = vmatprep.subr.bf16.mxu0 %v6451_v54  ;;  %2412 = vmatprep.subr.bf16.mxu1 %v6454_v55 }
 0x1c2   :  { %2331 = vmatpush1.bf16.msra.mxu0 %v6449_v57  ;;  %2413 = vmatpush1.bf16.msra.mxu1 %v6452_v58 }
 0x1c3   :  { %2703 = vmatprep.subr.bf16.mxu1 %v6932_v3  ;;  %5888 = vmatprep.subr.bf16.mxu0 %v6456_v59 }
 0x1c5   :  { %2347 = vmatmul.mubr.bf16.vlgmr.msra.gmra.mrb[4].mxu0 %v1646_v63  ;;  %2429 = vmatmul.mubr.bf16.vlgmr.msra.gmra.mrb[8].mxu1 %v1646_v63 }
 0x1c6   :  { %2704 = vmatpush1.bf16.msra.mxu1 %v6455_v61  ;;  %5889 = vmatpush3.bf16.msra.mxu0 %v6457_v62  ;;  %v6935_v61 = vmov 1   ;;  %v5573_v62 = vld [vmem:[%s9064_s7] ss:$0 sm:$0xff] }
 0x1c7   :  { %2705 = vmatprep.subr.bf16.mxu1 %v6932_v3  ;;  %5890 = vmatprep.subr.bf16.mxu0 %v6459_v0 }
 0x1c8   :  { %6008 = vset.pattern.permute.xlu0 %v6935_v61 }
 0x1ca   :  { %2706 = vmatpush1.bf16.msra.mxu1 %v6458_v22  ;;  %5891 = vmatpush3.bf16.msra.mxu0 %v6460_v1 }
 0x1cb   :  { %2707 = vmatprep.subr.bf16.mxu1 %v6932_v3  ;;  %5892 = vmatprep.subr.bf16.mxu0 %v6462_v2 }
 0x1ce   :  { %2708 = vmatpush1.bf16.msra.mxu1 %v6461_v5  ;;  %5893 = vmatpush3.bf16.msra.mxu0 %v6463_v8 }
 0x1cf   :  { %2709 = vmatprep.subr.bf16.mxu1 %v6932_v3  ;;  %5894 = vmatprep.subr.bf16.mxu0 %v6465_v9 }
 0x1d2   :  { %2710 = vmatpush1.bf16.msra.mxu1 %v6464_v10  ;;  %5895 = vmatpush3.bf16.msra.mxu0 %v6466_v4  ;;  %v6480_v10 = vld [vmem:[%s9067_s10] ss:$16 sps:$4 sm:$0xff]   ;;  %v6482_v4 = vld [vmem:[%s9067_s10 + $0x4] ss:$16 sps:$4 sm:$0xff]  }
 0x1d3   :  { %2711 = vmatprep.subr.bf16.mxu1 %v6932_v3  ;;  %5896 = vmatprep.subr.bf16.mxu0 %v6468_v6  ;;  %v6483_v6 = vld [vmem:[%s9067_s10 + $0x8] ss:$16 sps:$4 sm:$0xff]  }
 0x1d6   :  { %2712 = vmatpush1.bf16.msra.mxu1 %v6467_v11  ;;  %5897 = vmatpush3.bf16.msra.mxu0 %v6469_v13  ;;  %v6485_v13 = vld [vmem:[%s9067_s10 + $0xc] ss:$16 sps:$4 sm:$0xff]  }
 0x1d7   :  { %2713 = vmatprep.subr.bf16.mxu1 %v6932_v3  ;;  %5898 = vmatprep.subr.bf16.mxu0 %v6471_v16  ;;  %v6488_v16 = vld [vmem:[%s9067_s10 + $0x24] ss:$16 sps:$4 sm:$0xff]  }
 0x1da   :  { %2714 = vmatpush1.bf16.msra.mxu1 %v6470_v17  ;;  %5899 = vmatpush3.bf16.msra.mxu0 %v6472_v18  ;;  %v6491_v18 = vld [vmem:[%s9067_s10 + $0x2c] ss:$16 sps:$4 sm:$0xff]  }
 0x1db   :  { %2715 = vmatprep.subr.bf16.mxu1 %v6932_v3  ;;  %5900 = vmatprep.subr.bf16.mxu0 %v6474_v21 }
 0x1de   :  { %2716 = vmatpush1.bf16.msra.mxu1 %v6473_v19  ;;  %5901 = vmatpush3.bf16.msra.mxu0 %v6475_v23  ;;  %v6486_v19 = vld [vmem:[%s9067_s10 + $0x20] ss:$16 sps:$4 sm:$0xff]   ;;  %v6489_v23 = vld [vmem:[%s9067_s10 + $0x28] ss:$16 sps:$4 sm:$0xff]  }
 0x1df   :  { %2717 = vmatprep.subr.bf16.mxu1 %v6932_v3  ;;  %5902 = vmatprep.subr.bf16.mxu0 %v6477_v26  ;;  %v6497_v26 = vld [vmem:[%s9067_s10 + $0x4c] ss:$16 sps:$4 sm:$0xff]  }
 0x1e2   :  { %2718 = vmatpush1.bf16.msra.mxu1 %v6476_v24  ;;  %5903 = vmatpush3.bf16.msra.mxu0 %v6478_v27  ;;  %v6494_v24 = vld [vmem:[%s9067_s10 + $0x44] ss:$16 sps:$4 sm:$0xff]   ;;  %v6492_v27 = vld [vmem:[%s9067_s10 + $0x40] ss:$16 sps:$4 sm:$0xff]  }
 0x1e3   :  { %2719 = vmatprep.subr.bf16.mxu1 %v6932_v3  ;;  %3516 = vmatprep.subr.bf16.mxu0 %v6482_v4  ;;  %v6560_v4 = vld [vmem:[%s9067_s10 + $0x1a4] ss:$16 sps:$4 sm:$0xff]  }
 0x1e6   :  { %2720 = vmatpush1.bf16.msra.mxu1 %v6479_v28  ;;  %v6495_v28 = vld [vmem:[%s9067_s10 + $0x48] ss:$16 sps:$4 sm:$0xff]  }
 0x1e7   :  { %3598 = vmatprep.subr.bf16.mxu1 %v6485_v13  ;;  %v6561_v13 = vld [vmem:[%s9067_s10 + $0x1a8] ss:$16 sps:$4 sm:$0xff]  }
 0x223   :  { %v2746_v11 = vpop.permute.xlu0 %2745 }
 0x298   :  { %v2348_v34 = vpop.f32.mrb[4].mxu0  ;;  %v2430_v35 = vpop.f32.mrb[8].mxu1 }
 0x299   :  { %v5938_v36 = vadd.f32 %v2348_v34, %v1753_v30  ;;  %v5940_v12 = vadd.f32 %v2430_v35, %v1761_v31  ;;  %v2350_v38 = vpop.f32.mrb[5].mxu0  ;;  %v2432_v39 = vpop.f32.mrb[9].mxu1  ;;  %v6498_v30 = vld [vmem:[%s9067_s10 + $0x60] ss:$16 sps:$4 sm:$0xff]   ;;  %v6501_v31 = vld [vmem:[%s9067_s10 + $0x68] ss:$16 sps:$4 sm:$0xff]  }
 0x29a   :  { %v5939_v40 = vadd.f32 %v2350_v38, %v1757_v32  ;;  %v5941_v41 = vadd.f32 %v2432_v39, %v1765_v33  ;;  %v2352_v42 = vpop.f32.mrb[6].mxu0  ;;  %v2434_v43 = vpop.f32.mrb[10].mxu1  ;;  %v6506_v32 = vld [vmem:[%s9067_s10 + $0x84] ss:$16 sps:$4 sm:$0xff]   ;;  %v6509_v33 = vld [vmem:[%s9067_s10 + $0x8c] ss:$16 sps:$4 sm:$0xff]  }
 0x29b   :  { %vm2437_vm5 = vcmp.gt.f32.partialorder %v5938_v36, 0.0  ;;  %v2441_v25 = vmul.f32 0.2, %v5938_v36  ;;  %vm2439_vm6 = vcmp.gt.f32.partialorder %v5940_v12, 0.0  ;;  %v2443_v44 = vmul.f32 0.2, %v5940_v12 }
 0x29c   :  { %vm2438_vm7 = vcmp.gt.f32.partialorder %v5939_v40, 0.0  ;;  %v2442_v45 = vmul.f32 0.2, %v5939_v40  ;;  %vm2440_vm8 = vcmp.gt.f32.partialorder %v5941_v41, 0.0  ;;  %v2444_v46 = vmul.f32 0.2, %v5941_v41 }
 0x29d   :  { %v2445_v47 = vsel %vm2437_vm5, %v5938_v36, %v2441_v25  ;;  %v2447_v48 = vsel %vm2439_vm6, %v5940_v12, %v2443_v44  ;;  %v2353_v49 = vpop.f32.mrb[7].mxu0  ;;  %v2435_v50 = vpop.f32.mrb[11].mxu1  ;;  %v6504_v34 = vld [vmem:[%s9067_s10 + $0x80] ss:$16 sps:$4 sm:$0xff]   ;;  %v6507_v35 = vld [vmem:[%s9067_s10 + $0x88] ss:$16 sps:$4 sm:$0xff]  }
 0x29e   :  { %v2448_v52 = vsel %vm2440_vm8, %v5941_v41, %v2444_v46  ;;  %v2446_v54 = vsel %vm2438_vm7, %v5939_v40, %v2442_v45  ;;  %v2449_v57 = vpack.c.bf16 %v2445_v47, %v2445_v47  ;;  %v2451_v58 = vpack.c.bf16 %v2447_v48, %v2447_v48  ;;  %v6512_v36 = vld [vmem:[%s9067_s10 + $0xa4] ss:$16 sps:$4 sm:$0xff]   ;;  %v6515_v12 = vld [vmem:[%s9067_s10 + $0xac] ss:$16 sps:$4 sm:$0xff]   ;;  %v6510_v38 = vld [vmem:[%s9067_s10 + $0xa0] ss:$16 sps:$4 sm:$0xff]  }
 0x29f   :  { %v2452_v55 = vpack.c.bf16 %v2448_v52, %v2448_v52  ;;  %v2450_v56 = vpack.c.bf16 %v2446_v54, %v2446_v54  ;;  %v6513_v39 = vld [vmem:[%s9067_s10 + $0xa8] ss:$16 sps:$4 sm:$0xff]   ;;  %v6518_v40 = vld [vmem:[%s9067_s10 + $0xc4] ss:$16 sps:$4 sm:$0xff]   ;;  %v6521_v41 = vld [vmem:[%s9067_s10 + $0xcc] ss:$16 sps:$4 sm:$0xff]  }
 0x2a0   :  { %v6516_v42 = vld [vmem:[%s9067_s10 + $0xc0] ss:$16 sps:$4 sm:$0xff]   ;;  %v6519_v43 = vld [vmem:[%s9067_s10 + $0xc8] ss:$16 sps:$4 sm:$0xff]   ;;  %v6524_v25 = vld [vmem:[%s9067_s10 + $0xe4] ss:$16 sps:$4 sm:$0xff]  }
 0x2a1   :  { %2695 = vmatprep.mubr.bf16.mxu0 %v2450_v56  ;;  %5599 = vmatprep.mubr.msk.bf16.mxu1 %vm1300_vm0, %v2452_v55  ;;  %v6527_v44 = vld [vmem:[%s9067_s10 + $0xec] ss:$16 sps:$4 sm:$0xff]   ;;  %v6522_v45 = vld [vmem:[%s9067_s10 + $0xe0] ss:$16 sps:$4 sm:$0xff]   ;;  %v6525_v46 = vld [vmem:[%s9067_s10 + $0xe8] ss:$16 sps:$4 sm:$0xff]  }
 0x2a2   :  { %2696 = vmatmul.mubr.bf16.vlgmr.msra.gmra.mrb[8].mxu0 %v2449_v57  ;;  %2736 = vmatmul.mubr.bf16.vlgmr.msra.gmra.mrb[12].mxu1 %v2451_v58  ;;  %v6530_v47 = vld [vmem:[%s9067_s10 + $0x104] ss:$16 sps:$4 sm:$0xff]   ;;  %v6533_v48 = vld [vmem:[%s9067_s10 + $0x10c] ss:$16 sps:$4 sm:$0xff]   ;;  %v6528_v49 = vld [vmem:[%s9067_s10 + $0x100] ss:$16 sps:$4 sm:$0xff]  }
 0x2a3   :  { %3517 = vmatpush1.bf16.msra.mxu0 %v6480_v10  ;;  %3599 = vmatpush1.bf16.msra.mxu1 %v6483_v6  ;;  %v6531_v50 = vld [vmem:[%s9067_s10 + $0x108] ss:$16 sps:$4 sm:$0xff]   ;;  %v6536_v52 = vld [vmem:[%s9067_s10 + $0x124] ss:$16 sps:$4 sm:$0xff]   ;;  %v6539_v54 = vld [vmem:[%s9067_s10 + $0x12c] ss:$16 sps:$4 sm:$0xff]  }
 0x2a4   :  { %3518 = vmatprep.subr.bf16.mxu0 %v6488_v16  ;;  %3600 = vmatprep.subr.bf16.mxu1 %v6491_v18  ;;  %v6534_v55 = vld [vmem:[%s9067_s10 + $0x120] ss:$16 sps:$4 sm:$0xff]   ;;  %v6537_v56 = vld [vmem:[%s9067_s10 + $0x128] ss:$16 sps:$4 sm:$0xff]   ;;  %v6542_v57 = vld [vmem:[%s9067_s10 + $0x144] ss:$16 sps:$4 sm:$0xff]  }
 0x2a5   :  { %v6545_v58 = vld [vmem:[%s9067_s10 + $0x14c] ss:$16 sps:$4 sm:$0xff]   ;;  %v6566_v16 = vld [vmem:[%s9067_s10 + $0x1c4] ss:$16 sps:$4 sm:$0xff]   ;;  %v6567_v18 = vld [vmem:[%s9067_s10 + $0x1c8] ss:$16 sps:$4 sm:$0xff]  }
 0x2a6   :  { %v6557_v10 = vld [vmem:[%s9067_s10 + $0x18c] ss:$16 sps:$4 sm:$0xff]   ;;  %vm5250_vm5 = vcmask 128004  }
 0x2a7   :  { %3519 = vmatpush1.bf16.msra.mxu0 %v6486_v19  ;;  %3601 = vmatpush1.bf16.msra.mxu1 %v6489_v23  ;;  %v6563_v6 = vld [vmem:[%s9067_s10 + $0x1ac] ss:$16 sps:$4 sm:$0xff]   ;;  %v6570_v19 = vld [vmem:[%s9067_s10 + $0x1e0] ss:$16 sps:$4 sm:$0xff]   ;;  %v6573_v23 = vld [vmem:[%s9067_s10 + $0x1e8] ss:$16 sps:$4 sm:$0xff]  }
 0x2a8   :  { %3520 = vmatprep.subr.bf16.mxu0 %v6494_v24  ;;  %3602 = vmatprep.subr.bf16.mxu1 %v6497_v26  ;;  %v6575_v24 = vld [vmem:[%s9067_s10 + $0x1ec] ss:$16 sps:$4 sm:$0xff]   ;;  %v6578_v26 = vld [vmem:[%s9067_s10 + $0x204] ss:$16 sps:$4 sm:$0xff]  }
 0x2ab   :  { %3521 = vmatpush1.bf16.msra.mxu0 %v6492_v27  ;;  %3603 = vmatpush1.bf16.msra.mxu1 %v6495_v28  ;;  %v6581_v27 = vld [vmem:[%s9067_s10 + $0x20c] ss:$16 sps:$4 sm:$0xff]   ;;  %v8289_v28 = vld [vmem:[%s9065_s8] sm:$0xff] }
 0x2ac   :  { %3522 = vmatprep.subr.bf16.mxu0 %v6500_v14  ;;  %3604 = vmatprep.subr.bf16.mxu1 %v6503_v29  ;;  %v2775_v14 = vsub.s32 6, %v7029_v7  ;;  %v2819_v29 = vsub.s32 7, %v7029_v7 }
 0x2af   :  { %3523 = vmatpush1.bf16.msra.mxu0 %v6498_v30  ;;  %3605 = vmatpush1.bf16.msra.mxu1 %v6501_v31  ;;  %v2764_v30 = vrot.slane %v8289_v28, %v7850_v51  ;;  %v2768_v31 = vrot.slane %v8289_v28, %v7932_v37 }
 0x2b0   :  { %3524 = vmatprep.subr.bf16.mxu0 %v6506_v32  ;;  %3606 = vmatprep.subr.bf16.mxu1 %v6509_v33  ;;  %v2776_v32 = vrot.slane %v8289_v28, %v2775_v14  ;;  %v2808_v33 = vrot.slane %v8289_v28, %v7858_v53 }
 0x2b3   :  { %3525 = vmatpush1.bf16.msra.mxu0 %v6504_v34  ;;  %3607 = vmatpush1.bf16.msra.mxu1 %v6507_v35  ;;  %v2812_v34 = vrot.slane %v8289_v28, %v7897_v20  ;;  %v2820_v35 = vrot.slane %v8289_v28, %v2819_v29 }
 0x2b4   :  { %3526 = vmatprep.subr.bf16.mxu0 %v6512_v36  ;;  %3608 = vmatprep.subr.bf16.mxu1 %v6515_v12  ;;  %v2784_v12 = vrot.slane %v2764_v30, %v7850_v51  ;;  %v6594_v30 = vld [vmem:[%s9067_s10 + $0x260] ss:$16 sps:$4 sm:$0xff]  }
 0x2b7   :  { %3527 = vmatpush1.bf16.msra.mxu0 %v6510_v38  ;;  %3609 = vmatpush1.bf16.msra.mxu1 %v6513_v39  ;;  %v2788_v38 = vrot.slane %v2768_v31, %v7850_v51  ;;  %v8312_v39 = vld [vmem:[%s9066_s9] sm:$0xf]  ;;  %v6597_v31 = vld [vmem:[%s9067_s10 + $0x268] ss:$16 sps:$4 sm:$0xff]  }
 0x2b8   :  { %3528 = vmatprep.subr.bf16.mxu0 %v6518_v40  ;;  %3610 = vmatprep.subr.bf16.mxu1 %v6521_v41  ;;  %v2796_v40 = vrot.slane %v2776_v32, %v7850_v51  ;;  %v2828_v41 = vrot.slane %v2808_v33, %v7858_v53  ;;  %v6602_v32 = vld [vmem:[%s9067_s10 + $0x284] ss:$16 sps:$4 sm:$0xff]  }
 0x2bb   :  { %3529 = vmatpush1.bf16.msra.mxu0 %v6516_v42  ;;  %3611 = vmatpush1.bf16.msra.mxu1 %v6519_v43  ;;  %v2832_v42 = vrot.slane %v2812_v34, %v7858_v53  ;;  %v2840_v43 = vrot.slane %v2820_v35, %v7858_v53  ;;  %v6600_v35 = vld [vmem:[%s9067_s10 + $0x280] ss:$16 sps:$4 sm:$0xff]  }
 0x2bc   :  { %3530 = vmatprep.subr.bf16.mxu0 %v6524_v25  ;;  %3612 = vmatprep.subr.bf16.mxu1 %v6527_v44  ;;  %v2854_v25 = vrot.slane %v8312_v39, %v7850_v51 }
 0x2bf   :  { %3531 = vmatpush1.bf16.msra.mxu0 %v6522_v45  ;;  %3613 = vmatpush1.bf16.msra.mxu1 %v6525_v46  ;;  %v2858_v46 = vrot.slane %v8312_v39, %v7858_v53 }
 0x2c0   :  { %3532 = vmatprep.subr.bf16.mxu0 %v6530_v47  ;;  %3614 = vmatprep.subr.bf16.mxu1 %v6533_v48  ;;  %v2866_v47 = vrot.slane %v8312_v39, %v7897_v20 }
 0x2c3   :  { %3533 = vmatpush1.bf16.msra.mxu0 %v6528_v49  ;;  %3615 = vmatpush1.bf16.msra.mxu1 %v6531_v50 }
 0x2c4   :  { %3534 = vmatprep.subr.bf16.mxu0 %v6536_v52  ;;  %3616 = vmatprep.subr.bf16.mxu1 %v6539_v54 }
 0x2c7   :  { %3535 = vmatpush1.bf16.msra.mxu0 %v6534_v55  ;;  %3617 = vmatpush1.bf16.msra.mxu1 %v6537_v56 }
 0x2c8   :  { %3536 = vmatprep.subr.bf16.mxu0 %v6542_v57  ;;  %3618 = vmatprep.subr.bf16.mxu1 %v6545_v58 }
 0x375   :  { %v5904_v59 = vpop.f32.mrb[8].mxu0  ;;  %v2737_v60 = vpop.f32.mrb[12].mxu1 }
 0x376   :  { %v5905_v63 = vpop.f32.mrb[9].mxu0  ;;  %v2739_v0 = vpop.f32.mrb[13].mxu1 }
 0x377   :  { %v5906_v22 = vadd.f32 %v5905_v63, %v5904_v59  ;;  %v5907_v1 = vpop.f32.mrb[10].mxu0  ;;  %v2740_v2 = vpop.f32.mrb[14].mxu1  ;;  %v6540_v59 = vld [vmem:[%s9067_s10 + $0x140] ss:$16 sps:$4 sm:$0xff]   ;;  %v6551_v63 = vld [vmem:[%s9067_s10 + $0x16c] ss:$16 sps:$4 sm:$0xff]  }
 0x378   :  { %v5908_v5 = vpop.f32.mrb[11].mxu0  ;;  %v2741_v8 = vpop.f32.mrb[15].mxu1  ;;  %3537 = vmatpush1.bf16.msra.mxu0 %v6540_v59  ;;  %v6546_v0 = vld [vmem:[%s9067_s10 + $0x160] ss:$16 sps:$4 sm:$0xff]  }
 0x379   :  { %v2698_v9 = vadd.f32 %v5906_v22, %v5573_v62  ;;  %v6548_v62 = vld [vmem:[%s9067_s10 + $0x164] ss:$16 sps:$4 sm:$0xff]   ;;  %v6549_v22 = vld [vmem:[%s9067_s10 + $0x168] ss:$16 sps:$4 sm:$0xff]   ;;  %v6552_v5 = vld [vmem:[%s9067_s10 + $0x180] ss:$16 sps:$4 sm:$0xff]  }
 0x37a   :  { %3538 = vmatprep.subr.bf16.mxu0 %v6548_v62  ;;  %v6554_v8 = vld [vmem:[%s9067_s10 + $0x184] ss:$16 sps:$4 sm:$0xff]  }
 0x37b   :  { %v8094_v17 = vadd.f32 %v2737_v60, %v2698_v9  ;;  %v6543_v60 = vld [vmem:[%s9067_s10 + $0x148] ss:$16 sps:$4 sm:$0xff]  }
 0x37c   :  { %3619 = vmatpush1.bf16.msra.mxu1 %v6543_v60  ;;  %3539 = vmatpush1.bf16.msra.mxu0 %v6546_v0  ;;  %v6555_v9 = vld [vmem:[%s9067_s10 + $0x188] ss:$16 sps:$4 sm:$0xff]  }
 0x37d   :  { %5254 = vst.msk [vmem:[%s9072_s15] sm:$0x3] %vm5253_vm9, %v8094_v17  ;;  %v2748_v21 = vmul.f32 %v2746_v11, %v8094_v17  ;;  %3620 = vmatprep.subr.bf16.mxu1 %v6551_v63  ;;  %3540 = vmatprep.subr.bf16.mxu0 %v6554_v8  ;;  %v6558_v11 = vld [vmem:[%s9067_s10 + $0x1a0] ss:$16 sps:$4 sm:$0xff]  }
 0x37e   :  { %v6576_v8 = vld [vmem:[%s9067_s10 + $0x200] ss:$16 sps:$4 sm:$0xff]  }
 0x37f   :  { %2750 = vrot.lane.b32.xlu0 %v2748_v21, %s6936_s5  ;;  %v6572_v21 = vld [vmem:[%s9067_s10 + $0x1e4] ss:$16 sps:$4 sm:$0xff]  }
 0x380   :  { %3621 = vmatpush1.bf16.msra.mxu1 %v6549_v22  ;;  %3541 = vmatpush1.bf16.msra.mxu0 %v6552_v5 }
 0x381   :  { %3622 = vmatprep.subr.bf16.mxu1 %v6557_v10  ;;  %3542 = vmatprep.subr.bf16.mxu0 %v6560_v4  ;;  %v6584_v4 = vld [vmem:[%s9067_s10 + $0x224] ss:$16 sps:$4 sm:$0xff]  }
 0x384   :  { %3623 = vmatpush1.bf16.msra.mxu1 %v6555_v9  ;;  %3543 = vmatpush1.bf16.msra.mxu0 %v6558_v11  ;;  %v6579_v9 = vld [vmem:[%s9067_s10 + $0x208] ss:$16 sps:$4 sm:$0xff]  }
 0x385   :  { %3624 = vmatprep.subr.bf16.mxu1 %v6563_v6  ;;  %3544 = vmatprep.subr.bf16.mxu0 %v6566_v16  ;;  %v6587_v6 = vld [vmem:[%s9067_s10 + $0x22c] ss:$16 sps:$4 sm:$0xff]   ;;  %v6585_v16 = vld [vmem:[%s9067_s10 + $0x228] ss:$16 sps:$4 sm:$0xff]  }
 0x388   :  { %3625 = vmatpush1.bf16.msra.mxu1 %v6561_v13  ;;  %v6582_v13 = vld [vmem:[%s9067_s10 + $0x220] ss:$16 sps:$4 sm:$0xff]  }
 0x3f1   :  { %v2751_v1 = vpop.permute.xlu0 %2750 }
 0x3f2   :  { %v2753_v2 = vadd.f32 %v2751_v1, %v8094_v17  ;;  %v6569_v17 = vld [vmem:[%s9067_s10 + $0x1cc] ss:$16 sps:$4 sm:$0xff]  }
 0x3f3   :  { %3626 = vmatprep.subr.bf16.mxu1 %v6569_v17  ;;  %v6590_v17 = vld [vmem:[%s9067_s10 + $0x244] ss:$16 sps:$4 sm:$0xff]  }
 0x3f4   :  { %2757 = vperm.xlu1 %6006, %v2753_v2   ;;  %3627 = vmatpush1.bf16.msra.mxu1 %v6567_v18  ;;  %v2815_v18 = vsub.s32 5, %v7029_v7 }
 0x3f5   :  { %3628 = vmatprep.subr.bf16.mxu1 %v6575_v24  ;;  %v6596_v24 = vld [vmem:[%s9067_s10 + $0x264] ss:$16 sps:$4 sm:$0xff]  }
 0x3f8   :  { %6007 = vset.pattern.permute.xlu1 %v6935_v61  ;;  %v6564_v61 = vld [vmem:[%s9067_s10 + $0x1c0] ss:$16 sps:$4 sm:$0xff]   ;;  %3629 = vmatpush1.bf16.msra.mxu1 %v6573_v23  ;;  %v6591_v23 = vld [vmem:[%s9067_s10 + $0x248] ss:$16 sps:$4 sm:$0xff]  }
 0x3f9   :  { %2802 = vperm.xlu1 %6007, %v2753_v2   ;;  %3545 = vmatpush1.bf16.msra.mxu0 %v6564_v61  ;;  %v6593_v61 = vld [vmem:[%s9067_s10 + $0x24c] ss:$16 sps:$4 sm:$0xff]  }
 0x3fa   :  { %3546 = vmatprep.subr.bf16.mxu0 %v6572_v21  ;;  %3639 = vmatprep.subr.bf16.mxu1 %v6581_v27  ;;  %v6588_v21 = vld [vmem:[%s9067_s10 + $0x240] ss:$16 sps:$4 sm:$0xff]   ;;  %v2816_v27 = vrot.slane %v8289_v28, %v2815_v18 }
 0x3fc   :  { %v2836_v33 = vrot.slane %v2816_v27, %v7858_v53  ;;  %v6662_v27 = vld [vmem:[%s9069_s12 + $0x11c] ss:$28 sps:$4 sm:$0xff]  }
 0x3fd   :  { %3547 = vmatpush1.bf16.msra.mxu0 %v6570_v19  ;;  %v2771_v19 = vsub.s32 4, %v7029_v7 }
 0x3fe   :  { %3557 = vmatprep.subr.bf16.mxu0 %v6578_v26  ;;  %v6599_v26 = vld [vmem:[%s9067_s10 + $0x26c] ss:$16 sps:$4 sm:$0xff]  }
 0x3ff   :  { %v2772_v29 = vrot.slane %v8289_v28, %v2771_v19  ;;  %v6605_v28 = vld [vmem:[%s9067_s10 + $0x28c] ss:$16 sps:$4 sm:$0xff]  }
 0x401   :  { %v2792_v34 = vrot.slane %v2772_v29, %v7850_v51  ;;  %v6665_v29 = vld [vmem:[%s9069_s12 + $0x124] ss:$28 sps:$4 sm:$0xff]  }
 0x473   :  { %v8305_v36 = vpop.permute.xlu1 %2757 }
 0x474   :  { %v2797_v44 = vmul.f32 %v2784_v12, %v8305_v36  ;;  %v2798_v45 = vmul.f32 %v2788_v38, %v8305_v36  ;;  %v2800_v49 = vmul.f32 %v2796_v40, %v8305_v36  ;;  %v6603_v12 = vld [vmem:[%s9067_s10 + $0x288] ss:$16 sps:$4 sm:$0xff]   ;;  %v6608_v38 = vld [vmem:[%s9067_s10 + $0x2a4] ss:$16 sps:$4 sm:$0xff]   ;;  %v6611_v40 = vld [vmem:[%s9067_s10 + $0x2ac] ss:$16 sps:$4 sm:$0xff]  }
 0x478   :  { %v8326_v48 = vpop.permute.xlu1 %2802 }
 0x479   :  { %v2841_v50 = vmul.f32 %v2828_v41, %v8326_v48  ;;  %v2842_v52 = vmul.f32 %v2832_v42, %v8326_v48  ;;  %v2844_v54 = vmul.f32 %v2840_v43, %v8326_v48  ;;  %v2843_v41 = vmul.f32 %v2836_v33, %v8326_v48  ;;  %v6606_v43 = vld [vmem:[%s9067_s10 + $0x2a0] ss:$16 sps:$4 sm:$0xff]   ;;  %v6615_v48 = vld [vmem:[%s9067_s10 + $0x2c8] ss:$16 sps:$4 sm:$0xff]  }
 0x47a   :  { %v2799_v42 = vmul.f32 %v2792_v34, %v8305_v36  ;;  %v6617_v36 = vld [vmem:[%s9067_s10 + $0x2cc] ss:$16 sps:$4 sm:$0xff]   ;;  %v6669_v34 = vld [vmem:[%s9069_s12 + $0x158] ss:$28 sps:$4 sm:$0xff]  }
 0x47b   :  { %v2845_v55 = vadd.f32 %v2841_v50, %v2797_v44  ;;  %v2846_v56 = vadd.f32 %v2842_v52, %v2798_v45  ;;  %v2848_v57 = vadd.f32 %v2844_v54, %v2800_v49  ;;  %v6614_v44 = vld [vmem:[%s9067_s10 + $0x2c4] ss:$16 sps:$4 sm:$0xff]   ;;  %v2862_v45 = vrot.slane %v8312_v39, %v7932_v37  ;;  %v6623_v39 = vld [vmem:[%s9067_s10 + $0x2ec] ss:$16 sps:$4 sm:$0xff]   ;;  %v6618_v52 = vld [vmem:[%s9067_s10 + $0x2e0] ss:$16 sps:$4 sm:$0xff]  }
 0x47c   :  { %v6620_v49 = vld [vmem:[%s9067_s10 + $0x2e4] ss:$16 sps:$4 sm:$0xff]   ;;  %v6621_v54 = vld [vmem:[%s9067_s10 + $0x2e8] ss:$16 sps:$4 sm:$0xff]   ;;  %v6666_v33 = vld [vmem:[%s9069_s12 + $0x150] ss:$28 sps:$4 sm:$0xff]  }
 0x47d   :  { %v2871_v58 = vadd.f32 %v2854_v25, %v2845_v55  ;;  %v2872_v59 = vadd.f32 %v2858_v46, %v2846_v56  ;;  %v2874_v60 = vadd.f32 %v2866_v47, %v2848_v57  ;;  %v6609_v25 = vld [vmem:[%s9067_s10 + $0x2a8] ss:$16 sps:$4 sm:$0xff]   ;;  %v2847_v46 = vadd.f32 %v2843_v41, %v2799_v42  ;;  %v6612_v47 = vld [vmem:[%s9067_s10 + $0x2c0] ss:$16 sps:$4 sm:$0xff]   ;;  %v6626_v55 = vld [vmem:[%s9067_s10 + $0x304] ss:$16 sps:$4 sm:$0xff]  }
 0x47e   :  { %v6629_v56 = vld [vmem:[%s9067_s10 + $0x30c] ss:$16 sps:$4 sm:$0xff]   ;;  %v6680_v41 = vld [vmem:[%s9069_s12 + $0x1c4] ss:$28 sps:$4 sm:$0xff]  }
 0x47f   :  { %v2879_v62 = vmul.f32 0.2, %v2871_v58  ;;  %v2882_v63 = vmul.f32 0.2, %v2874_v60  ;;  %vm2876_vm10 = vcmp.gt.f32.partialorder %v2872_v59, 0.0  ;;  %vm2875_vm11 = vcmp.gt.f32.partialorder %v2871_v58, 0.0 }
 0x480   :  { %v2880_v0 = vmul.f32 0.2, %v2872_v59  ;;  %vm2878_vm12 = vcmp.gt.f32.partialorder %v2874_v60, 0.0  ;;  %v2873_v50 = vadd.f32 %v2862_v45, %v2847_v46  ;;  %v6683_v42 = vld [vmem:[%s9069_s12 + $0x1cc] ss:$28 sps:$4 sm:$0xff]  }
 0x481   :  { %v2883_v22 = vsel %vm2875_vm11, %v2871_v58, %v2879_v62  ;;  %v2886_v10 = vsel %vm2878_vm12, %v2874_v60, %v2882_v63  ;;  %v6624_v58 = vld [vmem:[%s9067_s10 + $0x300] ss:$16 sps:$4 sm:$0xff]   ;;  %v6635_v62 = vld [vmem:[%s9069_s12 + $0xc] ss:$28 sps:$4 sm:$0xff]   ;;  %v6684_v45 = vld [vmem:[%s9069_s12 + $0x1f8] ss:$28 sps:$4 sm:$0xff]  }
 0x482   :  { %v2884_v1 = vsel %vm2876_vm10, %v2872_v59, %v2880_v0  ;;  %v2887_v2 = vpack.c.bf16 %v2883_v22, %v2883_v22  ;;  %v2890_v11 = vpack.c.bf16 %v2886_v10, %v2886_v10  ;;  %v2881_v57 = vmul.f32 0.2, %v2873_v50  ;;  %v6627_v59 = vld [vmem:[%s9067_s10 + $0x308] ss:$16 sps:$4 sm:$0xff]   ;;  %v6632_v60 = vld [vmem:[%s9069_s12 + $0x4] ss:$28 sps:$4 sm:$0xff]  }
 0x483   :  { %v2888_v5 = vpack.c.bf16 %v2884_v1, %v2884_v1  ;;  %vm2877_vm13 = vcmp.gt.f32.partialorder %v2873_v50, 0.0  ;;  %v6630_v0 = vld [vmem:[%s9069_s12] ss:$28 sps:$4 sm:$0xff]   ;;  %v6633_v22 = vld [vmem:[%s9069_s12 + $0x8] ss:$28 sps:$4 sm:$0xff]  }
 0x484   :  { %v2885_v63 = vsel %vm2877_vm13, %v2873_v50, %v2881_v57  ;;  %v6644_v10 = vld [vmem:[%s9069_s12 + $0x74] ss:$28 sps:$4 sm:$0xff]   ;;  %v6687_v46 = vld [vmem:[%s9069_s12 + $0x200] ss:$28 sps:$4 sm:$0xff]   ;;  %v6698_v50 = vld [vmem:[%s9069_s12 + $0x26c] ss:$28 sps:$4 sm:$0xff]  }
 0x485   :  { %3548 = vmatprep.mubr.bf16.mxu0 %v2888_v5  ;;  %3630 = vmatprep.mubr.bf16.mxu1 %v2888_v5  ;;  %v2889_v1 = vpack.c.bf16 %v2885_v63, %v2885_v63  ;;  %v6641_v5 = vld [vmem:[%s9069_s12 + $0x44] ss:$28 sps:$4 sm:$0xff]   ;;  %v6707_v57 = vld [vmem:[%s9069_s12 + $0x2ac] ss:$28 sps:$4 sm:$0xff]   ;;  %v6708_v63 = vld [vmem:[%s9069_s12 + $0x2d8] ss:$28 sps:$4 sm:$0xff]  }
 0x486   :  { %3549 = vmatmul.mubr.bf16.vlgmr.msra.gmra.mrb[12].mxu0 %v2887_v2  ;;  %3631 = vmatmul.mubr.bf16.vlgmr.msra.gmra.mrb[16].mxu1 %v2887_v2  ;;  %v6638_v2 = vld [vmem:[%s9069_s12 + $0x3c] ss:$28 sps:$4 sm:$0xff]  }
 0x487   :  { %3558 = vmatpush1.bf16.msra.mxu0 %v6576_v8  ;;  %3640 = vmatpush1.bf16.msra.mxu1 %v6579_v9  ;;  %v6636_v8 = vld [vmem:[%s9069_s12 + $0x38] ss:$28 sps:$4 sm:$0xff]   ;;  %v6639_v9 = vld [vmem:[%s9069_s12 + $0x40] ss:$28 sps:$4 sm:$0xff]  }
 0x488   :  { %5700 = vmatprep.mubr.msk.bf16.mxu0 %vm1300_vm0, %v2890_v11  ;;  %5701 = vmatprep.mubr.msk.bf16.mxu1 %vm1300_vm0, %v2890_v11  ;;  %v6645_v11 = vld [vmem:[%s9069_s12 + $0x78] ss:$28 sps:$4 sm:$0xff]  }
 0x489   :  { %3559 = vmatprep.subr.bf16.mxu0 %v6584_v4  ;;  %3641 = vmatprep.subr.bf16.mxu1 %v6587_v6  ;;  %v6647_v4 = vld [vmem:[%s9069_s12 + $0x7c] ss:$28 sps:$4 sm:$0xff]   ;;  %v6642_v6 = vld [vmem:[%s9069_s12 + $0x70] ss:$28 sps:$4 sm:$0xff]  }
 0x48b   :  { %3560 = vmatpush1.bf16.msra.mxu0 %v6582_v13  ;;  %3642 = vmatpush1.bf16.msra.mxu1 %v6585_v16  ;;  %v6650_v13 = vld [vmem:[%s9069_s12 + $0xac] ss:$28 sps:$4 sm:$0xff]   ;;  %v6653_v16 = vld [vmem:[%s9069_s12 + $0xb4] ss:$28 sps:$4 sm:$0xff]  }
 0x48c   :  { %3561 = vmatprep.subr.bf16.mxu0 %v6590_v17  ;;  %3643 = vmatprep.subr.bf16.mxu1 %v6593_v61  ;;  %v6648_v17 = vld [vmem:[%s9069_s12 + $0xa8] ss:$28 sps:$4 sm:$0xff]   ;;  %v6651_v61 = vld [vmem:[%s9069_s12 + $0xb0] ss:$28 sps:$4 sm:$0xff]  }
 0x48f   :  { %3562 = vmatpush1.bf16.msra.mxu0 %v6588_v21  ;;  %3644 = vmatpush1.bf16.msra.mxu1 %v6591_v23  ;;  %v6656_v21 = vld [vmem:[%s9069_s12 + $0xe4] ss:$28 sps:$4 sm:$0xff]   ;;  %v6659_v23 = vld [vmem:[%s9069_s12 + $0xec] ss:$28 sps:$4 sm:$0xff]  }
 0x490   :  { %3563 = vmatprep.subr.bf16.mxu0 %v6596_v24  ;;  %3645 = vmatprep.subr.bf16.mxu1 %v6599_v26  ;;  %v6654_v24 = vld [vmem:[%s9069_s12 + $0xe0] ss:$28 sps:$4 sm:$0xff]   ;;  %v6657_v26 = vld [vmem:[%s9069_s12 + $0xe8] ss:$28 sps:$4 sm:$0xff]  }
 0x493   :  { %3564 = vmatpush1.bf16.msra.mxu0 %v6594_v30  ;;  %3646 = vmatpush1.bf16.msra.mxu1 %v6597_v31  ;;  %v6660_v30 = vld [vmem:[%s9069_s12 + $0x118] ss:$28 sps:$4 sm:$0xff]   ;;  %v6663_v31 = vld [vmem:[%s9069_s12 + $0x120] ss:$28 sps:$4 sm:$0xff]  }
 0x494   :  { %3565 = vmatprep.subr.bf16.mxu0 %v6602_v32  ;;  %3647 = vmatprep.subr.bf16.mxu1 %v6605_v28  ;;  %v6668_v32 = vld [vmem:[%s9069_s12 + $0x154] ss:$28 sps:$4 sm:$0xff]   ;;  %v6671_v28 = vld [vmem:[%s9069_s12 + $0x15c] ss:$28 sps:$4 sm:$0xff]  }
 0x497   :  { %3566 = vmatpush1.bf16.msra.mxu0 %v6600_v35  ;;  %3648 = vmatpush1.bf16.msra.mxu1 %v6603_v12  ;;  %v6674_v35 = vld [vmem:[%s9069_s12 + $0x18c] ss:$28 sps:$4 sm:$0xff]   ;;  %v6677_v12 = vld [vmem:[%s9069_s12 + $0x194] ss:$28 sps:$4 sm:$0xff]  }
 0x498   :  { %3567 = vmatprep.subr.bf16.mxu0 %v6608_v38  ;;  %3649 = vmatprep.subr.bf16.mxu1 %v6611_v40  ;;  %v6672_v38 = vld [vmem:[%s9069_s12 + $0x188] ss:$28 sps:$4 sm:$0xff]   ;;  %v6675_v40 = vld [vmem:[%s9069_s12 + $0x190] ss:$28 sps:$4 sm:$0xff]  }
 0x49b   :  { %3568 = vmatpush1.bf16.msra.mxu0 %v6606_v43  ;;  %3650 = vmatpush1.bf16.msra.mxu1 %v6609_v25  ;;  %v6678_v43 = vld [vmem:[%s9069_s12 + $0x1c0] ss:$28 sps:$4 sm:$0xff]   ;;  %v6681_v25 = vld [vmem:[%s9069_s12 + $0x1c8] ss:$28 sps:$4 sm:$0xff]  }
 0x49c   :  { %3569 = vmatprep.subr.bf16.mxu0 %v6614_v44  ;;  %3651 = vmatprep.subr.bf16.mxu1 %v6617_v36  ;;  %v6686_v44 = vld [vmem:[%s9069_s12 + $0x1fc] ss:$28 sps:$4 sm:$0xff]   ;;  %v6689_v36 = vld [vmem:[%s9069_s12 + $0x204] ss:$28 sps:$4 sm:$0xff]  }
 0x49f   :  { %3570 = vmatpush1.bf16.msra.mxu0 %v6612_v47  ;;  %3652 = vmatpush1.bf16.msra.mxu1 %v6615_v48  ;;  %v6692_v47 = vld [vmem:[%s9069_s12 + $0x234] ss:$28 sps:$4 sm:$0xff]   ;;  %v6695_v48 = vld [vmem:[%s9069_s12 + $0x23c] ss:$28 sps:$4 sm:$0xff]  }
 0x4a0   :  { %3571 = vmatprep.subr.bf16.mxu0 %v6620_v49  ;;  %3653 = vmatprep.subr.bf16.mxu1 %v6623_v39  ;;  %v6690_v49 = vld [vmem:[%s9069_s12 + $0x230] ss:$28 sps:$4 sm:$0xff]   ;;  %v6693_v39 = vld [vmem:[%s9069_s12 + $0x238] ss:$28 sps:$4 sm:$0xff]  }
 0x4a3   :  { %3572 = vmatpush1.bf16.msra.mxu0 %v6618_v52  ;;  %3654 = vmatpush1.bf16.msra.mxu1 %v6621_v54  ;;  %v6701_v52 = vld [vmem:[%s9069_s12 + $0x274] ss:$28 sps:$4 sm:$0xff]   ;;  %v6696_v54 = vld [vmem:[%s9069_s12 + $0x268] ss:$28 sps:$4 sm:$0xff]  }
 0x4a4   :  { %3573 = vmatprep.subr.bf16.mxu0 %v6626_v55  ;;  %3655 = vmatprep.subr.bf16.mxu1 %v6629_v56  ;;  %v6699_v55 = vld [vmem:[%s9069_s12 + $0x270] ss:$28 sps:$4 sm:$0xff]   ;;  %v6704_v56 = vld [vmem:[%s9069_s12 + $0x2a4] ss:$28 sps:$4 sm:$0xff]  }
 0x4a7   :  { %3574 = vmatpush1.bf16.msra.mxu0 %v6624_v58  ;;  %3656 = vmatpush1.bf16.msra.mxu1 %v6627_v59  ;;  %v6702_v58 = vld [vmem:[%s9069_s12 + $0x2a0] ss:$28 sps:$4 sm:$0xff]   ;;  %v6705_v59 = vld [vmem:[%s9069_s12 + $0x2a8] ss:$28 sps:$4 sm:$0xff]  }
 0x4a8   :  { %4836 = vmatprep.subr.bf16.mxu0 %v6632_v60  ;;  %4918 = vmatprep.subr.bf16.mxu1 %v6635_v62  ;;  %v6710_v60 = vld [vmem:[%s9069_s12 + $0x2dc] ss:$28 sps:$4 sm:$0xff]   ;;  %v6713_v62 = vld [vmem:[%s9069_s12 + $0x2e4] ss:$28 sps:$4 sm:$0xff]  }
 0x4aa   :  { %3590 = vmatmul.mubr.bf16.vlgmr.msra.gmra.mrb[12].mxu0 %v2889_v1  ;;  %3672 = vmatmul.mubr.bf16.vlgmr.msra.gmra.mrb[16].mxu1 %v2889_v1  ;;  %v6719_v1 = vld [vmem:[%s9069_s12 + $0x31c] ss:$28 sps:$4 sm:$0xff]  }
 0x4ab   :  { %4837 = vmatpush1.bf16.msra.mxu0 %v6630_v0  ;;  %4919 = vmatpush1.bf16.msra.mxu1 %v6633_v22  ;;  %v6711_v0 = vld [vmem:[%s9069_s12 + $0x2e0] ss:$28 sps:$4 sm:$0xff]   ;;  %v6716_v22 = vld [vmem:[%s9069_s12 + $0x314] ss:$28 sps:$4 sm:$0xff]  }
 0x4ac   :  { %4838 = vmatprep.subr.bf16.mxu0 %v6638_v2  ;;  %4920 = vmatprep.subr.bf16.mxu1 %v6641_v5  ;;  %v6714_v2 = vld [vmem:[%s9069_s12 + $0x310] ss:$28 sps:$4 sm:$0xff]   ;;  %v6717_v5 = vld [vmem:[%s9069_s12 + $0x318] ss:$28 sps:$4 sm:$0xff]  }
 0x4af   :  { %4839 = vmatpush1.bf16.msra.mxu0 %v6636_v8  ;;  %4921 = vmatpush1.bf16.msra.mxu1 %v6639_v9  ;;  %v6722_v8 = vld [vmem:[%s9069_s12 + $0x34c] ss:$28 sps:$4 sm:$0xff]   ;;  %v6725_v9 = vld [vmem:[%s9069_s12 + $0x354] ss:$28 sps:$4 sm:$0xff]  }
 0x4b0   :  { %4840 = vmatprep.subr.bf16.mxu0 %v6644_v10  ;;  %4922 = vmatprep.subr.bf16.mxu1 %v6647_v4  ;;  %v6720_v10 = vld [vmem:[%s9069_s12 + $0x348] ss:$28 sps:$4 sm:$0xff]   ;;  %v6723_v4 = vld [vmem:[%s9069_s12 + $0x350] ss:$28 sps:$4 sm:$0xff]  }
 0x4b3   :  { %4841 = vmatpush1.bf16.msra.mxu0 %v6642_v6  ;;  %4923 = vmatpush1.bf16.msra.mxu1 %v6645_v11  ;;  %v6728_v6 = vld [vmem:[%s9069_s12 + $0x384] ss:$28 sps:$4 sm:$0xff]   ;;  %v6731_v11 = vld [vmem:[%s9069_s12 + $0x38c] ss:$28 sps:$4 sm:$0xff]  }
 0x4b4   :  { %4842 = vmatprep.subr.bf16.mxu0 %v6650_v13  ;;  %4924 = vmatprep.subr.bf16.mxu1 %v6653_v16  ;;  %v8651_v13 = vld [vmem:[%s9068_s11] sm:$0xf] }
 0x4b5   :  { %v2996_v16 = vrot.slane %v8651_v13, %v7850_v51 }
 0x4b7   :  { %4843 = vmatpush1.bf16.msra.mxu0 %v6648_v17  ;;  %4925 = vmatpush1.bf16.msra.mxu1 %v6651_v61  ;;  %v3000_v17 = vrot.slane %v8651_v13, %v7858_v53  ;;  %v3008_v61 = vrot.slane %v8651_v13, %v7897_v20 }
 0x4b8   :  { %4844 = vmatprep.subr.bf16.mxu0 %v6656_v21  ;;  %4926 = vmatprep.subr.bf16.mxu1 %v6659_v23 }
 0x4bb   :  { %4845 = vmatpush1.bf16.msra.mxu0 %v6654_v24  ;;  %4927 = vmatpush1.bf16.msra.mxu1 %v6657_v26 }
 0x4bc   :  { %4846 = vmatprep.subr.bf16.mxu0 %v6662_v27  ;;  %4928 = vmatprep.subr.bf16.mxu1 %v6665_v29 }
 0x4bf   :  { %4847 = vmatpush1.bf16.msra.mxu0 %v6660_v30  ;;  %4929 = vmatpush1.bf16.msra.mxu1 %v6663_v31 }
 0x4c0   :  { %4848 = vmatprep.subr.bf16.mxu0 %v6668_v32  ;;  %4930 = vmatprep.subr.bf16.mxu1 %v6671_v28 }
 0x4c3   :  { %4849 = vmatpush1.bf16.msra.mxu0 %v6666_v33  ;;  %4931 = vmatpush1.bf16.msra.mxu1 %v6669_v34 }
 0x4c4   :  { %4850 = vmatprep.subr.bf16.mxu0 %v6674_v35  ;;  %4932 = vmatprep.subr.bf16.mxu1 %v6677_v12 }
 0x4c7   :  { %4851 = vmatpush1.bf16.msra.mxu0 %v6672_v38  ;;  %4933 = vmatpush1.bf16.msra.mxu1 %v6675_v40 }
 0x4c8   :  { %4852 = vmatprep.subr.bf16.mxu0 %v6680_v41  ;;  %4934 = vmatprep.subr.bf16.mxu1 %v6683_v42 }
 0x4cb   :  { %4853 = vmatpush1.bf16.msra.mxu0 %v6678_v43  ;;  %4935 = vmatpush1.bf16.msra.mxu1 %v6681_v25  ;;  %v6726_v43 = vld [vmem:[%s9069_s12 + $0x380] ss:$28 sps:$4 sm:$0xff]   ;;  %v6729_v25 = vld [vmem:[%s9069_s12 + $0x388] ss:$28 sps:$4 sm:$0xff]  }
 0x4cc   :  { %4854 = vmatprep.subr.bf16.mxu0 %v6686_v44  ;;  %4936 = vmatprep.subr.bf16.mxu1 %v6689_v36  ;;  %v6734_v36 = vld [vmem:[%s9069_s12 + $0x3bc] ss:$28 sps:$4 sm:$0xff]  }
 0x4cf   :  { %4855 = vmatpush1.bf16.msra.mxu0 %v6684_v45  ;;  %4937 = vmatpush1.bf16.msra.mxu1 %v6687_v46  ;;  %v6737_v45 = vld [vmem:[%s9069_s12 + $0x3c4] ss:$28 sps:$4 sm:$0xff]  }
 0x4d0   :  { %4856 = vmatprep.subr.bf16.mxu0 %v6692_v47  ;;  %4938 = vmatprep.subr.bf16.mxu1 %v6695_v48  ;;  %v6732_v47 = vld [vmem:[%s9069_s12 + $0x3b8] ss:$28 sps:$4 sm:$0xff]   ;;  %v6735_v48 = vld [vmem:[%s9069_s12 + $0x3c0] ss:$28 sps:$4 sm:$0xff]  }
 0x4d3   :  { %4857 = vmatpush1.bf16.msra.mxu0 %v6690_v49  ;;  %4939 = vmatpush1.bf16.msra.mxu1 %v6693_v39  ;;  %v6740_v49 = vld [vmem:[%s9069_s12 + $0x3f4] ss:$28 sps:$4 sm:$0xff]   ;;  %v6743_v39 = vld [vmem:[%s9069_s12 + $0x3fc] ss:$28 sps:$4 sm:$0xff]  }
 0x4d4   :  { %4858 = vmatprep.subr.bf16.mxu0 %v6698_v50  ;;  %4940 = vmatprep.subr.bf16.mxu1 %v6701_v52  ;;  %v6738_v50 = vld [vmem:[%s9069_s12 + $0x3f0] ss:$28 sps:$4 sm:$0xff]   ;;  %v6741_v52 = vld [vmem:[%s9069_s12 + $0x3f8] ss:$28 sps:$4 sm:$0xff]  }
 0x4d7   :  { %4859 = vmatpush1.bf16.msra.mxu0 %v6696_v54  ;;  %4941 = vmatpush1.bf16.msra.mxu1 %v6699_v55  ;;  %v6746_v54 = vld [vmem:[%s9069_s12 + $0x42c] ss:$28 sps:$4 sm:$0xff]   ;;  %v6749_v55 = vld [vmem:[%s9069_s12 + $0x434] ss:$28 sps:$4 sm:$0xff]  }
 0x4d8   :  { %4860 = vmatprep.subr.bf16.mxu0 %v6704_v56  ;;  %4942 = vmatprep.subr.bf16.mxu1 %v6707_v57  ;;  %v6744_v56 = vld [vmem:[%s9069_s12 + $0x428] ss:$28 sps:$4 sm:$0xff]   ;;  %v6747_v57 = vld [vmem:[%s9069_s12 + $0x430] ss:$28 sps:$4 sm:$0xff]  }
 0x4db   :  { %4861 = vmatpush1.bf16.msra.mxu0 %v6702_v58  ;;  %4943 = vmatpush1.bf16.msra.mxu1 %v6705_v59  ;;  %v6752_v58 = vld [vmem:[%s9069_s12 + $0x464] ss:$28 sps:$4 sm:$0xff]   ;;  %v6755_v59 = vld [vmem:[%s9069_s12 + $0x46c] ss:$28 sps:$4 sm:$0xff]  }
 0x4dc   :  { %4862 = vmatprep.subr.bf16.mxu0 %v6710_v60  ;;  %4944 = vmatprep.subr.bf16.mxu1 %v6713_v62  ;;  %v6750_v60 = vld [vmem:[%s9069_s12 + $0x460] ss:$28 sps:$4 sm:$0xff]   ;;  %v6753_v62 = vld [vmem:[%s9069_s12 + $0x468] ss:$28 sps:$4 sm:$0xff]  }
 0x4df   :  { %4863 = vmatpush1.bf16.msra.mxu0 %v6708_v63  ;;  %4945 = vmatpush1.bf16.msra.mxu1 %v6711_v0  ;;  %v6758_v63 = vld [vmem:[%s9069_s12 + $0x49c] ss:$28 sps:$4 sm:$0xff]   ;;  %v6761_v0 = vld [vmem:[%s9069_s12 + $0x4a4] ss:$28 sps:$4 sm:$0xff]  }
 0x4e0   :  { %4864 = vmatprep.subr.bf16.mxu0 %v6716_v22  ;;  %4946 = vmatprep.subr.bf16.mxu1 %v6719_v1  ;;  %v6756_v22 = vld [vmem:[%s9069_s12 + $0x498] ss:$28 sps:$4 sm:$0xff]   ;;  %v6759_v1 = vld [vmem:[%s9069_s12 + $0x4a0] ss:$28 sps:$4 sm:$0xff]  }
 0x4e3   :  { %4865 = vmatpush1.bf16.msra.mxu0 %v6714_v2  ;;  %4947 = vmatpush1.bf16.msra.mxu1 %v6717_v5  ;;  %v6764_v2 = vld [vmem:[%s9069_s12 + $0x4d4] ss:$28 sps:$4 sm:$0xff]   ;;  %v6767_v5 = vld [vmem:[%s9069_s12 + $0x4dc] ss:$28 sps:$4 sm:$0xff]  }
 0x4e4   :  { %4866 = vmatprep.subr.bf16.mxu0 %v6722_v8  ;;  %4948 = vmatprep.subr.bf16.mxu1 %v6725_v9  ;;  %v3004_v8 = vrot.slane %v8651_v13, %v7932_v37  ;;  %v6762_v9 = vld [vmem:[%s9069_s12 + $0x4d0] ss:$28 sps:$4 sm:$0xff]   ;;  %v6768_v13 = vld [vmem:[%s9069_s12 + $0x508] ss:$28 sps:$4 sm:$0xff]  }
 0x4e7   :  { %4867 = vmatpush1.bf16.msra.mxu0 %v6720_v10  ;;  %4949 = vmatpush1.bf16.msra.mxu1 %v6723_v4  ;;  %v6765_v10 = vld [vmem:[%s9069_s12 + $0x4d8] ss:$28 sps:$4 sm:$0xff]   ;;  %v6770_v4 = vld [vmem:[%s9069_s12 + $0x50c] ss:$28 sps:$4 sm:$0xff]  }
 0x4e8   :  { %4877 = vmatprep.subr.bf16.mxu0 %v6728_v6  ;;  %4959 = vmatprep.subr.bf16.mxu1 %v6731_v11  ;;  %v6773_v6 = vld [vmem:[%s9069_s12 + $0x514] ss:$28 sps:$4 sm:$0xff]  }
 0x57d   :  { %v3591_v21 = vpop.f32.mrb[12].mxu0  ;;  %v8659_v23 = vpop.f32.mrb[16].mxu1 }
 0x57e   :  { %v5942_v24 = vadd.f32 %v3591_v21, %v2996_v16  ;;  %v3593_v26 = vpop.f32.mrb[13].mxu0  ;;  %v3675_v27 = vpop.f32.mrb[17].mxu1  ;;  %v5944_v11 = vadd.f32 %v8659_v23, %v3004_v8  ;;  %v6771_v16 = vld [vmem:[%s9069_s12 + $0x510] ss:$28 sps:$4 sm:$0xff]   ;;  %v6774_v23 = vld [vmem:[%s9069_s12 + $0x540] ss:$28 sps:$4 sm:$0xff]  }
 0x57f   :  { %v5943_v29 = vadd.f32 %v3593_v26, %v3000_v17  ;;  %v5945_v30 = vadd.f32 %v3675_v27, %v3008_v61  ;;  %v3595_v31 = vpop.f32.mrb[14].mxu0  ;;  %v3677_v32 = vpop.f32.mrb[18].mxu1  ;;  %v6776_v17 = vld [vmem:[%s9069_s12 + $0x544] ss:$28 sps:$4 sm:$0xff]   ;;  %v6779_v61 = vld [vmem:[%s9069_s12 + $0x54c] ss:$28 sps:$4 sm:$0xff]  }
 0x580   :  { %vm3680_vm14 = vcmp.gt.f32.partialorder %v5942_v24, 0.0  ;;  %v3684_v28 = vmul.f32 0.2, %v5942_v24  ;;  %v3596_v12 = vpop.f32.mrb[15].mxu0  ;;  %v3678_v38 = vpop.f32.mrb[19].mxu1  ;;  %vm3682_vm2 = vcmp.gt.f32.partialorder %v5944_v11, 0.0 }
 0x581   :  { %vm3681_vm15 = vcmp.gt.f32.partialorder %v5943_v29, 0.0  ;;  %v3685_v33 = vmul.f32 0.2, %v5943_v29  ;;  %vm3683_vm1 = vcmp.gt.f32.partialorder %v5945_v30, 0.0  ;;  %v3687_v34 = vmul.f32 0.2, %v5945_v30 }
 0x582   :  { %v3688_v35 = vsel %vm3680_vm14, %v5942_v24, %v3684_v28  ;;  %v3686_v21 = vmul.f32 0.2, %v5944_v11  ;;  %v6777_v24 = vld [vmem:[%s9069_s12 + $0x548] ss:$28 sps:$4 sm:$0xff]   ;;  %v6782_v26 = vld [vmem:[%s9069_s12 + $0x14] ss:$28 sps:$4 sm:$0xff]  }
 0x583   :  { %v3689_v40 = vsel %vm3681_vm15, %v5943_v29, %v3685_v33  ;;  %v3691_v42 = vsel %vm3683_vm1, %v5945_v30, %v3687_v34  ;;  %v8669_v44 = vpack.c.bf16 %v3688_v35, %v3688_v35  ;;  %v6783_v27 = vld [vmem:[%s9069_s12 + $0x1d8] ss:$28 sps:$4 sm:$0xff]   ;;  %v6780_v30 = vld [vmem:[%s9069_s12 + $0x10] ss:$28 sps:$4 sm:$0xff]   ;;  %v6785_v34 = vld [vmem:[%s9069_s12 + $0x48] ss:$28 sps:$4 sm:$0xff]  }
 0x584   :  { %v8661_v41 = vpack.c.bf16 %v3689_v40, %v3689_v40  ;;  %v8679_v46 = vpack.c.bf16 %v3691_v42, %v3691_v42  ;;  %v3690_v29 = vsel %vm3682_vm2, %v5944_v11, %v3686_v21  ;;  %v6784_v32 = vld [vmem:[%s9069_s12 + $0x18] ss:$28 sps:$4 sm:$0xff]   ;;  %v6787_v28 = vld [vmem:[%s9069_s12 + $0x4c] ss:$28 sps:$4 sm:$0xff]   ;;  %v6792_v12 = vld [vmem:[%s9069_s12 + $0x84] ss:$28 sps:$4 sm:$0xff]  }
 0x585   :  { %v8789_v31 = vpack.c.bf16 %v3690_v29, %v3690_v29  ;;  %v6788_v33 = vld [vmem:[%s9069_s12 + $0x210] ss:$28 sps:$4 sm:$0xff]   ;;  %v6793_v38 = vld [vmem:[%s9069_s12 + $0x248] ss:$28 sps:$4 sm:$0xff]   ;;  %v6790_v40 = vld [vmem:[%s9069_s12 + $0x80] ss:$28 sps:$4 sm:$0xff]  }
 0x586   :  { %4868 = vmatprep.mubr.bf16.mxu0 %v8661_v41  ;;  %4950 = vmatprep.mubr.bf16.mxu1 %v8661_v41  ;;  %v6789_v35 = vld [vmem:[%s9069_s12 + $0x50] ss:$28 sps:$4 sm:$0xff]   ;;  %v6797_v42 = vld [vmem:[%s9069_s12 + $0xbc] ss:$28 sps:$4 sm:$0xff]   ;;  %v6847_v29 = vld [vmem:[%s9069_s12 + $0x4e8] ss:$28 sps:$4 sm:$0xff]  }
 0x587   :  { %4869 = vmatmul.mubr.bf16.vlgmr.msra.gmra.mrb[16].mxu0 %v8669_v44  ;;  %4951 = vmatmul.mubr.bf16.vlgmr.msra.gmra.mrb[20].mxu1 %v8669_v44  ;;  %v6827_v8 = vld [vmem:[%s9069_s12 + $0x3d0] ss:$28 sps:$4 sm:$0xff]   ;;  %v6832_v11 = vld [vmem:[%s9069_s12 + $0x278] ss:$28 sps:$4 sm:$0xff]  }
 0x588   :  { %4878 = vmatpush1.bf16.msra.mxu0 %v6726_v43  ;;  %4960 = vmatpush1.bf16.msra.mxu1 %v6729_v25  ;;  %v6798_v43 = vld [vmem:[%s9069_s12 + $0x280] ss:$28 sps:$4 sm:$0xff]   ;;  %v6795_v25 = vld [vmem:[%s9069_s12 + $0xb8] ss:$28 sps:$4 sm:$0xff]   ;;  %v6842_v21 = vld [vmem:[%s9069_s12 + $0x2ec] ss:$28 sps:$4 sm:$0xff]  }
 0x589   :  { %5877 = vmatprep.mubr.msk.bf16.mxu0 %vm1300_vm0, %v8679_v46  ;;  %5878 = vmatprep.mubr.msk.bf16.mxu1 %vm1300_vm0, %v8679_v46 }
 0x58a   :  { %4879 = vmatprep.subr.bf16.mxu0 %v6734_v36  ;;  %4961 = vmatprep.subr.bf16.mxu1 %v6737_v45  ;;  %v6799_v36 = vld [vmem:[%s9069_s12 + $0xc0] ss:$28 sps:$4 sm:$0xff]   ;;  %v6802_v45 = vld [vmem:[%s9069_s12 + $0xf4] ss:$28 sps:$4 sm:$0xff]  }
 0x58c   :  { %4880 = vmatpush1.bf16.msra.mxu0 %v6732_v47  ;;  %4962 = vmatpush1.bf16.msra.mxu1 %v6735_v48  ;;  %v6803_v47 = vld [vmem:[%s9069_s12 + $0x2b8] ss:$28 sps:$4 sm:$0xff]   ;;  %v6800_v48 = vld [vmem:[%s9069_s12 + $0xf0] ss:$28 sps:$4 sm:$0xff]  }
 0x58d   :  { %4881 = vmatprep.subr.bf16.mxu0 %v6740_v49  ;;  %4963 = vmatprep.subr.bf16.mxu1 %v6743_v39  ;;  %v6804_v49 = vld [vmem:[%s9069_s12 + $0xf8] ss:$28 sps:$4 sm:$0xff]   ;;  %v6807_v39 = vld [vmem:[%s9069_s12 + $0x12c] ss:$28 sps:$4 sm:$0xff]  }
 0x590   :  { %4882 = vmatpush1.bf16.msra.mxu0 %v6738_v50  ;;  %4964 = vmatpush1.bf16.msra.mxu1 %v6741_v52  ;;  %v6808_v50 = vld [vmem:[%s9069_s12 + $0x2f0] ss:$28 sps:$4 sm:$0xff]   ;;  %v6805_v52 = vld [vmem:[%s9069_s12 + $0x128] ss:$28 sps:$4 sm:$0xff]  }
 0x591   :  { %4883 = vmatprep.subr.bf16.mxu0 %v6746_v54  ;;  %4965 = vmatprep.subr.bf16.mxu1 %v6749_v55  ;;  %v6809_v54 = vld [vmem:[%s9069_s12 + $0x130] ss:$28 sps:$4 sm:$0xff]   ;;  %v6812_v55 = vld [vmem:[%s9069_s12 + $0x164] ss:$28 sps:$4 sm:$0xff]  }
 0x594   :  { %4884 = vmatpush1.bf16.msra.mxu0 %v6744_v56  ;;  %4966 = vmatpush1.bf16.msra.mxu1 %v6747_v57  ;;  %v6813_v56 = vld [vmem:[%s9069_s12 + $0x328] ss:$28 sps:$4 sm:$0xff]   ;;  %v6810_v57 = vld [vmem:[%s9069_s12 + $0x160] ss:$28 sps:$4 sm:$0xff]  }
 0x595   :  { %4885 = vmatprep.subr.bf16.mxu0 %v6752_v58  ;;  %4967 = vmatprep.subr.bf16.mxu1 %v6755_v59  ;;  %v6814_v58 = vld [vmem:[%s9069_s12 + $0x168] ss:$28 sps:$4 sm:$0xff]   ;;  %v6817_v59 = vld [vmem:[%s9069_s12 + $0x19c] ss:$28 sps:$4 sm:$0xff]  }
 0x598   :  { %4886 = vmatpush1.bf16.msra.mxu0 %v6750_v60  ;;  %4968 = vmatpush1.bf16.msra.mxu1 %v6753_v62  ;;  %v6818_v60 = vld [vmem:[%s9069_s12 + $0x360] ss:$28 sps:$4 sm:$0xff]   ;;  %v6815_v62 = vld [vmem:[%s9069_s12 + $0x198] ss:$28 sps:$4 sm:$0xff]  }
 0x599   :  { %4887 = vmatprep.subr.bf16.mxu0 %v6758_v63  ;;  %4969 = vmatprep.subr.bf16.mxu1 %v6761_v0  ;;  %v6819_v63 = vld [vmem:[%s9069_s12 + $0x1a0] ss:$28 sps:$4 sm:$0xff]   ;;  %v6822_v0 = vld [vmem:[%s9069_s12 + $0x1d4] ss:$28 sps:$4 sm:$0xff]  }
 0x59c   :  { %4888 = vmatpush1.bf16.msra.mxu0 %v6756_v22  ;;  %4970 = vmatpush1.bf16.msra.mxu1 %v6759_v1  ;;  %v6820_v22 = vld [vmem:[%s9069_s12 + $0x1d0] ss:$28 sps:$4 sm:$0xff]   ;;  %v6823_v1 = vld [vmem:[%s9069_s12 + $0x398] ss:$28 sps:$4 sm:$0xff]  }
 0x59d   :  { %4889 = vmatprep.subr.bf16.mxu0 %v6764_v2  ;;  %4971 = vmatprep.subr.bf16.mxu1 %v6767_v5  ;;  %v6826_v2 = vld [vmem:[%s9069_s12 + $0x20c] ss:$28 sps:$4 sm:$0xff]  }
 0x59e   :  { %v6824_v5 = vld [vmem:[%s9069_s12 + $0x208] ss:$28 sps:$4 sm:$0xff]  }
 0x5a0   :  { %4890 = vmatpush1.bf16.msra.mxu0 %v6762_v9  ;;  %4972 = vmatpush1.bf16.msra.mxu1 %v6765_v10  ;;  %v6830_v9 = vld [vmem:[%s9069_s12 + $0x244] ss:$28 sps:$4 sm:$0xff]  }
 0x5a1   :  { %4891 = vmatprep.subr.bf16.mxu0 %v6770_v4  ;;  %4973 = vmatprep.subr.bf16.mxu1 %v6773_v6  ;;  %v6828_v10 = vld [vmem:[%s9069_s12 + $0x240] ss:$28 sps:$4 sm:$0xff]   ;;  %v6831_v4 = vld [vmem:[%s9069_s12 + $0x408] ss:$28 sps:$4 sm:$0xff]  }
 0x5a2   :  { %v6834_v6 = vld [vmem:[%s9069_s12 + $0x27c] ss:$28 sps:$4 sm:$0xff]  }
 0x5a4   :  { %4892 = vmatpush1.bf16.msra.mxu0 %v6768_v13  ;;  %4974 = vmatpush1.bf16.msra.mxu1 %v6771_v16  ;;  %v6835_v13 = vld [vmem:[%s9069_s12 + $0x440] ss:$28 sps:$4 sm:$0xff]   ;;  %v6838_v16 = vld [vmem:[%s9069_s12 + $0x2b4] ss:$28 sps:$4 sm:$0xff]  }
 0x5a5   :  { %4893 = vmatprep.subr.bf16.mxu0 %v6776_v17  ;;  %4975 = vmatprep.subr.bf16.mxu1 %v6779_v61  ;;  %v6836_v17 = vld [vmem:[%s9069_s12 + $0x2b0] ss:$28 sps:$4 sm:$0xff]   ;;  %v6839_v61 = vld [vmem:[%s9069_s12 + $0x478] ss:$28 sps:$4 sm:$0xff]  }
 0x5a8   :  { %4894 = vmatpush1.bf16.msra.mxu0 %v6774_v23  ;;  %4976 = vmatpush1.bf16.msra.mxu1 %v6777_v24  ;;  %v6840_v23 = vld [vmem:[%s9069_s12 + $0x2e8] ss:$28 sps:$4 sm:$0xff]   ;;  %v6843_v24 = vld [vmem:[%s9069_s12 + $0x4b0] ss:$28 sps:$4 sm:$0xff]  }
 0x5a9   :  { %5000 = vmatprep.subr.bf16.mxu0 %v6782_v26  ;;  %5910 = vmatprep.subr.bf16.mxu1 %v6783_v27  ;;  %v6846_v26 = vld [vmem:[%s9069_s12 + $0x324] ss:$28 sps:$4 sm:$0xff]  }
 0x5aa   :  { %v6844_v27 = vld [vmem:[%s9069_s12 + $0x320] ss:$28 sps:$4 sm:$0xff]  }
 0x5ab   :  { %4910 = vmatmul.mubr.bf16.vlgmr.msra.gmra.mrb[16].mxu0 %v8789_v31  ;;  %4992 = vmatmul.mubr.bf16.vlgmr.msra.gmra.mrb[20].mxu1 %v8789_v31 }
 0x5ac   :  { %5001 = vmatpush1.bf16.msra.mxu0 %v6780_v30  ;;  %5032 = vmatprep.mubr.bf16.mxu0 %v8661_v41  ;;  %v6850_v30 = vld [vmem:[%s9069_s12 + $0x35c] ss:$28 sps:$4 sm:$0xff]  }
 0x5ad   :  { %5911 = vmatpush3.bf16.msra.mxu1 %v6784_v32  ;;  %5114 = vmatprep.mubr.bf16.mxu1 %v8661_v41  ;;  %v6794_v41 = vld [vmem:[%s9069_s12 + $0x88] ss:$28 sps:$4 sm:$0xff]   ;;  %v6848_v32 = vld [vmem:[%s9069_s12 + $0x358] ss:$28 sps:$4 sm:$0xff]  }
 0x5ae   :  { %5002 = vmatprep.subr.bf16.mxu0 %v6787_v28  ;;  %5912 = vmatprep.subr.bf16.mxu1 %v6788_v33  ;;  %v6851_v28 = vld [vmem:[%s9069_s12 + $0x520] ss:$28 sps:$4 sm:$0xff]   ;;  %v6854_v33 = vld [vmem:[%s9069_s12 + $0x394] ss:$28 sps:$4 sm:$0xff]  }
 0x5b0   :  { %5003 = vmatpush1.bf16.msra.mxu0 %v6785_v34  ;;  %v6852_v34 = vld [vmem:[%s9069_s12 + $0x390] ss:$28 sps:$4 sm:$0xff]  }
 0x5b1   :  { %5913 = vmatpush3.bf16.msra.mxu1 %v6789_v35  ;;  %5004 = vmatprep.subr.bf16.mxu0 %v6792_v12  ;;  %v6855_v35 = vld [vmem:[%s9069_s12 + $0x558] ss:$28 sps:$4 sm:$0xff]   ;;  %v6858_v12 = vld [vmem:[%s9069_s12 + $0x3cc] ss:$28 sps:$4 sm:$0xff]  }
 0x5b2   :  { %5914 = vmatprep.subr.bf16.mxu1 %v6793_v38  ;;  %v6856_v38 = vld [vmem:[%s9069_s12 + $0x3c8] ss:$28 sps:$4 sm:$0xff]  }
 0x5b4   :  { %5005 = vmatpush1.bf16.msra.mxu0 %v6790_v40  ;;  %v6861_v40 = vld [vmem:[%s9069_s12 + $0x404] ss:$28 sps:$4 sm:$0xff]  }
 0x5b5   :  { %5915 = vmatpush3.bf16.msra.mxu1 %v6794_v41  ;;  %5006 = vmatprep.subr.bf16.mxu0 %v6797_v42  ;;  %v6867_v41 = vld [vmem:[%s9069_s12 + $0x474] ss:$28 sps:$4 sm:$0xff]  }
 0x5b6   :  { %5916 = vmatprep.subr.bf16.mxu1 %v6798_v43  ;;  %v6865_v42 = vld [vmem:[%s9069_s12 + $0x470] ss:$28 sps:$4 sm:$0xff]  }
 0x5b7   :  { %v6870_v43 = vld [vmem:[%s9069_s12 + $0x4ac] ss:$28 sps:$4 sm:$0xff]  }
 0x5b8   :  { %5007 = vmatpush1.bf16.msra.mxu0 %v6795_v25  ;;  %v6868_v25 = vld [vmem:[%s9069_s12 + $0x4a8] ss:$28 sps:$4 sm:$0xff]  }
 0x5b9   :  { %5917 = vmatpush3.bf16.msra.mxu1 %v6799_v36  ;;  %5008 = vmatprep.subr.bf16.mxu0 %v6802_v45  ;;  %v6873_v36 = vld [vmem:[%s9069_s12 + $0x4e4] ss:$28 sps:$4 sm:$0xff]  }
 0x5ba   :  { %5918 = vmatprep.subr.bf16.mxu1 %v6803_v47  ;;  %v6871_v45 = vld [vmem:[%s9069_s12 + $0x4e0] ss:$28 sps:$4 sm:$0xff]  }
 0x5bb   :  { %v6876_v47 = vld [vmem:[%s9069_s12 + $0x51c] ss:$28 sps:$4 sm:$0xff]  }
 0x5bc   :  { %5009 = vmatpush1.bf16.msra.mxu0 %v6800_v48  ;;  %v6874_v48 = vld [vmem:[%s9069_s12 + $0x518] ss:$28 sps:$4 sm:$0xff]  }
 0x5bd   :  { %5919 = vmatpush3.bf16.msra.mxu1 %v6804_v49  ;;  %5010 = vmatprep.subr.bf16.mxu0 %v6807_v39  ;;  %v6879_v49 = vld [vmem:[%s9069_s12 + $0x554] ss:$28 sps:$4 sm:$0xff]  }
 0x5be   :  { %5920 = vmatprep.subr.bf16.mxu1 %v6808_v50  ;;  %v6877_v39 = vld [vmem:[%s9069_s12 + $0x550] ss:$28 sps:$4 sm:$0xff]   ;;  %v3896_v50 = vld [vmem:[%s9070_s13] sm:$0x7f] }
 0x5c0   :  { %5011 = vmatpush1.bf16.msra.mxu0 %v6805_v52  ;;  %v3901_v52 = vrot.slane %v3896_v50, %v7850_v51 }
 0x5c1   :  { %5921 = vmatpush3.bf16.msra.mxu1 %v6809_v54  ;;  %5012 = vmatprep.subr.bf16.mxu0 %v6812_v55  ;;  %v3909_v54 = vrot.slane %v3896_v50, %v7932_v37  ;;  %v3905_v55 = vrot.slane %v3896_v50, %v7858_v53 }
 0x5c2   :  { %5922 = vmatprep.subr.bf16.mxu1 %v6813_v56  ;;  %v3913_v56 = vrot.slane %v3896_v50, %v7897_v20 }
 0x5c4   :  { %5013 = vmatpush1.bf16.msra.mxu0 %v6810_v57 }
 0x5c5   :  { %5923 = vmatpush3.bf16.msra.mxu1 %v6814_v58  ;;  %5014 = vmatprep.subr.bf16.mxu0 %v6817_v59 }
 0x5c6   :  { %5924 = vmatprep.subr.bf16.mxu1 %v6818_v60 }
 0x5c8   :  { %5015 = vmatpush1.bf16.msra.mxu0 %v6815_v62 }
 0x5c9   :  { %5925 = vmatpush3.bf16.msra.mxu1 %v6819_v63  ;;  %5016 = vmatprep.subr.bf16.mxu0 %v6822_v0 }
 0x5ca   :  { %5122 = vmatprep.subr.bf16.mxu1 %v6932_v3 }
 0x5cc   :  { %5115 = vmatmul.mubr.bf16.vlgmr.msra.gmra.mrb[24].mxu1 %v8669_v44  ;;  %5017 = vmatpush1.bf16.msra.mxu0 %v6820_v22 }
 0x5cd   :  { %5123 = vmatpush1.bf16.msra.mxu1 %v6823_v1  ;;  %5880 = vmatprep.mubr.msk.bf16.mxu1 %vm1300_vm0, %v8679_v46 }
 0x5ce   :  { %5018 = vmatprep.subr.bf16.mxu0 %v6826_v2  ;;  %5124 = vmatprep.subr.bf16.mxu1 %v6932_v3 }
 0x5d0   :  { %5019 = vmatpush1.bf16.msra.mxu0 %v6824_v5 }
 0x5d1   :  { %5125 = vmatpush1.bf16.msra.mxu1 %v6827_v8  ;;  %5020 = vmatprep.subr.bf16.mxu0 %v6830_v9 }
 0x5d2   :  { %5126 = vmatprep.subr.bf16.mxu1 %v6932_v3 }
 0x5d4   :  { %5021 = vmatpush1.bf16.msra.mxu0 %v6828_v10 }
 0x5d5   :  { %5127 = vmatpush1.bf16.msra.mxu1 %v6831_v4  ;;  %5022 = vmatprep.subr.bf16.mxu0 %v6834_v6 }
 0x5d6   :  { %5128 = vmatprep.subr.bf16.mxu1 %v6932_v3 }
 0x5d8   :  { %5023 = vmatpush1.bf16.msra.mxu0 %v6832_v11 }
 0x5d9   :  { %5129 = vmatpush1.bf16.msra.mxu1 %v6835_v13  ;;  %5024 = vmatprep.subr.bf16.mxu0 %v6838_v16 }
 0x5da   :  { %5130 = vmatprep.subr.bf16.mxu1 %v6932_v3 }
 0x5dc   :  { %5025 = vmatpush1.bf16.msra.mxu0 %v6836_v17 }
 0x5dd   :  { %5131 = vmatpush1.bf16.msra.mxu1 %v6839_v61  ;;  %5026 = vmatprep.subr.bf16.mxu0 %v6842_v21 }
 0x5de   :  { %5132 = vmatprep.subr.bf16.mxu1 %v6932_v3 }
 0x5e0   :  { %5027 = vmatpush1.bf16.msra.mxu0 %v6840_v23 }
 0x5e1   :  { %5133 = vmatpush1.bf16.msra.mxu1 %v6843_v24  ;;  %5028 = vmatprep.subr.bf16.mxu0 %v6846_v26 }
 0x5e2   :  { %5134 = vmatprep.subr.bf16.mxu1 %v6932_v3 }
 0x5e4   :  { %5029 = vmatpush1.bf16.msra.mxu0 %v6844_v27 }
 0x5e5   :  { %5135 = vmatpush1.bf16.msra.mxu1 %v6847_v29  ;;  %5030 = vmatprep.subr.bf16.mxu0 %v6850_v30 }
 0x5e6   :  { %5136 = vmatprep.subr.bf16.mxu1 %v6932_v3 }
 0x5e8   :  { %5031 = vmatpush1.bf16.msra.mxu0 %v6848_v32 }
 0x5e9   :  { %5137 = vmatpush1.bf16.msra.mxu1 %v6851_v28  ;;  %5041 = vmatprep.subr.bf16.mxu0 %v6854_v33 }
 0x5ea   :  { %5138 = vmatprep.subr.bf16.mxu1 %v6932_v3  ;;  %v6859_v3 = vld [vmem:[%s9069_s12 + $0x400] ss:$28 sps:$4 sm:$0xff]  }
 0x5eb   :  { %5033 = vmatmul.mubr.bf16.vlgmr.msra.gmra.mrb[20].mxu0 %v8669_v44  ;;  %v6864_v44 = vld [vmem:[%s9069_s12 + $0x43c] ss:$28 sps:$4 sm:$0xff]  }
 0x5ec   :  { %5042 = vmatpush1.bf16.msra.mxu0 %v6852_v34  ;;  %5879 = vmatprep.mubr.msk.bf16.mxu0 %vm1300_vm0, %v8679_v46  ;;  %v6862_v46 = vld [vmem:[%s9069_s12 + $0x438] ss:$28 sps:$4 sm:$0xff]   ;;  %vm5247_vm0 = vcmask 1041408   ;;  %s6937_s12 = smov [#allocation2]  }
 0x5ed   :  { %5139 = vmatpush1.bf16.msra.mxu1 %v6855_v35  ;;  %5043 = vmatprep.subr.bf16.mxu0 %v6858_v12  ;;  %v3925_v12 = vrot.slane %v3896_v50, %v2775_v14  ;;  %vm5249_vm4 = vmor %vm5248_vm3, %vm5247_vm0  ;;  %s5261_s13 = sshll.u32 %s6937_s12, 4  ;;  %s5262_s13 = int_to_ptr.vmem [resolvable:$true] %s5261_s13 }
 0x5ee   :  { %vm5251_vm6 = vmor %vm5250_vm5, %vm5249_vm4  ;;  %s6908_s16 = scalar_lea.vmem %s5262_s13, 224  ;;  %p6913_p1 = scmp.lt.s32.totalorder %s5262_s13, %s5262_s13 }
 0x5ef   :  { %p6909_p0 = scmp.ne.s32.totalorder %s5262_s13, %s6908_s16  ;;  %p6914_p2 = scmp.lt.s32.totalorder %s6908_s16, %s6908_s16 }
 0x5f0   :  { %5155 = vmatmul.mubr.bf16.vlgmr.msra.gmra.mrb[28].mxu1 %v8789_v31  ;;  %5044 = vmatpush1.bf16.msra.mxu0 %v6856_v38 }
 0x5f1   :  { %5045 = vmatprep.subr.bf16.mxu0 %v6861_v40  ;;  %p6915_p3 = por %p6914_p2, %p6913_p1 }
 0x5f3   :  { %p6916_p4 = pnand %p6915_p3, %p6909_p0 }
 0x5f4   :  { %5046 = vmatpush1.bf16.msra.mxu0 %v6859_v3 }
 0x5f5   :  { %5047 = vmatprep.subr.bf16.mxu0 %v6864_v44 }
 0x5f8   :  { %5048 = vmatpush1.bf16.msra.mxu0 %v6862_v46 }
 0x5f9   :  { %5049 = vmatprep.subr.bf16.mxu0 %v6867_v41 }
 0x5fc   :  { %5050 = vmatpush1.bf16.msra.mxu0 %v6865_v42 }
 0x5fd   :  { %5051 = vmatprep.subr.bf16.mxu0 %v6870_v43  ;;  %v3917_v43 = vrot.slane %v3896_v50, %v2771_v19 }
 0x600   :  { %5052 = vmatpush1.bf16.msra.mxu0 %v6868_v25  ;;  %v3921_v25 = vrot.slane %v3896_v50, %v2815_v18 }
 0x601   :  { %5053 = vmatprep.subr.bf16.mxu0 %v6873_v36 }
 0x604   :  { %5054 = vmatpush1.bf16.msra.mxu0 %v6871_v45 }
 0x605   :  { %5055 = vmatprep.subr.bf16.mxu0 %v6876_v47 }
 0x608   :  { %5056 = vmatpush1.bf16.msra.mxu0 %v6874_v48 }
 0x609   :  { %5057 = vmatprep.subr.bf16.mxu0 %v6879_v49 }
 0x60c   :  { %5058 = vmatpush1.bf16.msra.mxu0 %v6877_v39 }
 0x60f   :  { %5074 = vmatmul.mubr.bf16.vlgmr.msra.gmra.mrb[20].mxu0 %v8789_v31 }
 0x67e   :  { %v4911_v57 = vpop.f32.mrb[16].mxu0  ;;  %v4993_v58 = vpop.f32.mrb[20].mxu1 }
 0x67f   :  { %v5946_v59 = vadd.f32 %v4911_v57, %v3901_v52  ;;  %v5948_v60 = vadd.f32 %v4993_v58, %v3909_v54  ;;  %v4913_v62 = vpop.f32.mrb[17].mxu0  ;;  %v4995_v63 = vpop.f32.mrb[21].mxu1 }
 0x680   :  { %v5947_v0 = vadd.f32 %v4913_v62, %v3905_v55  ;;  %v5949_v31 = vadd.f32 %v4995_v63, %v3913_v56  ;;  %v4915_v22 = vpop.f32.mrb[18].mxu0  ;;  %v4997_v1 = vpop.f32.mrb[22].mxu1 }
 0x681   :  { %v5881_v2 = vmul.f32 -1.442695, %v5946_v59  ;;  %v5883_v5 = vmul.f32 -1.442695, %v5948_v60  ;;  %v4916_v8 = vpop.f32.mrb[19].mxu0  ;;  %v4998_v51 = vpop.f32.mrb[23].mxu1 }
 0x682   :  { %v5882_v9 = vmul.f32 -1.442695, %v5947_v0  ;;  %v5884_v37 = vmul.f32 -1.442695, %v5949_v31 }
 0x683   :  { %6880 = vpow2.f32 %v5881_v2 }
 0x684   :  { %6882 = vpow2.f32 %v5883_v5 }
 0x685   :  { %6884 = vpow2.f32 %v5882_v9 }
 0x686   :  { %6886 = vpow2.f32 %v5884_v37 }
 0x68d   :  { %v6881_v53 = vpop.eup %6880 }
 0x68e   :  { %v6883_v20 = vpop.eup %6882  ;;  %v5183_v10 = vadd.f32 1.0, %v6881_v53 }
 0x68f   :  { %v6885_v4 = vpop.eup %6884  ;;  %v5185_v6 = vadd.f32 1.0, %v6883_v20 }
 0x690   :  { %v6887_v11 = vpop.eup %6886  ;;  %6888 = vrcp.f32 %v5183_v10  ;;  %v5184_v13 = vadd.f32 1.0, %v6885_v4 }
 0x691   :  { %6890 = vrcp.f32 %v5185_v6  ;;  %v5186_v16 = vadd.f32 1.0, %v6887_v11 }
 0x692   :  { %6892 = vrcp.f32 %v5184_v13 }
 0x693   :  { %6894 = vrcp.f32 %v5186_v16 }
 0x69a   :  { %v6889_v17 = vpop.eup %6888 }
 0x69b   :  { %v6891_v61 = vpop.eup %6890 }
 0x69c   :  { %v6893_v21 = vpop.eup %6892 }
 0x69d   :  { %v6895_v23 = vpop.eup %6894  ;;  %v5211_v24 = vcombine.low %v6889_v17, %v6893_v21 }
 0x69e   :  { %v5212_v26 = vcombine.low %v6891_v61, %v6895_v23 }
 0x69f   :  { %v5926_v27 = vpop.f32.mrb[24].mxu1  ;;  %v5219_v29 = vrot.slane %v5211_v24, %v7052_v15 }
 0x6a0   :  { %v5927_v30 = vpop.f32.mrb[25].mxu1  ;;  %v5226_v32 = vrot.slane %v5212_v26, %v7052_v15 }
 0x6a1   :  { %v5928_v28 = vadd.f32 %v5927_v30, %v5926_v27  ;;  %v5929_v33 = vpop.f32.mrb[26].mxu1 }
 0x6a2   :  { %v5930_v34 = vpop.f32.mrb[27].mxu1  ;;  %v5227_v35 = vcombine.low %v5219_v29, %v5226_v32 }
 0x6a3   :  { %v5117_v38 = vadd.f32 %v5928_v28, %v3925_v12 }
 0x6a4   :  { %5246 = vst [vmem:[#allocation2] sm:$0xff] %v5227_v35 }
 0x6c3   :  { %v5156_v40 = vpop.f32.mrb[28].mxu1 }
 0x6c4   :  { %v5157_v3 = vadd.f32 %v5156_v40, %v5117_v38  ;;  %v5158_v44 = vpop.f32.mrb[29].mxu1 }
 0x6c5   :  { %v5159_v46 = vpop.f32.mrb[30].mxu1 }
 0x6c6   :  { %v5160_v41 = vpop.f32.mrb[31].mxu1  ;;  %v5887_v42 = vmul.f32 -1.442695, %v5157_v3 }
 0x6c8   :  { %6896 = vpow2.f32 %v5887_v42 }
 0x6d2   :  { %v6897_v54 = vpop.eup %6896 }
 0x6d3   :  { %v5189_v55 = vadd.f32 1.0, %v6897_v54 }
 0x6e2   :  { %v5075_v36 = vpop.f32.mrb[20].mxu0 }
 0x6e3   :  { %v5950_v45 = vadd.f32 %v5075_v36, %v3917_v43  ;;  %v5077_v47 = vpop.f32.mrb[21].mxu0 }
 0x6e4   :  { %v5951_v48 = vadd.f32 %v5077_v47, %v3921_v25  ;;  %v5079_v49 = vpop.f32.mrb[22].mxu0 }
 0x6e5   :  { %v5885_v14 = vmul.f32 -1.442695, %v5950_v45  ;;  %v5080_v39 = vpop.f32.mrb[23].mxu0 }
 0x6e6   :  { %v5886_v52 = vmul.f32 -1.442695, %v5951_v48 }
 0x6e7   :  { %6898 = vpow2.f32 %v5885_v14 }
 0x6e8   :  { %6900 = vpow2.f32 %v5886_v52 }
 0x6e9   :  { %6902 = vrcp.f32 %v5189_v55 }
 0x6f1   :  { %v6899_v56 = vpop.eup %6898 }
 0x6f2   :  { %v6901_v57 = vpop.eup %6900  ;;  %v5187_v58 = vadd.f32 1.0, %v6899_v56 }
 0x6f3   :  { %v5188_v19 = vadd.f32 1.0, %v6901_v57  ;;  %v6903_v7 = vpop.eup %6902 }
 0x6f4   :  { %6904 = vrcp.f32 %v5187_v58  ;;  %v5242_v62 = vrot.slane %v6903_v7, %v7052_v15 }
 0x6f5   :  { %6906 = vrcp.f32 %v5188_v19 }
 0x6fe   :  { %v6905_v18 = vpop.eup %6904 }
 0x6ff   :  { %v6907_v50 = vpop.eup %6906 }
 0x700   :  { %v5228_v59 = vcombine.low %v6905_v18, %v6907_v50 }
 0x702   :  { %v5235_v60 = vrot.slane %v5228_v59, %v7052_v15 }
 0x704   :  { %v5243_v63 = vcombine.low %v5235_v60, %v5242_v62 }
 0x706   :  { %5252 = vst.msk [vmem:[#allocation2 + $0x8] sm:$0x3f] %vm5251_vm6, %v5243_v63 }
 0x707   :  { %6919 = shalt.err (!%p6916_p4)
}
 0x708   :  { %s6920_s18 = scalar_lea.hbm %s9071_s14, 224 }
 0x709   :  { %p6921_p5 = scmp.ne.s32.totalorder %s9071_s14, %s6920_s18  ;;  %p6924_p6 = scmp.lt.u32.totalorder %s6920_s18, %s9071_s14 }
 0x70b   :  { %p6926_p7 = pnand %p6924_p6, %p6921_p5 }
 0x70d   :  { %6929 = shalt.err (!%p6926_p7)
}
 0x70e   :  { %5264 = dma.vmem_to_hbm [thread:$0]  %s5262_s13, 224, %s9071_s14, [#allocation3]  }
 0x70f   :  { %6930 = dma.done.wait [#allocation3], 224  }
 0x710   :  { %6931 = vsyncadd [#allocation3], 4294967072 }
 0x711   :  { %5272 = vsyncpa [#allocation3], 1 }

</bundles_post_ra>
